<compile_context>
chip_gen: v6e
topology: v6e:2x2x1
jax: 0.10.0
libtpu: 0.0.40
codegen_flags: <defaults>
</compile_context>

<pallas_src>
import functools
import math

import jax
import jax.numpy as jnp
from jax.experimental import pallas as pl
from jax.experimental.pallas import tpu as pltpu

LN_EPS = 1e-5
LONG_EXPAND = 32          # nn.Linear(1, 32) inside LongCLIP_projector
_MASK_VALUE = -1e30       # large-negative logit for padded keys


# ----------------------------- small helpers --------------------------------
def _round_up(x, m):
    return (x + m - 1) // m * m


def _ln_normalize(x):
    mean = jnp.mean(x, axis=-1, keepdims=True)
    var = jnp.mean((x - mean) ** 2, axis=-1, keepdims=True)
    return (x - mean) * jax.lax.rsqrt(var + LN_EPS)


def _supports_buffered_blockspec():
    # Trace-time feature check (replaces the old broad runtime try/except):
    # only decides whether grid-invariant operands get a single VMEM buffer.
    try:
        pl.BlockSpec((8, 128), lambda b, m: (0, 0), pipeline_mode=pl.Buffered(1))
        return True
    except (AttributeError, TypeError):
        return False


_HAS_BUFFERED = _supports_buffered_blockspec()


def _vmem_capacity_bytes():
    try:
        return int(pltpu.get_tpu_info().vmem_capacity_bytes)
    except Exception:
        # Conservative default (v7x physical) if the query is unavailable.
        return 64 * 1024 * 1024


# --------------------------- fused main kernel ------------------------------
def _unilm_kernel(videos_ref, aux_ref, e_ref,
                  wvip_ref, wq_ref, wk_ref, wv_ref, w1_ref, w2_ref,
                  bvip_ref, vd_ref, vo_ref,
                  videos_out_ref, feat_out_ref,
                  q_sc, m_sc, l_sc, acc_sc,
                  *, m_valid, masked):
    bf16 = jnp.bfloat16
    f32 = jnp.float32
    mi = pl.program_id(1)                       # M-tile index (inner, "arbitrary")

    # packed bias rows (LN betas / biases / scales already folded in wrapper)
    b_long = vd_ref[0:1, :]
    b_q = vd_ref[1:2, :]
    b_k = vd_ref[2:3, :]
    b_v = vd_ref[3:4, :]
    b_t1 = vo_ref[0:1, :]
    b_t2 = vo_ref[1:2, :]

    # ---- once per batch element: LongCLIP expand + query projector + init ----
    @pl.when(mi == 0)
    def _():
        a2 = aux_ref[0]                                           # (NQ, D/32) f32
        # relu(aux * w_long + b_long) as a tiny f32 matmul with the constant
        # expand matrix (w_long folded into e_ref); exact per-element product.
        q_in = jnp.maximum(
            jnp.dot(a2, e_ref[...], preferred_element_type=f32) + b_long, 0.0)
        qn = _ln_normalize(q_in)                                  # gamma/beta folded
        q = jnp.dot(qn.astype(bf16), wq_ref[...],
                    preferred_element_type=f32) + b_q             # 1/sqrt(D) folded
        q_sc[...] = q.astype(bf16)
        m_sc[...] = jnp.full_like(m_sc, -jnp.inf)
        l_sc[...] = jnp.zeros_like(l_sc)
        acc_sc[...] = jnp.zeros_like(acc_sc)

    # ---- every M tile: CLIP_VIP projector + K/V + online-softmax update ----
    x = videos_ref[0]                                             # (MT, H) f32
    v_proj = jnp.maximum(
        jnp.dot(x.astype(bf16), wvip_ref[...],
                preferred_element_type=f32) + bvip_ref[...], 0.0)  # (MT, H) f32
    videos_out_ref[0] = v_proj.astype(videos_out_ref.dtype)

    # key/value share a single LayerNorm-normalize pass (gammas folded into W)
    vpn = _ln_normalize(v_proj).astype(bf16)                      # (MT, H) bf16
    k = (jnp.dot(vpn, wk_ref[...], preferred_element_type=f32) + b_k).astype(bf16)
    v = (jnp.dot(vpn, wv_ref[...], preferred_element_type=f32) + b_v).astype(bf16)

    # logits for this key tile; scale already folded into q.
    s = jax.lax.dot_general(q_sc[...], k, (((1,), (1,)), ((), ())),
                            preferred_element_type=f32)           # (NQ, MT) f32
    # torch.nan_to_num omitted: finite bf16 operands + f32 accumulation -> identity.
    if masked:
        col = jax.lax.broadcasted_iota(jnp.int32, s.shape, 1) + mi * s.shape[-1]
        s = jnp.where(col < m_valid, s, _MASK_VALUE)

    m_new = jnp.maximum(m_sc[...], jnp.max(s, axis=-1, keepdims=True))
    alpha = jnp.exp(m_sc[...] - m_new)
    p = jnp.exp(s - m_new)
    l_sc[...] = alpha * l_sc[...] + jnp.sum(p, axis=-1, keepdims=True)
    acc_sc[...] = alpha * acc_sc[...] + jnp.dot(p.astype(bf16), v,
                                                preferred_element_type=f32)
    m_sc[...] = m_new

    # ---- last M tile: softmax finalize + tokenizer projector ----
    @pl.when(mi == pl.num_programs(1) - 1)
    def _():
        feat = acc_sc[...] * pl.reciprocal(l_sc[...], approx=True)   # (NQ, D) f32
        fn = _ln_normalize(feat).astype(bf16)                        # gamma/beta folded
        h = jnp.maximum(jnp.dot(fn, w1_ref[...],
                                preferred_element_type=f32) + b_t1, 0.0)
        h = jnp.maximum(jnp.dot(h.astype(bf16), w2_ref[...],
                                preferred_element_type=f32) + b_t2, 0.0)
        feat_out_ref[0] = h.astype(feat_out_ref.dtype)


# ------------------------------ wrapper --------------------------------------
def unilm_projectors(videos, videos_aux, params, *, m_tile=None):
    B, M, H = videos.shape
    _, N, D = videos_aux.shape
    NQ = N * LONG_EXPAND
    O = params["w_tok2"].shape[-1]
    f32, bf16 = jnp.float32, jnp.bfloat16

    # ---- constant folding (trace-time): LN gammas -> weights, LN betas +
    # linear biases -> one bias row, attention 1/sqrt(D) -> query weight/bias.
    inv_sqrt_d = 1.0 / math.sqrt(D)
    w_q = params["w_q"].astype(f32)
    w_k = params["w_k"].astype(f32)
    w_v = params["w_v"].astype(f32)
    w_t1 = params["w_tok1"].astype(f32)
    wq_f = (params["g_q"].astype(f32).reshape(D, 1) * w_q) * inv_sqrt_d
    bq_f = (params["bln_q"].astype(f32) @ w_q + params["b_q"].astype(f32)) * inv_sqrt_d
    wk_f = params["g_k"].astype(f32).reshape(H, 1) * w_k
    bk_f = params["bln_k"].astype(f32) @ w_k + params["b_k"].astype(f32)
    wv_f = params["g_v"].astype(f32).reshape(H, 1) * w_v
    bv_f = params["bln_v"].astype(f32) @ w_v + params["b_v"].astype(f32)
    wt1_f = params["g_t"].astype(f32).reshape(D, 1) * w_t1
    bt1_f = params["bln_t"].astype(f32) @ w_t1 + params["b_tok1"].astype(f32)

    # ---- LongCLIP Linear(1,32)+ReLU: expressed as a tiny in-kernel matmul
    # with a constant (D/32, D) expand matrix (w_long folded in).  Only the raw
    # (B, N, D) aux tensor crosses HBM (the zero-copy reshape just relabels it).
    w_long = params["w_long"].reshape(-1).astype(f32)    # (32,)
    b_long = params["b_long"].reshape(-1).astype(f32)    # (32,)
    if D % LONG_EXPAND == 0:
        ds = D // LONG_EXPAND
        aux_in = videos_aux.astype(f32).reshape(B, NQ, ds)
        cols = jnp.arange(D)
        e_mat = jnp.where((cols // LONG_EXPAND)[None, :] == jnp.arange(ds)[:, None],
                          jnp.tile(w_long, ds)[None, :], 0.0).astype(f32)
        b_long_row = jnp.tile(b_long, ds)[None, :]                          # (1, D)
    else:
        # Fallback for D not divisible by 32: materialize the expand in the
        # wrapper (extra HBM traffic); relu is idempotent through the kernel.
        ds = D
        ex = jax.nn.relu(videos_aux.astype(f32)[..., None] * w_long + b_long)
        aux_in = ex.reshape(B, N, LONG_EXPAND, D).reshape(B, NQ, D)
        e_mat = jnp.eye(D, dtype=f32)
        b_long_row = jnp.zeros((1, D), f32)

    # ---- per-generation M tiling + scoped VMEM limit ----
    vmem_cap = _vmem_capacity_bytes()
    vmem_limit = int(min(0.8 * vmem_cap, 100 * 1024 * 1024))   # ~51 MiB v7x, 100 MiB v5e/v6e
    if m_tile is None:
        target = 1024 if vmem_cap >= 96 * 1024 * 1024 else 384
        m_tile = min(target, _round_up(M, 8))
    m_tile = max(8, _round_up(int(m_tile), 8))                 # keep (8,128) layout happy
    m_pad = _round_up(M, m_tile)
    masked = m_pad != M
    if masked:
        videos = jnp.pad(videos, ((0, 0), (0, m_pad - M), (0, 0)))
    n_mt = m_pad // m_tile

    # packed bias tables (few DMA descriptors, little VMEM fragmentation)
    vecD = jnp.concatenate([b_long_row, bq_f, bk_f, bv_f], axis=0)          # (4, D)
    vecO = jnp.concatenate([bt1_f, params["b_tok2"].astype(f32)], axis=0)   # (2, O)
    b_vip = params["b_vip"].astype(f32)                                     # (1, H)

    w_feed = [params["w_vip"].astype(bf16), wq_f.astype(bf16), wk_f.astype(bf16),
              wv_f.astype(bf16), wt1_f.astype(bf16), params["w_tok2"].astype(bf16)]

    def inv_spec(shape):
        # grid-invariant operand: single VMEM buffer when supported.
        if _HAS_BUFFERED:
            return pl.BlockSpec(shape, lambda b, m: (0, 0),
                                pipeline_mode=pl.Buffered(1))
        return pl.BlockSpec(shape, lambda b, m: (0, 0))

    in_specs = [
        pl.BlockSpec((1, m_tile, H), lambda b, m: (b, m, 0)),   # videos (M-tiled)
        pl.BlockSpec((1, NQ, ds), lambda b, m: (b, 0, 0)),      # raw aux (per batch)
        inv_spec((ds, D)),                                      # expand matrix
        inv_spec((H, H)), inv_spec((D, D)), inv_spec((H, D)),   # w_vip, w_q', w_k'
        inv_spec((H, D)), inv_spec((D, O)), inv_spec((O, O)),   # w_v', w_tok1', w_tok2
        inv_spec((1, H)), inv_spec((4, D)), inv_spec((2, O)),   # b_vip, vecD, vecO
    ]
    out_specs = (
        pl.BlockSpec((1, m_tile, H), lambda b, m: (b, m, 0)),   # projected videos
        pl.BlockSpec((1, NQ, O), lambda b, m: (b, 0, 0)),       # tokenizer features
    )
    out_shape = (jax.ShapeDtypeStruct((B, m_pad, H), f32),
                 jax.ShapeDtypeStruct((B, NQ, O), f32))
    scratch = [pltpu.VMEM((NQ, D), bf16),    # q (computed once per batch)
               pltpu.VMEM((NQ, 1), f32),     # running max
               pltpu.VMEM((NQ, 1), f32),     # running denom
               pltpu.VMEM((NQ, D), f32)]     # unnormalized P@V accumulator

    kernel = functools.partial(_unilm_kernel, m_valid=M, masked=masked)
    videos_out, feat = pl.pallas_call(
        kernel,
        out_shape=out_shape,
        grid=(B, n_mt),
        in_specs=in_specs,
        out_specs=out_specs,
        scratch_shapes=scratch,
        compiler_params=pltpu.CompilerParams(
            dimension_semantics=("parallel", "arbitrary"),
            vmem_limit_bytes=vmem_limit),
    )(videos, aux_in, e_mat, *w_feed, b_vip, vecD, vecO)

    if masked:
        videos_out = videos_out[:, :M, :]
    return videos_out, feat


# --------------------------- parameter init ----------------------------------
def init_params(key, hidden_size, hidden_size_aux, output_hidden_size):
    H, D, O = hidden_size, hidden_size_aux, output_hidden_size
    ks = list(jax.random.split(key, 22))

    def xavier(k, fan_in, fan_out):
        bound = math.sqrt(6.0 / (fan_in + fan_out))
        return jax.random.uniform(k, (fan_in, fan_out), jnp.float32, -bound, bound)

    # The module's _init_weights gives zero biases/betas and unit gammas; small
    # random perturbations exercise the constant-folding / packed-vector paths.
    def vec(k, n, base=0.0):
        return base + 0.1 * jax.random.normal(k, (1, n), jnp.float32)

    return {
        # CLIP_VIP_projector: Linear(H, H) + ReLU
        "w_vip": xavier(ks[0], H, H), "b_vip": vec(ks[1], H),
        # LongCLIP_projector: Linear(1, 32) + ReLU
        "w_long": xavier(ks[2], 1, LONG_EXPAND), "b_long": vec(ks[3], LONG_EXPAND),
        # query_projector: LayerNorm(D) + Linear(D, D)
        "g_q": vec(ks[4], D, base=1.0), "bln_q": vec(ks[5], D),
        "w_q": xavier(ks[6], D, D), "b_q": vec(ks[7], D),
        # key_projector: LayerNorm(H) + Linear(H, D)
        "g_k": vec(ks[8], H, base=1.0), "bln_k": vec(ks[9], H),
        "w_k": xavier(ks[10], H, D), "b_k": vec(ks[11], D),
        # val_projector: LayerNorm(H) + Linear(H, D)
        "g_v": vec(ks[12], H, base=1.0), "bln_v": vec(ks[13], H),
        "w_v": xavier(ks[14], H, D), "b_v": vec(ks[15], D),
        # tokenizer_projector: LayerNorm(D) + Linear(D,O) + ReLU + Linear(O,O) + ReLU
        "g_t": vec(ks[16], D, base=1.0), "bln_t": vec(ks[17], D),
        "w_tok1": xavier(ks[18], D, O), "b_tok1": vec(ks[19], O),
        "w_tok2": xavier(ks[20], O, O), "b_tok2": vec(ks[21], O),
    }


# ------------------------------ reference ------------------------------------
def reference(videos, videos_aux, p):
    """Pure-f32 ground truth mirroring the PyTorch forward."""
    def ln(x, g, b):
        mu = x.mean(-1, keepdims=True)
        var = ((x - mu) ** 2).mean(-1, keepdims=True)
        return (x - mu) / jnp.sqrt(var + LN_EPS) * g + b

    vp = jax.nn.relu(videos @ p["w_vip"] + p["b_vip"])
    B, N, D = videos_aux.shape
    a = videos_aux.reshape(B * N * D, 1)
    a = jax.nn.relu(a @ p["w_long"] + p["b_long"])
    a = a.reshape(B, N, LONG_EXPAND, D).reshape(B, N * LONG_EXPAND, D)
    q = ln(a, p["g_q"], p["bln_q"]) @ p["w_q"] + p["b_q"]
    k = ln(vp, p["g_k"], p["bln_k"]) @ p["w_k"] + p["b_k"]
    v = ln(vp, p["g_v"], p["bln_v"]) @ p["w_v"] + p["b_v"]
    att = jnp.einsum("bqd,bkd->bqk", q, k) / (k.shape[-1] ** 0.5)
    att = jnp.nan_to_num(att)
    feat = jax.nn.softmax(att, -1) @ v
    h = ln(feat, p["g_t"], p["bln_t"])
    h = jax.nn.relu(h @ p["w_tok1"] + p["b_tok1"])
    h = jax.nn.relu(h @ p["w_tok2"] + p["b_tok2"])
    return vp, h


# -------------------------------- main ----------------------------------------
if __name__ == "__main__":
    # small synthetic shapes consistent with the module's forward
    B, M, N = 2, 24, 4          # batch, CLIP-ViP tokens, LongCLIP tokens
    hidden_size = 32            # H (768 in the real model)
    hidden_size_aux = 64        # D (512 in the real model; multiple of 32)
    output_hidden_size = 64     # O (2048 in the real model)

    key = jax.random.PRNGKey(0)
    k_v, k_a, k_p = jax.random.split(key, 3)
    videos = jax.random.normal(k_v, (B, M, hidden_size), jnp.float32)
    videos_aux = jax.random.normal(k_a, (B, N, hidden_size_aux), jnp.float32)
    params = init_params(k_p, hidden_size, hidden_size_aux, output_hidden_size)

    # m_tile=16 with M=24 exercises the online-softmax across 2 M tiles plus
    # the padded-key masking path.
    fwd = jax.jit(functools.partial(unilm_projectors, m_tile=16))
    videos_out, feat_out = fwd(videos, videos_aux, params)
    jax.block_until_ready((videos_out, feat_out))

    ref_videos, ref_feat = reference(videos, videos_aux, params)
    assert videos_out.shape == ref_videos.shape
    assert feat_out.shape == ref_feat.shape
    # bf16 matmul operands (f32 accumulation), folded LN gammas and approx
    # softmax reciprocal -> loosened tolerances vs. the f32 reference.
    err_v = float(jnp.max(jnp.abs(videos_out - ref_videos)))
    err_f = float(jnp.max(jnp.abs(feat_out - ref_feat)))
    assert jnp.allclose(videos_out, ref_videos, atol=2.5e-2, rtol=2.5e-2), err_v
    assert jnp.allclose(feat_out, ref_feat, atol=6e-2, rtol=6e-2), err_f
    print("KERNEL_OK")
</pallas_src>

<mosaic_0001>
module attributes {stable_mosaic.version = 11 : i64} {
  func.func @_unilm_kernel(%arg0: i32, %arg1: i32, %arg2: memref<1x16x32xf32, #tpu.memory_space<vmem>>, %arg3: memref<1x128x2xf32, #tpu.memory_space<vmem>>, %arg4: memref<2x64xf32, #tpu.memory_space<vmem>>, %arg5: memref<32x32xbf16, #tpu.memory_space<vmem>>, %arg6: memref<64x64xbf16, #tpu.memory_space<vmem>>, %arg7: memref<32x64xbf16, #tpu.memory_space<vmem>>, %arg8: memref<32x64xbf16, #tpu.memory_space<vmem>>, %arg9: memref<64x64xbf16, #tpu.memory_space<vmem>>, %arg10: memref<64x64xbf16, #tpu.memory_space<vmem>>, %arg11: memref<1x32xf32, #tpu.memory_space<vmem>>, %arg12: memref<4x64xf32, #tpu.memory_space<vmem>>, %arg13: memref<2x64xf32, #tpu.memory_space<vmem>>, %arg14: memref<1x16x32xf32, #tpu.memory_space<vmem>>, %arg15: memref<1x128x64xf32, #tpu.memory_space<vmem>>, %arg16: memref<128x64xbf16, #tpu.memory_space<vmem>>, %arg17: memref<128x1xf32, #tpu.memory_space<vmem>>, %arg18: memref<128x1xf32, #tpu.memory_space<vmem>>, %arg19: memref<128x64xf32, #tpu.memory_space<vmem>>) attributes {dimension_semantics = [#tpu.dimension_semantics<parallel>, #tpu.dimension_semantics<arbitrary>], iteration_bounds = array<i64: 2, 2>, scalar_prefetch = 0 : i64, scratch_operands = 4 : i64, tpu.core_type = #tpu.core_type<tc>, window_params = [{transform_indices = @transform_0, window_bounds = array<i64: 1, 16, 32>}, {transform_indices = @transform_1, window_bounds = array<i64: 1, 128, 2>}, {pipeline_mode = #tpu.pipeline_mode<synchronous>, transform_indices = @transform_2, window_bounds = array<i64: 2, 64>}, {pipeline_mode = #tpu.pipeline_mode<synchronous>, transform_indices = @transform_3, window_bounds = array<i64: 32, 32>}, {pipeline_mode = #tpu.pipeline_mode<synchronous>, transform_indices = @transform_4, window_bounds = array<i64: 64, 64>}, {pipeline_mode = #tpu.pipeline_mode<synchronous>, transform_indices = @transform_5, window_bounds = array<i64: 32, 64>}, {pipeline_mode = #tpu.pipeline_mode<synchronous>, transform_indices = @transform_6, window_bounds = array<i64: 32, 64>}, {pipeline_mode = #tpu.pipeline_mode<synchronous>, transform_indices = @transform_7, window_bounds = array<i64: 64, 64>}, {pipeline_mode = #tpu.pipeline_mode<synchronous>, transform_indices = @transform_8, window_bounds = array<i64: 64, 64>}, {pipeline_mode = #tpu.pipeline_mode<synchronous>, transform_indices = @transform_9, window_bounds = array<i64: 1, 32>}, {pipeline_mode = #tpu.pipeline_mode<synchronous>, transform_indices = @transform_10, window_bounds = array<i64: 4, 64>}, {pipeline_mode = #tpu.pipeline_mode<synchronous>, transform_indices = @transform_11, window_bounds = array<i64: 2, 64>}, {transform_indices = @transform_12, window_bounds = array<i64: 1, 16, 32>}, {transform_indices = @transform_13, window_bounds = array<i64: 1, 128, 64>}]} {
    %c0 = arith.constant 0 : index
    %c0_0 = arith.constant 0 : index
    %0 = vector.load %arg12[%c0, %c0_0] : memref<4x64xf32, #tpu.memory_space<vmem>>, vector<1x64xf32>
    %c1 = arith.constant 1 : index
    %c0_1 = arith.constant 0 : index
    %1 = vector.load %arg12[%c1, %c0_1] : memref<4x64xf32, #tpu.memory_space<vmem>>, vector<1x64xf32>
    %c2 = arith.constant 2 : index
    %c0_2 = arith.constant 0 : index
    %2 = vector.load %arg12[%c2, %c0_2] : memref<4x64xf32, #tpu.memory_space<vmem>>, vector<1x64xf32>
    %c3 = arith.constant 3 : index
    %c0_3 = arith.constant 0 : index
    %3 = vector.load %arg12[%c3, %c0_3] : memref<4x64xf32, #tpu.memory_space<vmem>>, vector<1x64xf32>
    %c0_4 = arith.constant 0 : index
    %c0_5 = arith.constant 0 : index
    %4 = vector.load %arg13[%c0_4, %c0_5] : memref<2x64xf32, #tpu.memory_space<vmem>>, vector<1x64xf32>
    %c1_6 = arith.constant 1 : index
    %c0_7 = arith.constant 0 : index
    %5 = vector.load %arg13[%c1_6, %c0_7] : memref<2x64xf32, #tpu.memory_space<vmem>>, vector<1x64xf32>
    %c0_i32 = arith.constant 0 : i32
    %6 = arith.cmpi eq, %arg1, %c0_i32 : i32
    %7 = arith.extui %6 : i1 to i32
    %c0_i32_8 = arith.constant 0 : i32
    %8 = arith.cmpi ne, %7, %c0_i32_8 : i32
    scf.if %8 {
      %c0_53 = arith.constant 0 : index
      %c0_54 = arith.constant 0 : index
      %c0_55 = arith.constant 0 : index
      %88 = vector.load %arg3[%c0_53, %c0_54, %c0_55] : memref<1x128x2xf32, #tpu.memory_space<vmem>>, vector<1x128x2xf32>
      %89 = vector.shape_cast %88 : vector<1x128x2xf32> to vector<128x2xf32>
      %c0_56 = arith.constant 0 : index
      %c0_57 = arith.constant 0 : index
      %90 = vector.load %arg4[%c0_56, %c0_57] : memref<2x64xf32, #tpu.memory_space<vmem>>, vector<2x64xf32>
      %cst_58 = arith.constant dense<0.000000e+00> : vector<128x64xf32>
      %91 = tpu.matmul %89, %90, %cst_58 {dimension_numbers = #tpu.dot_dimension_numbers<[1], [0], [0], [1], [0, 0, 1, 1], [], []>} : vector<128x2xf32>, vector<2x64xf32>, vector<128x64xf32> -> vector<128x64xf32>
      %92 = vector.broadcast %0 : vector<1x64xf32> to vector<128x64xf32>
      %93 = arith.addf %91, %92 : vector<128x64xf32>
      %cst_59 = arith.constant 0.000000e+00 : f32
      %94 = vector.broadcast %cst_59 : f32 to vector<128x64xf32>
      %95 = arith.maximumf %93, %94 : vector<128x64xf32>
      %cst_60 = arith.constant dense<0.000000e+00> : vector<128xf32>
      %96 = vector.multi_reduction <add>, %95, %cst_60 [1] : vector<128x64xf32> to vector<128xf32>
      %97 = vector.shape_cast %96 : vector<128xf32> to vector<128x1xf32>
      %cst_61 = arith.constant 6.400000e+01 : f32
      %98 = vector.broadcast %cst_61 : f32 to vector<128x1xf32>
      %99 = arith.divf %97, %98 : vector<128x1xf32>
      %100 = vector.broadcast %99 : vector<128x1xf32> to vector<128x64xf32>
      %101 = arith.subf %95, %100 : vector<128x64xf32>
      %102 = arith.mulf %101, %101 : vector<128x64xf32>
      %cst_62 = arith.constant dense<0.000000e+00> : vector<128xf32>
      %103 = vector.multi_reduction <add>, %102, %cst_62 [1] : vector<128x64xf32> to vector<128xf32>
      %104 = vector.shape_cast %103 : vector<128xf32> to vector<128x1xf32>
      %cst_63 = arith.constant 6.400000e+01 : f32
      %105 = vector.broadcast %cst_63 : f32 to vector<128x1xf32>
      %106 = arith.divf %104, %105 : vector<128x1xf32>
      %107 = vector.broadcast %99 : vector<128x1xf32> to vector<128x64xf32>
      %108 = arith.subf %95, %107 : vector<128x64xf32>
      %cst_64 = arith.constant 9.99999974E-6 : f32
      %109 = vector.broadcast %cst_64 : f32 to vector<128x1xf32>
      %110 = arith.addf %106, %109 : vector<128x1xf32>
      %111 = math.rsqrt %110 : vector<128x1xf32>
      %112 = vector.broadcast %111 : vector<128x1xf32> to vector<128x64xf32>
      %113 = arith.mulf %108, %112 : vector<128x64xf32>
      %114 = arith.truncf %113 : vector<128x64xf32> to vector<128x64xbf16>
      %c0_65 = arith.constant 0 : index
      %c0_66 = arith.constant 0 : index
      %115 = vector.load %arg6[%c0_65, %c0_66] : memref<64x64xbf16, #tpu.memory_space<vmem>>, vector<64x64xbf16>
      %cst_67 = arith.constant dense<0.000000e+00> : vector<128x64xf32>
      %116 = tpu.matmul %114, %115, %cst_67 {dimension_numbers = #tpu.dot_dimension_numbers<[1], [0], [0], [1], [0, 0, 1, 1], [], []>} : vector<128x64xbf16>, vector<64x64xbf16>, vector<128x64xf32> -> vector<128x64xf32>
      %117 = vector.broadcast %1 : vector<1x64xf32> to vector<128x64xf32>
      %118 = arith.addf %116, %117 : vector<128x64xf32>
      %119 = arith.truncf %118 : vector<128x64xf32> to vector<128x64xbf16>
      %c0_68 = arith.constant 0 : index
      %c0_69 = arith.constant 0 : index
      %120 = vector.load %arg16[%c0_68, %c0_69] : memref<128x64xbf16, #tpu.memory_space<vmem>>, vector<128x64xbf16>
      tpu.vector_store %arg16[%c0_68, %c0_69], %119 {strides = array<i32>} : memref<128x64xbf16, #tpu.memory_space<vmem>>, vector<128x64xbf16>,
      %cst_70 = arith.constant 0xFF800000 : f32
      %121 = vector.broadcast %cst_70 : f32 to vector<128x1xf32>
      %c0_71 = arith.constant 0 : index
      %c0_72 = arith.constant 0 : index
      %122 = vector.load %arg17[%c0_71, %c0_72] : memref<128x1xf32, #tpu.memory_space<vmem>>, vector<128x1xf32>
      tpu.vector_store %arg17[%c0_71, %c0_72], %121 {strides = array<i32>} : memref<128x1xf32, #tpu.memory_space<vmem>>, vector<128x1xf32>,
      %cst_73 = arith.constant 0.000000e+00 : f32
      %123 = vector.broadcast %cst_73 : f32 to vector<128x1xf32>
      %c0_74 = arith.constant 0 : index
      %c0_75 = arith.constant 0 : index
      %124 = vector.load %arg18[%c0_74, %c0_75] : memref<128x1xf32, #tpu.memory_space<vmem>>, vector<128x1xf32>
      tpu.vector_store %arg18[%c0_74, %c0_75], %123 {strides = array<i32>} : memref<128x1xf32, #tpu.memory_space<vmem>>, vector<128x1xf32>,
      %cst_76 = arith.constant 0.000000e+00 : f32
      %125 = vector.broadcast %cst_76 : f32 to vector<128x64xf32>
      %c0_77 = arith.constant 0 : index
      %c0_78 = arith.constant 0 : index
      %126 = vector.load %arg19[%c0_77, %c0_78] : memref<128x64xf32, #tpu.memory_space<vmem>>, vector<128x64xf32>
      tpu.vector_store %arg19[%c0_77, %c0_78], %125 {strides = array<i32>} : memref<128x64xf32, #tpu.memory_space<vmem>>, vector<128x64xf32>,
    } else {
    }
    %c0_9 = arith.constant 0 : index
    %c0_10 = arith.constant 0 : index
    %c0_11 = arith.constant 0 : index
    %9 = vector.load %arg2[%c0_9, %c0_10, %c0_11] : memref<1x16x32xf32, #tpu.memory_space<vmem>>, vector<1x16x32xf32>
    %10 = vector.shape_cast %9 : vector<1x16x32xf32> to vector<16x32xf32>
    %11 = arith.truncf %10 : vector<16x32xf32> to vector<16x32xbf16>
    %c0_12 = arith.constant 0 : index
    %c0_13 = arith.constant 0 : index
    %12 = vector.load %arg5[%c0_12, %c0_13] : memref<32x32xbf16, #tpu.memory_space<vmem>>, vector<32x32xbf16>
    %cst = arith.constant dense<0.000000e+00> : vector<16x32xf32>
    %13 = tpu.matmul %11, %12, %cst {dimension_numbers = #tpu.dot_dimension_numbers<[1], [0], [0], [1], [0, 0, 1, 1], [], []>} : vector<16x32xbf16>, vector<32x32xbf16>, vector<16x32xf32> -> vector<16x32xf32>
    %c0_14 = arith.constant 0 : index
    %c0_15 = arith.constant 0 : index
    %14 = vector.load %arg11[%c0_14, %c0_15] : memref<1x32xf32, #tpu.memory_space<vmem>>, vector<1x32xf32>
    %15 = vector.broadcast %14 : vector<1x32xf32> to vector<16x32xf32>
    %16 = arith.addf %13, %15 : vector<16x32xf32>
    %cst_16 = arith.constant 0.000000e+00 : f32
    %17 = vector.broadcast %cst_16 : f32 to vector<16x32xf32>
    %18 = arith.maximumf %16, %17 : vector<16x32xf32>
    %c0_17 = arith.constant 0 : index
    %c0_18 = arith.constant 0 : index
    %c0_19 = arith.constant 0 : index
    %19 = vector.load %arg14[%c0_17, %c0_18, %c0_19] : memref<1x16x32xf32, #tpu.memory_space<vmem>>, vector<1x16x32xf32>
    %20 = vector.shape_cast %19 : vector<1x16x32xf32> to vector<16x32xf32>
    %21 = vector.shape_cast %18 : vector<16x32xf32> to vector<1x16x32xf32>
    tpu.vector_store %arg14[%c0_17, %c0_18, %c0_19], %21 {strides = array<i32>} : memref<1x16x32xf32, #tpu.memory_space<vmem>>, vector<1x16x32xf32>,
    %cst_20 = arith.constant dense<0.000000e+00> : vector<16xf32>
    %22 = vector.multi_reduction <add>, %18, %cst_20 [1] : vector<16x32xf32> to vector<16xf32>
    %23 = vector.shape_cast %22 : vector<16xf32> to vector<16x1xf32>
    %cst_21 = arith.constant 3.200000e+01 : f32
    %24 = vector.broadcast %cst_21 : f32 to vector<16x1xf32>
    %25 = arith.divf %23, %24 : vector<16x1xf32>
    %26 = vector.broadcast %25 : vector<16x1xf32> to vector<16x32xf32>
    %27 = arith.subf %18, %26 : vector<16x32xf32>
    %28 = arith.mulf %27, %27 : vector<16x32xf32>
    %cst_22 = arith.constant dense<0.000000e+00> : vector<16xf32>
    %29 = vector.multi_reduction <add>, %28, %cst_22 [1] : vector<16x32xf32> to vector<16xf32>
    %30 = vector.shape_cast %29 : vector<16xf32> to vector<16x1xf32>
    %cst_23 = arith.constant 3.200000e+01 : f32
    %31 = vector.broadcast %cst_23 : f32 to vector<16x1xf32>
    %32 = arith.divf %30, %31 : vector<16x1xf32>
    %33 = vector.broadcast %25 : vector<16x1xf32> to vector<16x32xf32>
    %34 = arith.subf %18, %33 : vector<16x32xf32>
    %cst_24 = arith.constant 9.99999974E-6 : f32
    %35 = vector.broadcast %cst_24 : f32 to vector<16x1xf32>
    %36 = arith.addf %32, %35 : vector<16x1xf32>
    %37 = math.rsqrt %36 : vector<16x1xf32>
    %38 = vector.broadcast %37 : vector<16x1xf32> to vector<16x32xf32>
    %39 = arith.mulf %34, %38 : vector<16x32xf32>
    %40 = arith.truncf %39 : vector<16x32xf32> to vector<16x32xbf16>
    %c0_25 = arith.constant 0 : index
    %c0_26 = arith.constant 0 : index
    %41 = vector.load %arg7[%c0_25, %c0_26] : memref<32x64xbf16, #tpu.memory_space<vmem>>, vector<32x64xbf16>
    %cst_27 = arith.constant dense<0.000000e+00> : vector<16x64xf32>
    %42 = tpu.matmul %40, %41, %cst_27 {dimension_numbers = #tpu.dot_dimension_numbers<[1], [0], [0], [1], [0, 0, 1, 1], [], []>} : vector<16x32xbf16>, vector<32x64xbf16>, vector<16x64xf32> -> vector<16x64xf32>
    %43 = vector.broadcast %2 : vector<1x64xf32> to vector<16x64xf32>
    %44 = arith.addf %42, %43 : vector<16x64xf32>
    %45 = arith.truncf %44 : vector<16x64xf32> to vector<16x64xbf16>
    %c0_28 = arith.constant 0 : index
    %c0_29 = arith.constant 0 : index
    %46 = vector.load %arg8[%c0_28, %c0_29] : memref<32x64xbf16, #tpu.memory_space<vmem>>, vector<32x64xbf16>
    %cst_30 = arith.constant dense<0.000000e+00> : vector<16x64xf32>
    %47 = tpu.matmul %40, %46, %cst_30 {dimension_numbers = #tpu.dot_dimension_numbers<[1], [0], [0], [1], [0, 0, 1, 1], [], []>} : vector<16x32xbf16>, vector<32x64xbf16>, vector<16x64xf32> -> vector<16x64xf32>
    %48 = vector.broadcast %3 : vector<1x64xf32> to vector<16x64xf32>
    %49 = arith.addf %47, %48 : vector<16x64xf32>
    %50 = arith.truncf %49 : vector<16x64xf32> to vector<16x64xbf16>
    %c0_31 = arith.constant 0 : index
    %c0_32 = arith.constant 0 : index
    %51 = vector.load %arg16[%c0_31, %c0_32] : memref<128x64xbf16, #tpu.memory_space<vmem>>, vector<128x64xbf16>
    %cst_33 = arith.constant dense<0.000000e+00> : vector<128x16xf32>
    %52 = tpu.matmul %51, %45, %cst_33 {dimension_numbers = #tpu.dot_dimension_numbers<[1], [1], [0], [0], [0, 0, 1, 0], [], []>} : vector<128x64xbf16>, vector<16x64xbf16>, vector<128x16xf32> -> vector<128x16xf32>
    %53 = tpu.iota {dimensions = array<i32: 1>} : vector<128x16xi32>
    %c16_i32 = arith.constant 16 : i32
    %54 = arith.muli %arg1, %c16_i32 : i32
    %55 = vector.broadcast %54 : i32 to vector<128x16xi32>
    %56 = arith.addi %53, %55 : vector<128x16xi32>
    %c24_i32 = arith.constant 24 : i32
    %57 = vector.broadcast %c24_i32 : i32 to vector<128x16xi32>
    %58 = arith.cmpi slt, %56, %57 : vector<128x16xi32>
    %cst_34 = arith.constant -1.000000e+30 : f32
    %59 = vector.broadcast %cst_34 : f32 to vector<128x16xf32>
    %60 = arith.select %58, %52, %59 : vector<128x16xi1>, vector<128x16xf32>
    %c0_35 = arith.constant 0 : index
    %c0_36 = arith.constant 0 : index
    %61 = vector.load %arg17[%c0_35, %c0_36] : memref<128x1xf32, #tpu.memory_space<vmem>>, vector<128x1xf32>
    %cst_37 = arith.constant dense<0xFF800000> : vector<128xf32>
    %62 = vector.multi_reduction <maximumf>, %60, %cst_37 [1] : vector<128x16xf32> to vector<128xf32>
    %63 = vector.shape_cast %62 : vector<128xf32> to vector<128x1xf32>
    %64 = arith.maximumf %61, %63 : vector<128x1xf32>
    %c0_38 = arith.constant 0 : index
    %c0_39 = arith.constant 0 : index
    %65 = vector.load %arg17[%c0_38, %c0_39] : memref<128x1xf32, #tpu.memory_space<vmem>>, vector<128x1xf32>
    %66 = arith.subf %65, %64 : vector<128x1xf32>
    %67 = math.exp %66 : vector<128x1xf32>
    %68 = vector.broadcast %64 : vector<128x1xf32> to vector<128x16xf32>
    %69 = arith.subf %60, %68 : vector<128x16xf32>
    %70 = math.exp %69 : vector<128x16xf32>
    %c0_40 = arith.constant 0 : index
    %c0_41 = arith.constant 0 : index
    %71 = vector.load %arg18[%c0_40, %c0_41] : memref<128x1xf32, #tpu.memory_space<vmem>>, vector<128x1xf32>
    %72 = arith.mulf %67, %71 : vector<128x1xf32>
    %cst_42 = arith.constant dense<0.000000e+00> : vector<128xf32>
    %73 = vector.multi_reduction <add>, %70, %cst_42 [1] : vector<128x16xf32> to vector<128xf32>
    %74 = vector.shape_cast %73 : vector<128xf32> to vector<128x1xf32>
    %75 = arith.addf %72, %74 : vector<128x1xf32>
    %c0_43 = arith.constant 0 : index
    %c0_44 = arith.constant 0 : index
    %76 = vector.load %arg18[%c0_43, %c0_44] : memref<128x1xf32, #tpu.memory_space<vmem>>, vector<128x1xf32>
    tpu.vector_store %arg18[%c0_43, %c0_44], %75 {strides = array<i32>} : memref<128x1xf32, #tpu.memory_space<vmem>>, vector<128x1xf32>,
    %c0_45 = arith.constant 0 : index
    %c0_46 = arith.constant 0 : index
    %77 = vector.load %arg19[%c0_45, %c0_46] : memref<128x64xf32, #tpu.memory_space<vmem>>, vector<128x64xf32>
    %78 = vector.broadcast %67 : vector<128x1xf32> to vector<128x64xf32>
    %79 = arith.mulf %78, %77 : vector<128x64xf32>
    %80 = arith.truncf %70 : vector<128x16xf32> to vector<128x16xbf16>
    %cst_47 = arith.constant dense<0.000000e+00> : vector<128x64xf32>
    %81 = tpu.matmul %80, %50, %cst_47 {dimension_numbers = #tpu.dot_dimension_numbers<[1], [0], [0], [1], [0, 0, 1, 1], [], []>} : vector<128x16xbf16>, vector<16x64xbf16>, vector<128x64xf32> -> vector<128x64xf32>
    %82 = arith.addf %79, %81 : vector<128x64xf32>
    %c0_48 = arith.constant 0 : index
    %c0_49 = arith.constant 0 : index
    %83 = vector.load %arg19[%c0_48, %c0_49] : memref<128x64xf32, #tpu.memory_space<vmem>>, vector<128x64xf32>
    tpu.vector_store %arg19[%c0_48, %c0_49], %82 {strides = array<i32>} : memref<128x64xf32, #tpu.memory_space<vmem>>, vector<128x64xf32>,
    %c0_50 = arith.constant 0 : index
    %c0_51 = arith.constant 0 : index
    %84 = vector.load %arg17[%c0_50, %c0_51] : memref<128x1xf32, #tpu.memory_space<vmem>>, vector<128x1xf32>
    tpu.vector_store %arg17[%c0_50, %c0_51], %64 {strides = array<i32>} : memref<128x1xf32, #tpu.memory_space<vmem>>, vector<128x1xf32>,
    %c1_i32 = arith.constant 1 : i32
    %85 = arith.cmpi eq, %arg1, %c1_i32 : i32
    %86 = arith.extui %85 : i1 to i32
    %c0_i32_52 = arith.constant 0 : i32
    %87 = arith.cmpi ne, %86, %c0_i32_52 : i32
    scf.if %87 {
      %c0_53 = arith.constant 0 : index
      %c0_54 = arith.constant 0 : index
      %88 = vector.load %arg19[%c0_53, %c0_54] : memref<128x64xf32, #tpu.memory_space<vmem>>, vector<128x64xf32>
      %c0_55 = arith.constant 0 : index
      %c0_56 = arith.constant 0 : index
      %89 = vector.load %arg18[%c0_55, %c0_56] : memref<128x1xf32, #tpu.memory_space<vmem>>, vector<128x1xf32>
      %90 = tpu.reciprocal %89 {approx = true} : vector<128x1xf32> -> vector<128x1xf32>
      %91 = vector.broadcast %90 : vector<128x1xf32> to vector<128x64xf32>
      %92 = arith.mulf %88, %91 : vector<128x64xf32>
      %cst_57 = arith.constant dense<0.000000e+00> : vector<128xf32>
      %93 = vector.multi_reduction <add>, %92, %cst_57 [1] : vector<128x64xf32> to vector<128xf32>
      %94 = vector.shape_cast %93 : vector<128xf32> to vector<128x1xf32>
      %cst_58 = arith.constant 6.400000e+01 : f32
      %95 = vector.broadcast %cst_58 : f32 to vector<128x1xf32>
      %96 = arith.divf %94, %95 : vector<128x1xf32>
      %97 = vector.broadcast %96 : vector<128x1xf32> to vector<128x64xf32>
      %98 = arith.subf %92, %97 : vector<128x64xf32>
      %99 = arith.mulf %98, %98 : vector<128x64xf32>
      %cst_59 = arith.constant dense<0.000000e+00> : vector<128xf32>
      %100 = vector.multi_reduction <add>, %99, %cst_59 [1] : vector<128x64xf32> to vector<128xf32>
      %101 = vector.shape_cast %100 : vector<128xf32> to vector<128x1xf32>
      %cst_60 = arith.constant 6.400000e+01 : f32
      %102 = vector.broadcast %cst_60 : f32 to vector<128x1xf32>
      %103 = arith.divf %101, %102 : vector<128x1xf32>
      %104 = vector.broadcast %96 : vector<128x1xf32> to vector<128x64xf32>
      %105 = arith.subf %92, %104 : vector<128x64xf32>
      %cst_61 = arith.constant 9.99999974E-6 : f32
      %106 = vector.broadcast %cst_61 : f32 to vector<128x1xf32>
      %107 = arith.addf %103, %106 : vector<128x1xf32>
      %108 = math.rsqrt %107 : vector<128x1xf32>
      %109 = vector.broadcast %108 : vector<128x1xf32> to vector<128x64xf32>
      %110 = arith.mulf %105, %109 : vector<128x64xf32>
      %111 = arith.truncf %110 : vector<128x64xf32> to vector<128x64xbf16>
      %c0_62 = arith.constant 0 : index
      %c0_63 = arith.constant 0 : index
      %112 = vector.load %arg9[%c0_62, %c0_63] : memref<64x64xbf16, #tpu.memory_space<vmem>>, vector<64x64xbf16>
      %cst_64 = arith.constant dense<0.000000e+00> : vector<128x64xf32>
      %113 = tpu.matmul %111, %112, %cst_64 {dimension_numbers = #tpu.dot_dimension_numbers<[1], [0], [0], [1], [0, 0, 1, 1], [], []>} : vector<128x64xbf16>, vector<64x64xbf16>, vector<128x64xf32> -> vector<128x64xf32>
      %114 = vector.broadcast %4 : vector<1x64xf32> to vector<128x64xf32>
      %115 = arith.addf %113, %114 : vector<128x64xf32>
      %cst_65 = arith.constant 0.000000e+00 : f32
      %116 = vector.broadcast %cst_65 : f32 to vector<128x64xf32>
      %117 = arith.maximumf %115, %116 : vector<128x64xf32>
      %118 = arith.truncf %117 : vector<128x64xf32> to vector<128x64xbf16>
      %c0_66 = arith.constant 0 : index
      %c0_67 = arith.constant 0 : index
      %119 = vector.load %arg10[%c0_66, %c0_67] : memref<64x64xbf16, #tpu.memory_space<vmem>>, vector<64x64xbf16>
      %cst_68 = arith.constant dense<0.000000e+00> : vector<128x64xf32>
      %120 = tpu.matmul %118, %119, %cst_68 {dimension_numbers = #tpu.dot_dimension_numbers<[1], [0], [0], [1], [0, 0, 1, 1], [], []>} : vector<128x64xbf16>, vector<64x64xbf16>, vector<128x64xf32> -> vector<128x64xf32>
      %121 = vector.broadcast %5 : vector<1x64xf32> to vector<128x64xf32>
      %122 = arith.addf %120, %121 : vector<128x64xf32>
      %cst_69 = arith.constant 0.000000e+00 : f32
      %123 = vector.broadcast %cst_69 : f32 to vector<128x64xf32>
      %124 = arith.maximumf %122, %123 : vector<128x64xf32>
      %c0_70 = arith.constant 0 : index
      %c0_71 = arith.constant 0 : index
      %c0_72 = arith.constant 0 : index
      %125 = vector.load %arg15[%c0_70, %c0_71, %c0_72] : memref<1x128x64xf32, #tpu.memory_space<vmem>>, vector<1x128x64xf32>
      %126 = vector.shape_cast %125 : vector<1x128x64xf32> to vector<128x64xf32>
      %127 = vector.shape_cast %124 : vector<128x64xf32> to vector<1x128x64xf32>
      tpu.vector_store %arg15[%c0_70, %c0_71, %c0_72], %127 {strides = array<i32>} : memref<1x128x64xf32, #tpu.memory_space<vmem>>, vector<1x128x64xf32>,
    } else {
    }
    return
  }
  func.func @transform_0(%arg0: i32, %arg1: i32) -> (i32, i32, i32) {
    %c0_i32 = arith.constant 0 : i32
    %c0_i32_0 = arith.constant 0 : i32
    return %arg0, %arg1, %c0_i32 : i32, i32, i32
  }
  func.func @transform_1(%arg0: i32, %arg1: i32) -> (i32, i32, i32) {
    %c0_i32 = arith.constant 0 : i32
    %c0_i32_0 = arith.constant 0 : i32
    %c0_i32_1 = arith.constant 0 : i32
    return %arg0, %c0_i32, %c0_i32_0 : i32, i32, i32
  }
  func.func @transform_2(%arg0: i32, %arg1: i32) -> (i32, i32) {
    %c0_i32 = arith.constant 0 : i32
    %c0_i32_0 = arith.constant 0 : i32
    %c0_i32_1 = arith.constant 0 : i32
    return %c0_i32, %c0_i32_0 : i32, i32
  }
  func.func @transform_3(%arg0: i32, %arg1: i32) -> (i32, i32) {
    %c0_i32 = arith.constant 0 : i32
    %c0_i32_0 = arith.constant 0 : i32
    %c0_i32_1 = arith.constant 0 : i32
    return %c0_i32, %c0_i32_0 : i32, i32
  }
  func.func @transform_4(%arg0: i32, %arg1: i32) -> (i32, i32) {
    %c0_i32 = arith.constant 0 : i32
    %c0_i32_0 = arith.constant 0 : i32
    %c0_i32_1 = arith.constant 0 : i32
    return %c0_i32, %c0_i32_0 : i32, i32
  }
  func.func @transform_5(%arg0: i32, %arg1: i32) -> (i32, i32) {
    %c0_i32 = arith.constant 0 : i32
    %c0_i32_0 = arith.constant 0 : i32
    %c0_i32_1 = arith.constant 0 : i32
    return %c0_i32, %c0_i32_0 : i32, i32
  }
  func.func @transform_6(%arg0: i32, %arg1: i32) -> (i32, i32) {
    %c0_i32 = arith.constant 0 : i32
    %c0_i32_0 = arith.constant 0 : i32
    %c0_i32_1 = arith.constant 0 : i32
    return %c0_i32, %c0_i32_0 : i32, i32
  }
  func.func @transform_7(%arg0: i32, %arg1: i32) -> (i32, i32) {
    %c0_i32 = arith.constant 0 : i32
    %c0_i32_0 = arith.constant 0 : i32
    %c0_i32_1 = arith.constant 0 : i32
    return %c0_i32, %c0_i32_0 : i32, i32
  }
  func.func @transform_8(%arg0: i32, %arg1: i32) -> (i32, i32) {
    %c0_i32 = arith.constant 0 : i32
    %c0_i32_0 = arith.constant 0 : i32
    %c0_i32_1 = arith.constant 0 : i32
    return %c0_i32, %c0_i32_0 : i32, i32
  }
  func.func @transform_9(%arg0: i32, %arg1: i32) -> (i32, i32) {
    %c0_i32 = arith.constant 0 : i32
    %c0_i32_0 = arith.constant 0 : i32
    %c0_i32_1 = arith.constant 0 : i32
    return %c0_i32, %c0_i32_0 : i32, i32
  }
  func.func @transform_10(%arg0: i32, %arg1: i32) -> (i32, i32) {
    %c0_i32 = arith.constant 0 : i32
    %c0_i32_0 = arith.constant 0 : i32
    %c0_i32_1 = arith.constant 0 : i32
    return %c0_i32, %c0_i32_0 : i32, i32
  }
  func.func @transform_11(%arg0: i32, %arg1: i32) -> (i32, i32) {
    %c0_i32 = arith.constant 0 : i32
    %c0_i32_0 = arith.constant 0 : i32
    %c0_i32_1 = arith.constant 0 : i32
    return %c0_i32, %c0_i32_0 : i32, i32
  }
  func.func @transform_12(%arg0: i32, %arg1: i32) -> (i32, i32, i32) {
    %c0_i32 = arith.constant 0 : i32
    %c0_i32_0 = arith.constant 0 : i32
    return %arg0, %arg1, %c0_i32 : i32, i32, i32
  }
  func.func @transform_13(%arg0: i32, %arg1: i32) -> (i32, i32, i32) {
    %c0_i32 = arith.constant 0 : i32
    %c0_i32_0 = arith.constant 0 : i32
    %c0_i32_1 = arith.constant 0 : i32
    return %arg0, %c0_i32, %c0_i32_0 : i32, i32, i32
  }
}

</mosaic_0001>

<bundles_post_ra>
// kernel: tile.15
= control target key start
LH: loop header
LB: loop body
LE: loop exit
PB: predicated region body
PF: predicated region fallthrough
CT: control target
= control target key end

     0   :  { %vm8_vm0 = vcmask 261120   ;;  %vm14_vm1 = vcmask 523520   ;;  %s42_s0 = inlined_call_operand.vmem [shape: f32[2,32], index: 0, kind: input, shape index: {}]   ;;  %s43_s1 = inlined_call_operand.vmem [shape: f32[1,64], index: 1, kind: output, shape index: {}]  }
   0x1   :  { %v5_v0 = vld [vmem:[%s42_s0] sm:$0x3]  ;;  %s25_s0 = smov 32  }
   0x2   :  { %6 = vst [vmem:[#allocation1] sm:$0x3] %v5_v0 }
   0x9   :  { %v11_v1 = vld [vmem:[#allocation1 + $0x1] sm:$0x1]   ;;  %v7_v2 = vld [vmem:[#allocation1] sm:$0x1]  }
   0xa   :  { %12 = vrot.lane.b32.xlu0 %v11_v1, %s25_s0  ;;  %9 = vst.msk [vmem:[#allocation0] sm:$0x1] %vm8_vm0, %v7_v2  }
  0x7c   :  { %v13_v3 = vpop.permute.xlu0 %12  }
  0x7d   :  { %15 = vst.msk [vmem:[#allocation0] sm:$0x1] %vm14_vm1, %v13_v3  }
  0x84   :  { %v20_v4 = vld [vmem:[#allocation0] sm:$0x1] }
  0x85   :  { %23 = vst [vmem:[%s43_s1] sm:$0x1] %v20_v4 }

// kernel: tile.14
= control target key start
LH: loop header
LB: loop body
LE: loop exit
PB: predicated region body
PF: predicated region fallthrough
CT: control target
= control target key end

     0   :  { %s22_s0 = inlined_call_operand.vmem [shape: f32[32], index: 0, kind: input, shape index: {}]   ;;  %s23_s1 = inlined_call_operand.vmem [shape: f32[2,32], index: 1, kind: output, shape index: {}]  }
   0x1   :  { %v4_v0 = vld [vmem:[%s22_s0] ss:$0 sm:$0xff] }
   0x2   :  { %5 = vst [vmem:[%s23_s1] sm:$0x3] %v4_v0 }

// kernel: unilm_projectors.1
= control target key start
LH: loop header
LB: loop body
LE: loop exit
PB: predicated region body
PF: predicated region fallthrough
CT: control target
= control target key end

     0   :  { %s3968_s25 = smov 0   ;;  %s3970_s26 = smov 0   ;;  %s5152_s0 = inlined_call_operand.vmem [shape: f32[2,32,32], index: 0, kind: input, shape index: {}]   ;;  %s5153_s1 = inlined_call_operand.vmem [shape: f32[2,128,2], index: 1, kind: input, shape index: {}]   ;;  %s5154_s2 = inlined_call_operand.vmem [shape: f32[2,64], index: 2, kind: input, shape index: {}]   ;;  %s5155_s3 = inlined_call_operand.vmem [shape: bf16[32,32], index: 3, kind: input, shape index: {}]   ;;  %s5156_s4 = inlined_call_operand.vmem [shape: bf16[64,64], index: 4, kind: input, shape index: {}]   ;;  %s5157_s5 = inlined_call_operand.vmem [shape: bf16[32,64], index: 5, kind: input, shape index: {}]   ;;  %s5158_s6 = inlined_call_operand.vmem [shape: bf16[32,64], index: 6, kind: input, shape index: {}]   ;;  %s5159_s7 = inlined_call_operand.vmem [shape: bf16[64,64], index: 7, kind: input, shape index: {}]   ;;  %s5160_s8 = inlined_call_operand.vmem [shape: bf16[64,64], index: 8, kind: input, shape index: {}]   ;;  %s5161_s9 = inlined_call_operand.vmem [shape: f32[1,32], index: 9, kind: input, shape index: {}]   ;;  %s5162_s10 = inlined_call_operand.vmem [shape: f32[4,64], index: 10, kind: input, shape index: {}]   ;;  %s5163_s11 = inlined_call_operand.vmem [shape: f32[2,64], index: 11, kind: input, shape index: {}]   ;;  %s5164_s12 = inlined_call_operand.vmem [shape: f32[2,32,32], index: 12, kind: output, shape index: {0}]   ;;  %s5165_s13 = inlined_call_operand.vmem [shape: f32[2,128,64], index: 13, kind: output, shape index: {1}]  }
   0x1   :  { %5168 = sst [smem:[#allocation10_spill]] %s5162_s10  ;;  %s3972_s27 = smov 0  }
   0x2   :  { %5169 = sst [smem:[#allocation11_spill]] %s5163_s11  ;;  %s3974_s28 = smov 0  }
   0x3   :  { %s3976_s29 = smov 0  }
   0x4 LB: > { %5170 = sst [smem:[#allocation6_spill]] %s3882_s27  ;;  %s33_s30 = sadd.s32 1, %s3882_s27  ;;  %s3890_s29 = sphi %s3976_s29, %s24_s29   ;;  %s3886_s28 = sphi %s3974_s28, %s5179_s28   ;;  %s3882_s27 = sphi %s3972_s27, %s5178_s27   ;;  %s3878_s26 = sphi %s3970_s26, %s5177_s26   ;;  %s3874_s25 = sphi %s3968_s25, %s5176_s25  }
   0x5   : > { %5171 = sst [smem:[#allocation7_spill]] %s3886_s28  ;;  %s36_s14 = sadd.s32 1, %s3886_s28 }
   0x6   : > { %p34_p0 = scmp.ge.s32.totalorder %s33_s30, 2  ;;  %p3230_p1 = scmp.ge.s32.totalorder %s3890_s29, 1 }
   0x7   : > { %p421_p2 = scmp.lt.s32.totalorder %s3890_s29, 5 }
   0x8   : > { %s5181_s30 = smov (%p34_p0, %s33_s30), 0  ;;  %s5183_s14 = smov (!%p34_p0, %s36_s14), %s3886_s28 }
   0x9   : > { %5172 = sst [smem:[#allocation8_spill]] %s5181_s30  ;;  %p422_p3 = pnand %p3230_p1, %p421_p2 }
   0xa   : > { %p38_p4 = scmp.ge.s32.totalorder %s5183_s14, 2  ;;  %s3231_s15 = sshll.u32 (!%p422_p3), %s3874_s25, 1 }
   0xb   : > { %425 = sbr.rel (%p422_p3) target bundleno = 3112 (0xc28), region = 68  ;;  %p484_p5 = scmp.lt.s32.totalorder (!%p422_p3), %s3878_s26, 1 }
   0xc   : > { %s5185_s14 = smov (%p38_p4, %s5183_s14), 0  ;;  %s5174_s10 = sld [smem:[#allocation10_spill]] (!%p422_p3) }
   0xd   : > { %5173 = sst [smem:[#allocation9_spill]] %s5185_s14  ;;  %p486_p6 = scmp.lt.s32.totalorder (!%p422_p3), %s3231_s15, 3 }
   0xe   : > { %s5175_s11 = sld [smem:[#allocation11_spill]] (!%p422_p3)  ;;  %p3241_p7 = scmp.ne.s32.totalorder (!%p422_p3), %s3874_s25, 0 }
  0x10   : > { %s5187_s26 = smov (!%p484_p5, %s3878_s26), 1  ;;  %s5189_s15 = smov (!%p486_p6, %s3231_s15), 3 }
  0x11   : > { %s3232_s19 = sshll.u32 %s5187_s26, 2  ;;  %s3355_s20 = sshll.u32 %s5187_s26, 7 }
  0x12   : > { %v4004_v0 = vld [vmem:[%s5174_s10] ss:$0 sm:$0xff]  ;;  %v4009_v1 = vld [vmem:[%s5174_s10 + $0x1] ss:$0 sm:$0xff]  ;;  %v4014_v2 = vld [vmem:[%s5174_s10 + $0x2] ss:$0 sm:$0xff]  ;;  %s489_s21 = sadd.s32 %s3232_s19, %s5189_s15  ;;  %s4034_s22 = scalar_lea.vmem %s5153_s1, %s3355_s20 }
  0x13   : > { %v4019_v3 = vld [vmem:[%s5174_s10 + $0x3] ss:$0 sm:$0xff]  ;;  %s3233_s23 = sshll.u32 %s489_s21, 3  ;;  %s4039_s24 = scalar_lea.vmem %s5165_s13, %s3355_s20 }
  0x14   : > { %v4024_v4 = vld [vmem:[%s5175_s11] ss:$0 sm:$0xff]  ;;  %v4029_v5 = vld [vmem:[%s5175_s11 + $0x1] ss:$0 sm:$0xff]  ;;  %s4044_s17 = scalar_lea.vmem %s5152_s0, %s3233_s23  ;;  %s4049_s26 = scalar_lea.vmem %s5164_s12, %s3233_s23 }
  0x15   : > { %523 = sbr.rel (%p3241_p7) target bundleno = 770 (0x302), region = 72 }
  0x1a   : > { %v540_v6 = vld [vmem:[%s5154_s2] sm:$0x3]  ;;  %vm594_vm0 = vcmask 1041408   ;;  %vm545_vm1 = vcmask 15360   ;;  %v525_v8 = vld [vmem:[%s4034_s22 + $0x8] sm:$0xff]  ;;  %v526_v9 = vld [vmem:[%s4034_s22 + $0x10] sm:$0xff] }
  0x1b   : > { %v524_v7 = vld [vmem:[%s4034_s22] sm:$0xff]  ;;  %3453 = vmatprep.subr.msk.mxu0 %vm594_vm0, %v540_v6  ;;  %v527_v10 = vld [vmem:[%s4034_s22 + $0x18] sm:$0xff]  ;;  %v529_v12 = vld [vmem:[%s4034_s22 + $0x28] sm:$0xff]  ;;  %vm759_vm2 = vcmask 523264   ;;  %vm1215_vm3 = vcmask 7168   ;;  %vm1198_vm4 = vcmask 519168  }
  0x1c   : > { %3455 = vmatprep.mubr.msk.f32.mxu0 %vm545_vm1, %v524_v7  ;;  %3454 = vmatpush3.msk.msra.mxu0 %vm594_vm0, %v540_v6  ;;  %v528_v11 = vld [vmem:[%s4034_s22 + $0x20] sm:$0xff]  ;;  %v530_v13 = vld [vmem:[%s4034_s22 + $0x30] sm:$0xff]  ;;  %v531_v14 = vld [vmem:[%s4034_s22 + $0x38] sm:$0xff] }
  0x1d   : > { %3456 = vmatmul.mubr.msk.f32.vlgmr.msra.gmra.mxu0 %vm545_vm1, %v525_v8  ;;  %v532_v15 = vld [vmem:[%s4034_s22 + $0x40] sm:$0xff]  ;;  %v533_v16 = vld [vmem:[%s4034_s22 + $0x48] sm:$0xff]  ;;  %v534_v17 = vld [vmem:[%s4034_s22 + $0x50] sm:$0xff] }
  0x1e   : > { %3458 = vmatprep.mubr.msk.f32.mxu0 %vm545_vm1, %v526_v9  ;;  %v535_v18 = vld [vmem:[%s4034_s22 + $0x58] sm:$0xff]  ;;  %v536_v19 = vld [vmem:[%s4034_s22 + $0x60] sm:$0xff]  ;;  %v537_v20 = vld [vmem:[%s4034_s22 + $0x68] sm:$0xff] }
  0x1f   : > { %v538_v21 = vld [vmem:[%s4034_s22 + $0x70] sm:$0xff]  ;;  %v539_v22 = vld [vmem:[%s4034_s22 + $0x78] sm:$0xff] }
  0x21   : > { %3459 = vmatmul.mubr.msk.f32.gmra.mxu0 %vm545_vm1, %v527_v10 }
  0x22   : > { %3461 = vmatprep.mubr.msk.f32.mxu0 %vm545_vm1, %v528_v11 }
  0x25   : > { %3462 = vmatmul.mubr.msk.f32.gmra.mxu0 %vm545_vm1, %v529_v12 }
  0x26   : > { %3464 = vmatprep.mubr.msk.f32.mxu0 %vm545_vm1, %v530_v13 }
  0x29   : > { %3465 = vmatmul.mubr.msk.f32.gmra.mxu0 %vm545_vm1, %v531_v14 }
  0x2a   : > { %3467 = vmatprep.mubr.msk.f32.mxu0 %vm545_vm1, %v532_v15 }
  0x2d   : > { %3468 = vmatmul.mubr.msk.f32.gmra.mxu0 %vm545_vm1, %v533_v16 }
  0x2e   : > { %3470 = vmatprep.mubr.msk.f32.mxu0 %vm545_vm1, %v534_v17 }
  0x31   : > { %3471 = vmatmul.mubr.msk.f32.gmra.mxu0 %vm545_vm1, %v535_v18 }
  0x32   : > { %3473 = vmatprep.mubr.msk.f32.mxu0 %vm545_vm1, %v536_v19 }
  0x35   : > { %3474 = vmatmul.mubr.msk.f32.gmra.mxu0 %vm545_vm1, %v537_v20 }
  0x36   : > { %3476 = vmatprep.mubr.msk.f32.mxu0 %vm545_vm1, %v538_v21 }
  0x39   : > { %3477 = vmatmul.mubr.msk.f32.gmra.mxu0 %vm545_vm1, %v539_v22 }
  0xdd   : > { %v3457_v23 = vpop.f32.mrf.mxu0 }
  0xde   : > { %v4088_v25 = vadd.f32 %v3457_v23, %v4004_v0 }
  0xdf   : > { %v664_v24 = vpop.f32.mrf.mxu0 }
  0xe0   : > { %v4091_v26 = vadd.f32 %v4004_v0, %v664_v24  ;;  %v744_v31 = vmax.f32 %v4088_v25, 0.0 }
  0xe1   : > { %v3460_v27 = vpop.f32.mrf.mxu0 }
  0xe2   : > { %v743_v28 = vmax.f32 %v4091_v26, 0.0  ;;  %v4095_v29 = vadd.f32 %v3460_v27, %v4004_v0  ;;  %v763_v42 = vsel %vm759_vm2, %v744_v31, 0.0 }
  0xe3   : > { %v674_v30 = vpop.f32.mrf.mxu0 }
  0xe4   : > { %v746_v32 = vmax.f32 %v4095_v29, 0.0  ;;  %v4100_v33 = vadd.f32 %v4004_v0, %v674_v30  ;;  %v760_v34 = vsel %vm759_vm2, %v743_v28, 0.0 }
  0xe5   : > { %v3463_v35 = vpop.f32.mrf.mxu0  ;;  %761 = vadd.xlane.f32.xlu0 %v760_v34 }
  0xe6   : > { %v745_v36 = vmax.f32 %v4100_v33, 0.0  ;;  %v4107_v37 = vadd.f32 %v3463_v35, %v4004_v0  ;;  %v769_v38 = vsel %vm759_vm2, %v746_v32, 0.0 }
  0xe7   : > { %770 = vadd.xlane.f32.xlu1 %v769_v38  ;;  %v684_v39 = vpop.f32.mrf.mxu0 }
  0xe8   : > { %v748_v40 = vmax.f32 %v4107_v37, 0.0  ;;  %v4114_v41 = vadd.f32 %v4004_v0, %v684_v39  ;;  %v766_v46 = vsel %vm759_vm2, %v745_v36, 0.0 }
  0xe9   : > { %v3466_v43 = vpop.f32.mrf.mxu0  ;;  %764 = vadd.xlane.f32.xlu0 %v763_v42 }
  0xea   : > { %v747_v44 = vmax.f32 %v4114_v41, 0.0  ;;  %v4121_v45 = vadd.f32 %v3466_v43, %v4004_v0  ;;  %v775_v51 = vsel %vm759_vm2, %v748_v40, 0.0 }
  0xeb   : > { %v694_v47 = vpop.f32.mrf.mxu0  ;;  %767 = vadd.xlane.f32.xlu1 %v766_v46 }
  0xec   : > { %v750_v48 = vmax.f32 %v4121_v45, 0.0  ;;  %v4128_v49 = vadd.f32 %v4004_v0, %v694_v47  ;;  %v772_v50 = vsel %vm759_vm2, %v747_v44, 0.0 }
  0xed   : > { %v3469_v52 = vpop.f32.mrf.mxu0  ;;  %773 = vadd.xlane.f32.xlu0 %v772_v50 }
  0xee   : > { %v749_v53 = vmax.f32 %v4128_v49, 0.0  ;;  %v4138_v54 = vadd.f32 %v3469_v52, %v4004_v0  ;;  %v781_v59 = vsel %vm759_vm2, %v750_v48, 0.0 }
  0xef   : > { %v704_v55 = vpop.f32.mrf.mxu0  ;;  %776 = vadd.xlane.f32.xlu1 %v775_v51 }
  0xf0   : > { %v752_v56 = vmax.f32 %v4138_v54, 0.0  ;;  %v4142_v57 = vadd.f32 %v4004_v0, %v704_v55  ;;  %v778_v58 = vsel %vm759_vm2, %v749_v53, 0.0 }
  0xf1   : > { %v3472_v60 = vpop.f32.mrf.mxu0  ;;  %779 = vadd.xlane.f32.xlu0 %v778_v58 }
  0xf2   : > { %v751_v61 = vmax.f32 %v4142_v57, 0.0  ;;  %v4152_v62 = vadd.f32 %v3472_v60, %v4004_v0  ;;  %v787_v9 = vsel %vm759_vm2, %v752_v56, 0.0 }
  0xf3   : > { %v714_v63 = vpop.f32.mrf.mxu0  ;;  %782 = vadd.xlane.f32.xlu1 %v781_v59 }
  0xf4   : > { %v754_v6 = vmax.f32 %v4152_v62, 0.0  ;;  %v4156_v7 = vadd.f32 %v4004_v0, %v714_v63  ;;  %v784_v8 = vsel %vm759_vm2, %v751_v61, 0.0 }
  0xf5   : > { %v3475_v10 = vpop.f32.mrf.mxu0  ;;  %785 = vadd.xlane.f32.xlu0 %v784_v8 }
  0xf6   : > { %v753_v11 = vmax.f32 %v4156_v7, 0.0  ;;  %v4166_v12 = vadd.f32 %v3475_v10, %v4004_v0  ;;  %v793_v17 = vsel %vm759_vm2, %v754_v6, 0.0 }
  0xf7   : > { %v724_v13 = vpop.f32.mrf.mxu0  ;;  %788 = vadd.xlane.f32.xlu1 %v787_v9 }
  0xf8   : > { %v756_v14 = vmax.f32 %v4166_v12, 0.0  ;;  %v4170_v15 = vadd.f32 %v4004_v0, %v724_v13  ;;  %v790_v16 = vsel %vm759_vm2, %v753_v11, 0.0 }
  0xf9   : > { %v3478_v18 = vpop.f32.mrf.mxu0  ;;  %791 = vadd.xlane.f32.xlu0 %v790_v16 }
  0xfa   : > { %v755_v19 = vmax.f32 %v4170_v15, 0.0  ;;  %v4180_v20 = vadd.f32 %v3478_v18, %v4004_v0  ;;  %v799_v27 = vsel %vm759_vm2, %v756_v14, 0.0 }
  0xfb   : > { %v734_v21 = vpop.f32.mrf.mxu0  ;;  %794 = vadd.xlane.f32.xlu1 %v793_v17 }
  0xfc   : > { %v758_v22 = vmax.f32 %v4180_v20, 0.0  ;;  %v4184_v23 = vadd.f32 %v4004_v0, %v734_v21  ;;  %v796_v24 = vsel %vm759_vm2, %v755_v19, 0.0 }
  0xfd   : > { %797 = vadd.xlane.f32.xlu0 %v796_v24 }
  0xfe   : > { %v757_v30 = vmax.f32 %v4184_v23, 0.0  ;;  %v805_v0 = vsel %vm759_vm2, %v758_v22, 0.0  ;;  %v3659_v23 = vld [vmem:[%s5156_s4 + $0x10] sm:$0xff]  }
  0xff   : > { %800 = vadd.xlane.f32.xlu1 %v799_v27 }
 0x100   : > { %v802_v34 = vsel %vm759_vm2, %v757_v30, 0.0 }
 0x101   : > { %803 = vadd.xlane.f32.xlu0 %v802_v34 }
 0x103   : > { %806 = vadd.xlane.f32.xlu1 %v805_v0 }
 0x16e   : > { %v762_v35 = vpop.xlane.xlu0 %761 }
 0x16f   : > { %v809_v38 = vmul.f32 0.015625, %v762_v35 }
 0x170   : > { %v771_v39 = vpop.xlane.xlu1 %770 }
 0x171   : > { %v4201_v42 = vsub.f32 %v743_v28, %v809_v38  ;;  %v812_v43 = vmul.f32 0.015625, %v771_v39 }
 0x172   : > { %v765_v46 = vpop.xlane.xlu0 %764 }
 0x173   : > { %v810_v47 = vmul.f32 0.015625, %v765_v46  ;;  %v841_v50 = vmul.f32 %v4201_v42, %v4201_v42  ;;  %v4207_v51 = vsub.f32 %v746_v32, %v812_v43 }
 0x174   : > { %v768_v52 = vpop.xlane.xlu1 %767 }
 0x175   : > { %v4211_v55 = vsub.f32 %v744_v31, %v810_v47  ;;  %v811_v58 = vmul.f32 0.015625, %v768_v52  ;;  %v857_v26 = vsel %vm759_vm2, %v841_v50, 0.0  ;;  %v844_v63 = vmul.f32 %v4207_v51, %v4207_v51 }
 0x176   : > { %858 = vadd.xlane.f32.xlu0 %v857_v26  ;;  %v774_v28 = vpop.xlane.xlu0 %773 }
 0x177   : > { %v4216_v59 = vsub.f32 %v745_v36, %v811_v58  ;;  %v813_v60 = vmul.f32 0.015625, %v774_v28  ;;  %v842_v29 = vmul.f32 %v4211_v55, %v4211_v55  ;;  %v866_v18 = vsel %vm759_vm2, %v844_v63, 0.0 }
 0x178   : > { %v777_v32 = vpop.xlane.xlu1 %776 }
 0x179   : > { %v4224_v25 = vsub.f32 %v747_v44, %v813_v60  ;;  %v814_v31 = vmul.f32 0.015625, %v777_v32  ;;  %v860_v8 = vsel %vm759_vm2, %v842_v29, 0.0  ;;  %v843_v33 = vmul.f32 %v4216_v59, %v4216_v59 }
 0x17a   : > { %861 = vadd.xlane.f32.xlu1 %v860_v8  ;;  %v780_v36 = vpop.xlane.xlu0 %779  ;;  %v3658_v8 = vld [vmem:[%s5156_s4 + $0x18] sm:$0xff]  }
 0x17b   : > { %v4231_v9 = vsub.f32 %v748_v40, %v814_v31  ;;  %v815_v10 = vmul.f32 0.015625, %v780_v36  ;;  %v863_v13 = vsel %vm759_vm2, %v843_v33, 0.0  ;;  %v845_v41 = vmul.f32 %v4224_v25, %v4224_v25  ;;  %3479 = vmatprep.subr.bf16.mxu1 %v3658_v8 }
 0x17c   : > { %v783_v44 = vpop.xlane.xlu1 %782  ;;  %864 = vadd.xlane.f32.xlu0 %v863_v13  ;;  %3480 = vmatpush3.bf16.msra.mxu1 %v3658_v8 }
 0x17d   : > { %v4238_v16 = vsub.f32 %v749_v53, %v815_v10  ;;  %v816_v17 = vmul.f32 0.015625, %v783_v44  ;;  %v846_v37 = vmul.f32 %v4231_v9, %v4231_v9  ;;  %v869_v27 = vsel %vm759_vm2, %v845_v41, 0.0  ;;  %3481 = vmatprep.subr.bf16.mxu1 %v3659_v23 }
 0x17e   : > { %867 = vadd.xlane.f32.xlu1 %v866_v18  ;;  %v786_v40 = vpop.xlane.xlu0 %785  ;;  %v3661_v18 = vld [vmem:[%s5156_s4] sm:$0xff]  }
 0x17f   : > { %v4245_v21 = vsub.f32 %v750_v48, %v816_v17  ;;  %v817_v24 = vmul.f32 0.015625, %v786_v40  ;;  %v847_v49 = vmul.f32 %v4238_v16, %v4238_v16  ;;  %v872_v35 = vsel %vm759_vm2, %v846_v37, 0.0 }
 0x180   : > { %v789_v53 = vpop.xlane.xlu1 %788  ;;  %870 = vadd.xlane.f32.xlu0 %v869_v27  ;;  %3482 = vmatpush3.bf16.msra.mxu1 %v3659_v23 }
 0x181   : > { %v4252_v34 = vsub.f32 %v751_v61, %v817_v24  ;;  %v818_v0 = vmul.f32 0.015625, %v789_v53  ;;  %v848_v45 = vmul.f32 %v4245_v21, %v4245_v21  ;;  %v875_v43 = vsel %vm759_vm2, %v847_v49, 0.0 }
 0x182   : > { %873 = vadd.xlane.f32.xlu1 %v872_v35  ;;  %v792_v48 = vpop.xlane.xlu0 %791 }
 0x183   : > { %v4259_v38 = vsub.f32 %v752_v56, %v818_v0  ;;  %v819_v39 = vmul.f32 0.015625, %v792_v48  ;;  %v849_v57 = vmul.f32 %v4252_v34, %v4252_v34  ;;  %v878_v50 = vsel %vm759_vm2, %v848_v45, 0.0 }
 0x184   : > { %v795_v61 = vpop.xlane.xlu1 %794  ;;  %876 = vadd.xlane.f32.xlu0 %v875_v43 }
 0x185   : > { %v4266_v46 = vsub.f32 %v753_v11, %v819_v39  ;;  %v820_v47 = vmul.f32 0.015625, %v795_v61  ;;  %v850_v54 = vmul.f32 %v4259_v38, %v4259_v38  ;;  %v881_v26 = vsel %vm759_vm2, %v849_v57, 0.0 }
 0x186   : > { %879 = vadd.xlane.f32.xlu1 %v878_v50  ;;  %v798_v56 = vpop.xlane.xlu0 %797 }
 0x187   : > { %v4273_v52 = vsub.f32 %v754_v6, %v820_v47  ;;  %v821_v58 = vmul.f32 0.015625, %v798_v56  ;;  %v851_v7 = vmul.f32 %v4266_v46, %v4266_v46  ;;  %v884_v29 = vsel %vm759_vm2, %v850_v54, 0.0 }
 0x188   : > { %v801_v11 = vpop.xlane.xlu1 %800  ;;  %882 = vadd.xlane.f32.xlu0 %v881_v26 }
 0x189   : > { %v4280_v28 = vsub.f32 %v755_v19, %v821_v58  ;;  %v822_v60 = vmul.f32 0.015625, %v801_v11  ;;  %v852_v62 = vmul.f32 %v4273_v52, %v4273_v52  ;;  %v887_v31 = vsel %vm759_vm2, %v851_v7, 0.0 }
 0x18a   : > { %885 = vadd.xlane.f32.xlu1 %v884_v29  ;;  %v804_v6 = vpop.xlane.xlu0 %803 }
 0x18b   : > { %v4287_v32 = vsub.f32 %v756_v14, %v822_v60  ;;  %v823_v63 = vmul.f32 0.015625, %v804_v6  ;;  %v853_v15 = vmul.f32 %v4280_v28, %v4280_v28  ;;  %v890_v12 = vsel %vm759_vm2, %v852_v62, 0.0 }
 0x18c   : > { %v807_v19 = vpop.xlane.xlu1 %806  ;;  %888 = vadd.xlane.f32.xlu0 %v887_v31 }
 0x18d   : > { %v4297_v33 = vsub.f32 %v757_v30, %v823_v63  ;;  %v824_v36 = vmul.f32 0.015625, %v807_v19  ;;  %v854_v14 = vmul.f32 %v4287_v32, %v4287_v32  ;;  %v893_v13 = vsel %vm759_vm2, %v853_v15, 0.0 }
 0x18e   : > { %891 = vadd.xlane.f32.xlu1 %v890_v12 }
 0x18f   : > { %v4304_v10 = vsub.f32 %v758_v22, %v824_v36  ;;  %v855_v41 = vmul.f32 %v4297_v33, %v4297_v33  ;;  %v896_v30 = vsel %vm759_vm2, %v854_v14, 0.0  ;;  %v3660_v22 = vld [vmem:[%s5156_s4 + $0x8] sm:$0xff]  }
 0x190   : > { %894 = vadd.xlane.f32.xlu0 %v893_v13  ;;  %3483 = vmatprep.subr.bf16.mxu1 %v3660_v22 }
 0x191   : > { %v856_v44 = vmul.f32 %v4304_v10, %v4304_v10  ;;  %v899_v20 = vsel %vm759_vm2, %v855_v41, 0.0  ;;  %3484 = vmatpush3.bf16.msra.mxu1 %v3660_v22 }
 0x192   : > { %897 = vadd.xlane.f32.xlu1 %v896_v30  ;;  %3485 = vmatprep.subr.bf16.mxu1 %v3661_v18 }
 0x193   : > { %v902_v17 = vsel %vm759_vm2, %v856_v44, 0.0 }
 0x194   : > { %900 = vadd.xlane.f32.xlu0 %v899_v20 }
 0x195   : > { %3486 = vmatpush3.bf16.msra.mxu1 %v3661_v18 }
 0x196   : > { %903 = vadd.xlane.f32.xlu1 %v902_v17 }
 0x1ff   : > { %v859_v37 = vpop.xlane.xlu0 %858 }
 0x200   : > { %v905_v40 = vmul.f32 0.015625, %v859_v37 }
 0x202   : > { %v921_v24 = vadd.f32 1e-05, %v905_v40 }
 0x203   : > { %v862_v27 = vpop.xlane.xlu1 %861 }
 0x204   : > { %v906_v49 = vmul.f32 0.015625, %v862_v27  ;;  %3662 = vrsqrt.f32 %v921_v24 }
 0x205   : > { %v865_v53 = vpop.xlane.xlu0 %864 }
 0x206   : > { %v922_v0 = vadd.f32 1e-05, %v906_v49  ;;  %v907_v35 = vmul.f32 0.015625, %v865_v53 }
 0x207   : > { %v868_v45 = vpop.xlane.xlu1 %867 }
 0x208   : > { %3664 = vrsqrt.f32 %v922_v0  ;;  %v923_v48 = vadd.f32 1e-05, %v907_v35  ;;  %v908_v39 = vmul.f32 0.015625, %v868_v45 }
 0x209   : > { %v871_v43 = vpop.xlane.xlu0 %870 }
 0x20a   : > { %3666 = vrsqrt.f32 %v923_v48  ;;  %v924_v57 = vadd.f32 1e-05, %v908_v39  ;;  %v909_v61 = vmul.f32 0.015625, %v871_v43 }
 0x20b   : > { %v874_v47 = vpop.xlane.xlu1 %873 }
 0x20c   : > { %3668 = vrsqrt.f32 %v924_v57  ;;  %v925_v50 = vadd.f32 1e-05, %v909_v61  ;;  %v910_v54 = vmul.f32 0.015625, %v874_v47 }
 0x20d   : > { %v877_v56 = vpop.xlane.xlu0 %876 }
 0x20e   : > { %3670 = vrsqrt.f32 %v925_v50  ;;  %v926_v58 = vadd.f32 1e-05, %v910_v54  ;;  %v911_v26 = vmul.f32 0.015625, %v877_v56 }
 0x20f   : > { %v880_v7 = vpop.xlane.xlu1 %879 }
 0x210   : > { %3672 = vrsqrt.f32 %v926_v58  ;;  %v927_v11 = vadd.f32 1e-05, %v911_v26  ;;  %v912_v60 = vmul.f32 0.015625, %v880_v7 }
 0x211   : > { %v883_v29 = vpop.xlane.xlu0 %882  ;;  %v3663_v62 = vpop.eup %3662 }
 0x212   : > { %3674 = vrsqrt.f32 %v927_v11  ;;  %v928_v6 = vadd.f32 1e-05, %v912_v60  ;;  %v913_v63 = vmul.f32 0.015625, %v883_v29  ;;  %v953_v12 = vmul.f32 %v3663_v62, %v4201_v42 }
 0x213   : > { %v886_v31 = vpop.xlane.xlu1 %885 }
 0x214   : > { %3676 = vrsqrt.f32 %v928_v6  ;;  %v929_v15 = vadd.f32 1e-05, %v913_v63  ;;  %v914_v19 = vmul.f32 0.015625, %v886_v31 }
 0x215   : > { %v3665_v8 = vpop.eup %3664  ;;  %v889_v36 = vpop.xlane.xlu0 %888 }
 0x216   : > { %3678 = vrsqrt.f32 %v929_v15  ;;  %v930_v14 = vadd.f32 1e-05, %v914_v19  ;;  %v915_v13 = vmul.f32 0.015625, %v889_v36  ;;  %v954_v41 = vmul.f32 %v3665_v8, %v4211_v55 }
 0x217   : > { %v3667_v23 = vpop.eup %3666  ;;  %v892_v30 = vpop.xlane.xlu1 %891 }
 0x218   : > { %3680 = vrsqrt.f32 %v930_v14  ;;  %v931_v44 = vadd.f32 1e-05, %v915_v13  ;;  %v916_v20 = vmul.f32 0.015625, %v892_v30  ;;  %v969_v22 = vpack.c.bf16 %v954_v41, %v953_v12 }
 0x219   : > { %v3669_v17 = vpop.eup %3668  ;;  %v895_v18 = vpop.xlane.xlu0 %894  ;;  %v955_v37 = vmul.f32 %v3667_v23, %v4216_v59 }
 0x21a   : > { %3682 = vrsqrt.f32 %v931_v44  ;;  %v932_v40 = vadd.f32 1e-05, %v916_v20  ;;  %v917_v24 = vmul.f32 0.015625, %v895_v18  ;;  %3487 = vmatprep.mubr.msk.bf16.mxu1 %vm759_vm2, %v969_v22  ;;  %v956_v42 = vmul.f32 %v3669_v17, %v4207_v51 }
 0x21b   : > { %v3671_v27 = vpop.eup %3670  ;;  %v898_v49 = vpop.xlane.xlu1 %897 }
 0x21c   : > { %3684 = vrsqrt.f32 %v932_v40  ;;  %v933_v55 = vadd.f32 1e-05, %v917_v24  ;;  %v918_v53 = vmul.f32 0.015625, %v898_v49  ;;  %v970_v0 = vpack.c.bf16 %v956_v42, %v955_v37 }
 0x21d   : > { %v3673_v35 = vpop.eup %3672  ;;  %v901_v45 = vpop.xlane.xlu0 %900  ;;  %v957_v48 = vmul.f32 %v3671_v27, %v4224_v25 }
 0x21e   : > { %3686 = vrsqrt.f32 %v933_v55  ;;  %v934_v39 = vadd.f32 1e-05, %v918_v53  ;;  %v919_v59 = vmul.f32 0.015625, %v901_v45  ;;  %3488 = vmatmul.mubr.msk.bf16.vlgmr.msra.gmra.mxu1 %vm759_vm2, %v970_v0  ;;  %v958_v43 = vmul.f32 %v3673_v35, %v4231_v9 }
 0x21f   : > { %v3675_v57 = vpop.eup %3674  ;;  %v904_v61 = vpop.xlane.xlu1 %903 }
 0x220   : > { %3688 = vrsqrt.f32 %v934_v39  ;;  %v935_v51 = vadd.f32 1e-05, %v919_v59  ;;  %v920_v47 = vmul.f32 0.015625, %v904_v61  ;;  %v971_v50 = vpack.c.bf16 %v958_v43, %v957_v48 }
 0x221   : > { %v3677_v54 = vpop.eup %3676  ;;  %v959_v25 = vmul.f32 %v3675_v57, %v4238_v16 }
 0x222   : > { %3690 = vrsqrt.f32 %v935_v51  ;;  %v936_v56 = vadd.f32 1e-05, %v920_v47  ;;  %3491 = vmatprep.mubr.msk.bf16.mxu1 %vm759_vm2, %v971_v50  ;;  %v960_v58 = vmul.f32 %v3677_v54, %v4245_v21 }
 0x223   : > { %v3679_v26 = vpop.eup %3678 }
 0x224   : > { %3692 = vrsqrt.f32 %v936_v56  ;;  %v972_v7 = vpack.c.bf16 %v960_v58, %v959_v25  ;;  %v961_v9 = vmul.f32 %v3679_v26, %v4252_v34 }
 0x225   : > { %v3681_v11 = vpop.eup %3680 }
 0x226   : > { %3492 = vmatmul.mubr.msk.bf16.gmra.mxu1 %vm759_vm2, %v972_v7  ;;  %v962_v60 = vmul.f32 %v3681_v11, %v4259_v38 }
 0x227   : > { %v3683_v29 = vpop.eup %3682 }
 0x228   : > { %v973_v62 = vpack.c.bf16 %v962_v60, %v961_v9  ;;  %v963_v63 = vmul.f32 %v3683_v29, %v4266_v46 }
 0x229   : > { %v3685_v6 = vpop.eup %3684 }
 0x22a   : > { %3495 = vmatprep.mubr.msk.bf16.mxu1 %vm759_vm2, %v973_v62  ;;  %v964_v16 = vmul.f32 %v3685_v6, %v4273_v52  ;;  %v3892_v52 = vmov -inf  }
 0x22b   : > { %v3687_v21 = vpop.eup %3686  ;;  %1216 = vst.msk [vmem:[#allocation3] sm:$0xff] %vm1215_vm3, %v3892_v52  ;;  %1217 = vst.msk [vmem:[#allocation3 + $0x8] sm:$0xff] %vm1215_vm3, %v3892_v52 }
 0x22c   : > { %v974_v31 = vpack.c.bf16 %v964_v16, %v963_v63  ;;  %v965_v19 = vmul.f32 %v3687_v21, %v4280_v28  ;;  %1218 = vst.msk [vmem:[#allocation3 + $0x10] sm:$0xff] %vm1215_vm3, %v3892_v52  ;;  %1219 = vst.msk [vmem:[#allocation3 + $0x18] sm:$0xff] %vm1215_vm3, %v3892_v52  ;;  %v3893_v28 = vmov 0.0  }
 0x22d   : > { %v3689_v15 = vpop.eup %3688  ;;  %1220 = vst.msk [vmem:[#allocation3 + $0x20] sm:$0xff] %vm1215_vm3, %v3892_v52  ;;  %1221 = vst.msk [vmem:[#allocation3 + $0x28] sm:$0xff] %vm1215_vm3, %v3892_v52 }
 0x22e   : > { %3496 = vmatmul.mubr.msk.bf16.gmra.mxu1 %vm759_vm2, %v974_v31  ;;  %v966_v34 = vmul.f32 %v3689_v15, %v4287_v32  ;;  %1222 = vst.msk [vmem:[#allocation3 + $0x30] sm:$0xff] %vm1215_vm3, %v3892_v52  ;;  %1223 = vst.msk [vmem:[#allocation3 + $0x38] sm:$0xff] %vm1215_vm3, %v3892_v52 }
 0x22f   : > { %v3691_v8 = vpop.eup %3690  ;;  %1224 = vst.msk [vmem:[#allocation3 + $0x40] sm:$0xff] %vm1215_vm3, %v3892_v52  ;;  %1225 = vst.msk [vmem:[#allocation3 + $0x48] sm:$0xff] %vm1215_vm3, %v3892_v52 }
 0x230   : > { %v975_v38 = vpack.c.bf16 %v966_v34, %v965_v19  ;;  %v967_v12 = vmul.f32 %v3691_v8, %v4297_v33  ;;  %1226 = vst.msk [vmem:[#allocation3 + $0x50] sm:$0xff] %vm1215_vm3, %v3892_v52  ;;  %1227 = vst.msk [vmem:[#allocation3 + $0x58] sm:$0xff] %vm1215_vm3, %v3892_v52 }
 0x231   : > { %v3693_v36 = vpop.eup %3692  ;;  %1228 = vst.msk [vmem:[#allocation3 + $0x60] sm:$0xff] %vm1215_vm3, %v3892_v52  ;;  %1229 = vst.msk [vmem:[#allocation3 + $0x68] sm:$0xff] %vm1215_vm3, %v3892_v52 }
 0x232   : > { %3499 = vmatprep.mubr.msk.bf16.mxu1 %vm759_vm2, %v975_v38  ;;  %v968_v46 = vmul.f32 %v3693_v36, %v4304_v10  ;;  %1230 = vst.msk [vmem:[#allocation3 + $0x70] sm:$0xff] %vm1215_vm3, %v3892_v52  ;;  %1231 = vst.msk [vmem:[#allocation3 + $0x78] sm:$0xff] %vm1215_vm3, %v3892_v52 }
 0x233   : > { %1232 = vst.msk [vmem:[#allocation4] sm:$0xff] %vm1215_vm3, %v3893_v28  ;;  %1233 = vst.msk [vmem:[#allocation4 + $0x8] sm:$0xff] %vm1215_vm3, %v3893_v28 }
 0x234   : > { %v976_v14 = vpack.c.bf16 %v968_v46, %v967_v12  ;;  %1234 = vst.msk [vmem:[#allocation4 + $0x10] sm:$0xff] %vm1215_vm3, %v3893_v28  ;;  %1235 = vst.msk [vmem:[#allocation4 + $0x18] sm:$0xff] %vm1215_vm3, %v3893_v28 }
 0x235   : > { %1236 = vst.msk [vmem:[#allocation4 + $0x20] sm:$0xff] %vm1215_vm3, %v3893_v28  ;;  %1237 = vst.msk [vmem:[#allocation4 + $0x28] sm:$0xff] %vm1215_vm3, %v3893_v28 }
 0x236   : > { %3500 = vmatmul.mubr.msk.bf16.gmra.mxu1 %vm759_vm2, %v976_v14  ;;  %1238 = vst.msk [vmem:[#allocation4 + $0x30] sm:$0xff] %vm1215_vm3, %v3893_v28  ;;  %1239 = vst.msk [vmem:[#allocation4 + $0x38] sm:$0xff] %vm1215_vm3, %v3893_v28 }
 0x237   : > { %1240 = vst.msk [vmem:[#allocation4 + $0x40] sm:$0xff] %vm1215_vm3, %v3893_v28  ;;  %1241 = vst.msk [vmem:[#allocation4 + $0x48] sm:$0xff] %vm1215_vm3, %v3893_v28 }
 0x238   : > { %1242 = vst.msk [vmem:[#allocation4 + $0x50] sm:$0xff] %vm1215_vm3, %v3893_v28  ;;  %1243 = vst.msk [vmem:[#allocation4 + $0x58] sm:$0xff] %vm1215_vm3, %v3893_v28 }
 0x239   : > { %1244 = vst.msk [vmem:[#allocation4 + $0x60] sm:$0xff] %vm1215_vm3, %v3893_v28  ;;  %1245 = vst.msk [vmem:[#allocation4 + $0x68] sm:$0xff] %vm1215_vm3, %v3893_v28 }
 0x23a   : > { %1246 = vst.msk [vmem:[#allocation4 + $0x70] sm:$0xff] %vm1215_vm3, %v3893_v28  ;;  %1247 = vst.msk [vmem:[#allocation4 + $0x78] sm:$0xff] %vm1215_vm3, %v3893_v28 }
 0x23b   : > { %1248 = vst.msk [vmem:[#allocation5] sm:$0xff] %vm759_vm2, %v3893_v28  ;;  %1249 = vst.msk [vmem:[#allocation5 + $0x8] sm:$0xff] %vm759_vm2, %v3893_v28 }
 0x23c   : > { %1250 = vst.msk [vmem:[#allocation5 + $0x10] sm:$0xff] %vm759_vm2, %v3893_v28  ;;  %1251 = vst.msk [vmem:[#allocation5 + $0x18] sm:$0xff] %vm759_vm2, %v3893_v28 }
 0x23d   : > { %1252 = vst.msk [vmem:[#allocation5 + $0x20] sm:$0xff] %vm759_vm2, %v3893_v28  ;;  %1253 = vst.msk [vmem:[#allocation5 + $0x28] sm:$0xff] %vm759_vm2, %v3893_v28 }
 0x23e   : > { %1254 = vst.msk [vmem:[#allocation5 + $0x30] sm:$0xff] %vm759_vm2, %v3893_v28  ;;  %1255 = vst.msk [vmem:[#allocation5 + $0x38] sm:$0xff] %vm759_vm2, %v3893_v28 }
 0x23f   : > { %1256 = vst.msk [vmem:[#allocation5 + $0x40] sm:$0xff] %vm759_vm2, %v3893_v28  ;;  %1257 = vst.msk [vmem:[#allocation5 + $0x48] sm:$0xff] %vm759_vm2, %v3893_v28 }
 0x240   : > { %1258 = vst.msk [vmem:[#allocation5 + $0x50] sm:$0xff] %vm759_vm2, %v3893_v28  ;;  %1259 = vst.msk [vmem:[#allocation5 + $0x58] sm:$0xff] %vm759_vm2, %v3893_v28 }
 0x241   : > { %1260 = vst.msk [vmem:[#allocation5 + $0x60] sm:$0xff] %vm759_vm2, %v3893_v28  ;;  %1261 = vst.msk [vmem:[#allocation5 + $0x68] sm:$0xff] %vm759_vm2, %v3893_v28 }
 0x242   : > { %1262 = vst.msk [vmem:[#allocation5 + $0x70] sm:$0xff] %vm759_vm2, %v3893_v28  ;;  %1263 = vst.msk [vmem:[#allocation5 + $0x78] sm:$0xff] %vm759_vm2, %v3893_v28 }
 0x2de   : > { %v3489_v32 = vpop.f32.mrf.mxu1 }
 0x2df   : > { %v1080_v33 = vadd.f32 %v3489_v32, %v4009_v1 }
 0x2e0   : > { %v1071_v10 = vpop.f32.mrf.mxu1 }
 0x2e1   : > { %v3359_v13 = vpack.c.bf16 %v1080_v33, %v1080_v33  ;;  %v1072_v41 = vadd.f32 %v4009_v1, %v1071_v10 }
 0x2e2   : > { %v3490_v23 = vpop.f32.mrf.mxu1 }
 0x2e3   : > { %1201 = vst.msk [vmem:[#allocation2 + $0x8] sm:$0xf] %vm1198_vm4, %v3359_v13  ;;  %v3357_v30 = vpack.c.bf16 %v1072_v41, %v1072_v41  ;;  %v1083_v44 = vadd.f32 %v3490_v23, %v4009_v1 }
 0x2e4   : > { %v1074_v20 = vpop.f32.mrf.mxu1 }
 0x2e5   : > { %1199 = vst.msk [vmem:[#allocation2] sm:$0xf] %vm1198_vm4, %v3357_v30  ;;  %v3360_v22 = vpack.c.bf16 %v1083_v44, %v1083_v44  ;;  %v1075_v17 = vadd.f32 %v4009_v1, %v1074_v20 }
 0x2e6   : > { %v3493_v18 = vpop.f32.mrf.mxu1 }
 0x2e7   : > { %1202 = vst.msk [vmem:[#allocation2 + $0xc] sm:$0xf] %vm1198_vm4, %v3360_v22  ;;  %v3358_v37 = vpack.c.bf16 %v1075_v17, %v1075_v17  ;;  %v1096_v40 = vadd.f32 %v3493_v18, %v4009_v1 }
 0x2e8   : > { %v1087_v24 = vpop.f32.mrf.mxu1 }
 0x2e9   : > { %1200 = vst.msk [vmem:[#allocation2 + $0x4] sm:$0xf] %vm1198_vm4, %v3358_v37  ;;  %v3363_v42 = vpack.c.bf16 %v1096_v40, %v1096_v40  ;;  %v1088_v27 = vadd.f32 %v4009_v1, %v1087_v24 }
 0x2ea   : > { %v3494_v49 = vpop.f32.mrf.mxu1 }
 0x2eb   : > { %1205 = vst.msk [vmem:[#allocation2 + $0x18] sm:$0xf] %vm1198_vm4, %v3363_v42  ;;  %v3361_v55 = vpack.c.bf16 %v1088_v27, %v1088_v27  ;;  %v1099_v53 = vadd.f32 %v3494_v49, %v4009_v1 }
 0x2ec   : > { %v1090_v0 = vpop.f32.mrf.mxu1 }
 0x2ed   : > { %1203 = vst.msk [vmem:[#allocation2 + $0x10] sm:$0xf] %vm1198_vm4, %v3361_v55  ;;  %v3364_v35 = vpack.c.bf16 %v1099_v53, %v1099_v53  ;;  %v1091_v45 = vadd.f32 %v4009_v1, %v1090_v0 }
 0x2ee   : > { %v3497_v48 = vpop.f32.mrf.mxu1 }
 0x2ef   : > { %1206 = vst.msk [vmem:[#allocation2 + $0x1c] sm:$0xf] %vm1198_vm4, %v3364_v35  ;;  %v3362_v39 = vpack.c.bf16 %v1091_v45, %v1091_v45  ;;  %v1112_v59 = vadd.f32 %v3497_v48, %v4009_v1 }
 0x2f0   : > { %v1103_v43 = vpop.f32.mrf.mxu1 }
 0x2f1   : > { %1204 = vst.msk [vmem:[#allocation2 + $0x14] sm:$0xf] %vm1198_vm4, %v3362_v39  ;;  %v3367_v57 = vpack.c.bf16 %v1112_v59, %v1112_v59  ;;  %v1104_v61 = vadd.f32 %v4009_v1, %v1103_v43 }
 0x2f2   : > { %v3498_v51 = vpop.f32.mrf.mxu1 }
 0x2f3   : > { %1209 = vst.msk [vmem:[#allocation2 + $0x28] sm:$0xf] %vm1198_vm4, %v3367_v57  ;;  %v3365_v47 = vpack.c.bf16 %v1104_v61, %v1104_v61  ;;  %v1115_v50 = vadd.f32 %v3498_v51, %v4009_v1 }
 0x2f4   : > { %v1106_v54 = vpop.f32.mrf.mxu1 }
 0x2f5   : > { %1207 = vst.msk [vmem:[#allocation2 + $0x20] sm:$0xf] %vm1198_vm4, %v3365_v47  ;;  %v3368_v56 = vpack.c.bf16 %v1115_v50, %v1115_v50  ;;  %v1107_v25 = vadd.f32 %v4009_v1, %v1106_v54 }
 0x2f6   : > { %v3501_v58 = vpop.f32.mrf.mxu1 }
 0x2f7   : > { %1210 = vst.msk [vmem:[#allocation2 + $0x2c] sm:$0xf] %vm1198_vm4, %v3368_v56  ;;  %v3366_v26 = vpack.c.bf16 %v1107_v25, %v1107_v25  ;;  %v1128_v7 = vadd.f32 %v3501_v58, %v4009_v1 }
 0x2f8   : > { %v1119_v11 = vpop.f32.mrf.mxu1 }
 0x2f9   : > { %1208 = vst.msk [vmem:[#allocation2 + $0x24] sm:$0xf] %vm1198_vm4, %v3366_v26  ;;  %v3371_v9 = vpack.c.bf16 %v1128_v7, %v1128_v7  ;;  %v1120_v60 = vadd.f32 %v4009_v1, %v1119_v11 }
 0x2fa   : > { %v3502_v29 = vpop.f32.mrf.mxu1 }
 0x2fb   : > { %1213 = vst.msk [vmem:[#allocation2 + $0x38] sm:$0xf] %vm1198_vm4, %v3371_v9  ;;  %v3369_v62 = vpack.c.bf16 %v1120_v60, %v1120_v60  ;;  %v1131_v6 = vadd.f32 %v3502_v29, %v4009_v1 }
 0x2fc   : > { %v1122_v63 = vpop.f32.mrf.mxu1 }
 0x2fd   : > { %1211 = vst.msk [vmem:[#allocation2 + $0x30] sm:$0xf] %vm1198_vm4, %v3369_v62  ;;  %v3372_v16 = vpack.c.bf16 %v1131_v6, %v1131_v6  ;;  %v1123_v21 = vadd.f32 %v4009_v1, %v1122_v63 }
 0x2ff   : > { %1214 = vst.msk [vmem:[#allocation2 + $0x3c] sm:$0xf] %vm1198_vm4, %v3372_v16  ;;  %v3370_v31 = vpack.c.bf16 %v1123_v21, %v1123_v21 }
 0x301   : > { %1212 = vst.msk [vmem:[#allocation2 + $0x34] sm:$0xf] %vm1198_vm4, %v3370_v31 }
 0x302 PF: > { %v3696_v15 = vld [vmem:[%s5155_s3 + $0x8] sm:$0xff]   ;;  %v3894_v19 = vmov 0.0   ;;  %v3697_v1 = vld [vmem:[%s5155_s3] sm:$0xff]   ;;  %vm3895_vm5 = vmmov 0   ;;  %vm1290_vm6 = vcmask 261120   ;;  %vm1550_vm7 = vcmask 523264  }
 0x303   : > { %3503 = vmatprep.subr.bf16.mxu0 %v3894_v19  ;;  %3511 = vmatprep.subr.bf16.mxu1 %v3894_v19  ;;  %v1264_v34 = vld [vmem:[%s4044_s17] sm:$0xff]  ;;  %v1265_v8 = vld [vmem:[%s4044_s17 + $0x8] sm:$0xff]  ;;  %v3704_v31 = vld [vmem:[#allocation2 + $0x10] sm:$0xff]   ;;  %s3317_s20 = sshll.u32 %s3874_s25, 4  ;;  %vm1713_vm9 = vcmask 130048   ;;  %vm2050_vm10 = vcmask 7168  }
 0x304   : > { %3504 = vmatpush3.bf16.msra.mxu0 %v3696_v15  ;;  %3507 = vmatprep.mubr.msk.bf16.mxu0 %vm3895_vm5, %v3894_v19  ;;  %v1266_v38 = vpack.c.bf16 %v1265_v8, %v1264_v34  ;;  %v3289_v36 = vld [vmem:[%s5161_s9] ss:$0 sm:$0xff]  ;;  %v3698_v42 = vld [vmem:[%s5157_s5 + $0x8] sm:$0xff]   ;;  %v1675_v34 = vlaneseq  ;;  %p3326_p8 = scmp.ne.s32.totalorder %s3874_s25, 1 }
 0x305   : > { %3505 = vmatprep.subr.bf16.mxu0 %v3894_v19  ;;  %3515 = vmatprep.mubr.msk.bf16.mxu1 %vm3895_vm5, %v3894_v19  ;;  %v3699_v27 = vld [vmem:[%s5158_s6 + $0x8] sm:$0xff]   ;;  %v3700_v49 = vld [vmem:[%s5157_s5] sm:$0xff]  }
 0x306   : > { %3512 = vmatpush3.bf16.msra.mxu1 %v3698_v42  ;;  %v3701_v55 = vld [vmem:[%s5158_s6] sm:$0xff]   ;;  %v3703_v21 = vld [vmem:[#allocation2 + $0x8] sm:$0xff]   ;;  %v1676_v8 = vand.u32 127, %v1675_v34 }
 0x307   : > { %3513 = vmatprep.subr.bf16.mxu1 %v3894_v19  ;;  %v3702_v47 = vld [vmem:[#allocation2] sm:$0xff]   ;;  %v3707_v15 = vld [vmem:[#allocation2 + $0x28] sm:$0xff]  }
 0x308   : > { %3506 = vmatpush3.bf16.msra.mxu0 %v3697_v1  ;;  %v3709_v1 = vld [vmem:[#allocation2 + $0x38] sm:$0xff]  }
 0x309   : > { %3519 = vmatprep.subr.bf16.mxu0 %v3894_v19 }
 0x30a   : > { %3514 = vmatpush3.bf16.msra.mxu1 %v3700_v49 }
 0x30b   : > { %3508 = vmatmul.mubr.msk.bf16.vlgmr.msra.gmra.mxu0 %vm1290_vm6, %v1266_v38  ;;  %v1678_v38 = vstv %s3317_s20 }
 0x30c   : > { %3523 = vmatprep.mubr.msk.bf16.mxu0 %vm3895_vm5, %v3894_v19  ;;  %3520 = vmatpush3.bf16.msra.mxu0 %v3699_v27 }
 0x30d   : > { %3521 = vmatprep.subr.bf16.mxu0 %v3894_v19  ;;  %v3708_v19 = vld [vmem:[#allocation2 + $0x30] sm:$0xff]  }
 0x310   : > { %3522 = vmatpush3.bf16.msra.mxu0 %v3701_v55 }
 0x3cb   : > { %v1328_v12 = vpop.f32.mrf.mxu0 }
 0x3cc   : > { %v1329_v46 = vadd.f32 %v3289_v36, %v1328_v12 }
 0x3cd   : > { %v3509_v14 = vpop.f32.mrf.mxu0 }
 0x3ce   : > { %v1335_v52 = vmax.f32 %v1329_v46, 0.0 }
 0x3cf   : > { %v1331_v28 = vpop.f32.mrf.mxu0 }
 0x3d0   : > { %1337 = vst.msk [vmem:[%s4049_s26] sm:$0xff] %vm1290_vm6, %v1335_v52  ;;  %v1332_v32 = vadd.f32 %v3289_v36, %v1331_v28  ;;  %v1339_v33 = vsel %vm1290_vm6, %v1335_v52, 0.0  ;;  %v4476_v36 = vadd.s32 %v1678_v38, %v1676_v8  ;;  %v4584_v38 = vld [vmem:[#allocation3 + $0x20] sm:$0xff] }
 0x3d1   : > { %1340 = vadd.xlane.f32.xlu0 %v1339_v33  ;;  %v3510_v10 = vpop.f32.mrf.mxu0 }
 0x3d2   : > { %v1336_v13 = vmax.f32 %v1332_v32, 0.0  ;;  %vm1680_vm8 = vcmp.lt.s32.totalorder %v4476_v36, 24 }
 0x3d4   : > { %1338 = vst.msk [vmem:[%s4049_s26 + $0x8] sm:$0xff] %vm1290_vm6, %v1336_v13  ;;  %v1342_v41 = vsel %vm1290_vm6, %v1336_v13, 0.0 }
 0x3d5   : > { %1343 = vadd.xlane.f32.xlu0 %v1342_v41 }
 0x45a   : > { %v1341_v23 = vpop.xlane.xlu0 %1340 }
 0x45b   : > { %v1346_v30 = vmul.f32 0.03125, %v1341_v23 }
 0x45d   : > { %v1348_v44 = vsub.f32 %v1335_v52, %v1346_v30 }
 0x45e   : > { %v1344_v20 = vpop.xlane.xlu0 %1343 }
 0x45f   : > { %v1347_v22 = vmul.f32 0.03125, %v1344_v20  ;;  %v1350_v17 = vmul.f32 %v1348_v44, %v1348_v44 }
 0x461   : > { %v1349_v18 = vsub.f32 %v1336_v13, %v1347_v22  ;;  %v1352_v37 = vsel %vm1290_vm6, %v1350_v17, 0.0 }
 0x462   : > { %1353 = vadd.xlane.f32.xlu1 %v1352_v37 }
 0x463   : > { %v1351_v40 = vmul.f32 %v1349_v18, %v1349_v18 }
 0x465   : > { %v1355_v24 = vsel %vm1290_vm6, %v1351_v40, 0.0 }
 0x466   : > { %1356 = vadd.xlane.f32.xlu1 %v1355_v24 }
 0x4eb   : > { %v1354_v53 = vpop.xlane.xlu1 %1353 }
 0x4ec   : > { %v1358_v0 = vmul.f32 0.03125, %v1354_v53  ;;  %v3896_v53 = vmov 0  }
 0x4ed   : > { %3694 = vset.pattern.permute.xlu0 %v3896_v53  ;;  %3695 = vset.pattern.permute.xlu1 %v3896_v53  ;;  %v4614_v53 = vld [vmem:[#allocation3 + $0x50] sm:$0xff] }
 0x4ee   : > { %v1360_v35 = vadd.f32 1e-05, %v1358_v0 }
 0x4ef   : > { %v1357_v45 = vpop.xlane.xlu1 %1356 }
 0x4f0   : > { %v1359_v48 = vmul.f32 0.03125, %v1357_v45  ;;  %3710 = vrsqrt.f32 %v1360_v35 }
 0x4f2   : > { %v1361_v39 = vadd.f32 1e-05, %v1359_v48 }
 0x4f4   : > { %3712 = vrsqrt.f32 %v1361_v39 }
 0x4fd   : > { %v3711_v59 = vpop.eup %3710 }
 0x4fe   : > { %v1364_v57 = vmul.f32 %v3711_v59, %v1348_v44 }
 0x501   : > { %v3713_v43 = vpop.eup %3712 }
 0x502   : > { %v1365_v61 = vmul.f32 %v3713_v43, %v1349_v18 }
 0x504   : > { %v1366_v51 = vpack.c.bf16 %v1365_v61, %v1364_v57 }
 0x506   : > { %3516 = vmatmul.mubr.msk.bf16.vlgmr.msra.gmra.mxu1 %vm1290_vm6, %v1366_v51  ;;  %3524 = vmatmul.mubr.msk.bf16.vlgmr.msra.gmra.mxu0 %vm1290_vm6, %v1366_v51 }
 0x507   : > { %3529 = vmatprep.mubr.msk.bf16.mxu1 %vm1550_vm7, %v3702_v47 }
 0x5c6   : > { %v1424_v50 = vpop.f32.mrf.mxu1  ;;  %v1486_v54 = vpop.f32.mrf.mxu0 }
 0x5c7   : > { %v1425_v7 = vadd.f32 %v4014_v2, %v1424_v50  ;;  %v1487_v11 = vadd.f32 %v4019_v3, %v1486_v54 }
 0x5c8   : > { %v3517_v56 = vpop.f32.mrf.mxu1  ;;  %v3525_v25 = vpop.f32.mrf.mxu0 }
 0x5ca   : > { %v1427_v58 = vpop.f32.mrf.mxu1  ;;  %v1489_v26 = vpop.f32.mrf.mxu0 }
 0x5cb   : > { %v1428_v9 = vadd.f32 %v4014_v2, %v1427_v58  ;;  %v1490_v60 = vadd.f32 %v4019_v3, %v1489_v26  ;;  %v3705_v2 = vld [vmem:[#allocation2 + $0x18] sm:$0xff]   ;;  %v3706_v3 = vld [vmem:[#allocation2 + $0x20] sm:$0xff]  }
 0x5cc   : > { %v3518_v29 = vpop.f32.mrf.mxu1  ;;  %v3526_v62 = vpop.f32.mrf.mxu0 }
 0x5cd   : > { %v1431_v6 = vpack.c.bf16 %v1428_v9, %v1425_v7  ;;  %v1493_v63 = vpack.c.bf16 %v1490_v60, %v1487_v11 }
 0x5cf   : > { %3611 = vmatprep.subr.msk.bf16.mxu1 %vm1550_vm7, %v1431_v6  ;;  %3545 = vmatprep.subr.bf16.mxu0 %v1493_v63  ;;  %v1576_v16 = vsel %vm1550_vm7, %v1431_v6, 0 }
 0x5d0   : > { %3528 = vmatpush3.bf16.xpose.msra.mxu1 %v1576_v16  ;;  %3546 = vmatpush3.bf16.msra.mxu0 %v1493_v63  ;;  %v1697_v63 = vld [vmem:[#allocation3] sm:$0xff] }
 0x5d7   : > { %3530 = vmatmul.mubr.msk.bf16.vlgmr.msra.gmra.mxu1 %vm1550_vm7, %v3703_v21  ;;  %v1700_v21 = vld [vmem:[#allocation3 + $0x18] sm:$0xff] }
 0x5d8   : > { %3533 = vmatprep.mubr.msk.bf16.mxu1 %vm1550_vm7, %v3704_v31 }
 0x5df   : > { %3534 = vmatmul.mubr.msk.bf16.gmra.mxu1 %vm1550_vm7, %v3705_v2 }
 0x5e0   : > { %3537 = vmatprep.mubr.msk.bf16.mxu1 %vm1550_vm7, %v3706_v3  ;;  %v4575_v3 = vld [vmem:[#allocation3 + $0x10] sm:$0xff] }
 0x5e7   : > { %3538 = vmatmul.mubr.msk.bf16.gmra.mxu1 %vm1550_vm7, %v3707_v15 }
 0x5e8   : > { %3541 = vmatprep.mubr.msk.bf16.mxu1 %vm1550_vm7, %v3708_v19 }
 0x5ef   : > { %3542 = vmatmul.mubr.msk.bf16.gmra.mxu1 %vm1550_vm7, %v3709_v1  ;;  %v4578_v1 = vld [vmem:[#allocation3 + $0x8] sm:$0xff] }
 0x697   : > { %v3531_v12 = vpop.f32.mrf.mxu1 }
 0x698   : > { %v4487_v32 = vsel %vm1680_vm8, %v3531_v12, -1e+30 }
 0x699   : > { %v1612_v46 = vpop.f32.mrf.mxu1  ;;  %v1720_v30 = vsel %vm1713_vm9, %v4487_v32, -inf }
 0x69a   : > { %v4481_v14 = vsel %vm1680_vm8, %v1612_v46, -1e+30  ;;  %v1704_v46 = vld [vmem:[#allocation3 + $0x38] sm:$0xff] }
 0x69b   : > { %v3532_v52 = vpop.f32.mrf.mxu1  ;;  %v1714_v28 = vsel %vm1713_vm9, %v4481_v14, -inf }
 0x69c   : > { %v4491_v33 = vsel %vm1680_vm8, %v3532_v52, -1e+30  ;;  %1715 = vmax.xlane.f32.xlu0 %v1714_v28 }
 0x69d   : > { %v1615_v10 = vpop.f32.mrf.mxu1  ;;  %v1723_v13 = vsel %vm1713_vm9, %v4491_v33, -inf }
 0x69e   : > { %v4497_v41 = vsel %vm1680_vm8, %v1615_v10, -1e+30  ;;  %1724 = vmax.xlane.f32.xlu1 %v1723_v13  ;;  %v4597_v10 = vld [vmem:[#allocation3 + $0x30] sm:$0xff] }
 0x69f   : > { %v3535_v23 = vpop.f32.mrf.mxu1  ;;  %v1717_v20 = vsel %vm1713_vm9, %v4497_v41, -inf }
 0x6a0   : > { %1721 = vmax.xlane.f32.xlu0 %v1720_v30  ;;  %v4511_v37 = vsel %vm1680_vm8, %v3535_v23, -1e+30  ;;  %v1702_v30 = vld [vmem:[#allocation3 + $0x28] sm:$0xff] }
 0x6a1   : > { %v1628_v44 = vpop.f32.mrf.mxu1  ;;  %v1732_v55 = vsel %vm1713_vm9, %v4511_v37, -inf }
 0x6a2   : > { %v4505_v22 = vsel %vm1680_vm8, %v1628_v44, -1e+30  ;;  %1718 = vmax.xlane.f32.xlu1 %v1717_v20 }
 0x6a3   : > { %v3536_v17 = vpop.f32.mrf.mxu1  ;;  %v1726_v18 = vsel %vm1713_vm9, %v4505_v22, -inf }
 0x6a4   : > { %v4515_v40 = vsel %vm1680_vm8, %v3536_v17, -1e+30  ;;  %1727 = vmax.xlane.f32.xlu0 %v1726_v18  ;;  %v4605_v17 = vld [vmem:[#allocation3 + $0x40] sm:$0xff] }
 0x6a5   : > { %v1631_v24 = vpop.f32.mrf.mxu1  ;;  %v1735_v42 = vsel %vm1713_vm9, %v4515_v40, -inf }
 0x6a6   : > { %v4521_v27 = vsel %vm1680_vm8, %v1631_v24, -1e+30  ;;  %1736 = vmax.xlane.f32.xlu1 %v1735_v42  ;;  %v1708_v24 = vld [vmem:[#allocation3 + $0x58] sm:$0xff] }
 0x6a7   : > { %v3539_v49 = vpop.f32.mrf.mxu1  ;;  %v1729_v35 = vsel %vm1713_vm9, %v4521_v27, -inf }
 0x6a8   : > { %1733 = vmax.xlane.f32.xlu0 %v1732_v55  ;;  %v4529_v45 = vsel %vm1680_vm8, %v3539_v49, -1e+30 }
 0x6a9   : > { %v1644_v0 = vpop.f32.mrf.mxu1  ;;  %v1744_v51 = vsel %vm1713_vm9, %v4529_v45, -inf }
 0x6aa   : > { %v4533_v48 = vsel %vm1680_vm8, %v1644_v0, -1e+30  ;;  %1730 = vmax.xlane.f32.xlu1 %v1729_v35 }
 0x6ab   : > { %v3540_v39 = vpop.f32.mrf.mxu1  ;;  %v1738_v59 = vsel %vm1713_vm9, %v4533_v48, -inf }
 0x6ac   : > { %v4539_v43 = vsel %vm1680_vm8, %v3540_v39, -1e+30  ;;  %1739 = vmax.xlane.f32.xlu0 %v1738_v59  ;;  %v1706_v39 = vld [vmem:[#allocation3 + $0x48] sm:$0xff] }
 0x6ad   : > { %v1647_v57 = vpop.f32.mrf.mxu1  ;;  %v1747_v61 = vsel %vm1713_vm9, %v4539_v43, -inf }
 0x6ae   : > { %v4547_v47 = vsel %vm1680_vm8, %v1647_v57, -1e+30  ;;  %1748 = vmax.xlane.f32.xlu1 %v1747_v61 }
 0x6af   : > { %v3543_v50 = vpop.f32.mrf.mxu1  ;;  %v1741_v54 = vsel %vm1713_vm9, %v4547_v47, -inf }
 0x6b0   : > { %1745 = vmax.xlane.f32.xlu0 %v1744_v51  ;;  %v4553_v25 = vsel %vm1680_vm8, %v3543_v50, -1e+30  ;;  %v4623_v50 = vld [vmem:[#allocation3 + $0x60] sm:$0xff] }
 0x6b1   : > { %v1660_v56 = vpop.f32.mrf.mxu1  ;;  %v1756_v29 = vsel %vm1713_vm9, %v4553_v25, -inf }
 0x6b2   : > { %v4557_v58 = vsel %vm1680_vm8, %v1660_v56, -1e+30  ;;  %1742 = vmax.xlane.f32.xlu1 %v1741_v54 }
 0x6b3   : > { %v3544_v26 = vpop.f32.mrf.mxu1  ;;  %v1750_v7 = vsel %vm1713_vm9, %v4557_v58, -inf }
 0x6b4   : > { %v4563_v11 = vsel %vm1680_vm8, %v3544_v26, -1e+30  ;;  %1751 = vmax.xlane.f32.xlu0 %v1750_v7  ;;  %v4628_v26 = vld [vmem:[#allocation3 + $0x78] sm:$0xff] }
 0x6b5   : > { %v1759_v9 = vsel %vm1713_vm9, %v4563_v11, -inf  ;;  %v1663_v60 = vpop.f32.mrf.mxu1 }
 0x6b6   : > { %1760 = vmax.xlane.f32.xlu1 %v1759_v9  ;;  %v4571_v62 = vsel %vm1680_vm8, %v1663_v60, -1e+30 }
 0x6b7   : > { %v1753_v6 = vsel %vm1713_vm9, %v4571_v62, -inf }
 0x6b8   : > { %1757 = vmax.xlane.f32.xlu0 %v1756_v29 }
 0x6ba   : > { %1754 = vmax.xlane.f32.xlu1 %v1753_v6  ;;  %v4634_v6 = vld [vmem:[#allocation3 + $0x70] sm:$0xff] }
 0x725   : > { %v1716_v16 = vpop.xlane.xlu0 %1715 }
 0x726   : > { %v1762_v31 = vmax.f32 %v1697_v63, %v1716_v16 }
 0x727   : > { %v1725_v2 = vpop.xlane.xlu1 %1724 }
 0x728   : > { %2340 = vst.msk [vmem:[#allocation3] sm:$0xff] %vm2050_vm10, %v1762_v31  ;;  %v1765_v15 = vmax.f32 %v1700_v21, %v1725_v2  ;;  %1828 = vperm.xlu0 %3694, %v1762_v31   ;;  %v1778_v0 = vsub.f32 %v1697_v63, %v1762_v31 }
 0x729   : > { %v1722_v19 = vpop.xlane.xlu0 %1721 }
 0x72a   : > { %2343 = vst.msk [vmem:[#allocation3 + $0x18] sm:$0xff] %vm2050_vm10, %v1765_v15  ;;  %v4582_v34 = vmax.f32 %v4575_v3, %v1722_v19  ;;  %v1781_v61 = vsub.f32 %v1700_v21, %v1765_v15  ;;  %v1794_v54 = vmul.f32 1.442695, %v1778_v0  ;;  %v1710_v21 = vld [vmem:[#allocation3 + $0x68] sm:$0xff] }
 0x72b   : > { %v1719_v8 = vpop.xlane.xlu1 %1718 }
 0x72c   : > { %2342 = vst.msk [vmem:[#allocation3 + $0x10] sm:$0xff] %vm2050_vm10, %v4582_v34  ;;  %v4589_v36 = vmax.f32 %v4578_v1, %v1719_v8  ;;  %1838 = vperm.xlu1 %3695, %v4582_v34   ;;  %v1800_v60 = vmul.f32 1.442695, %v1781_v61  ;;  %3714 = vpow2.f32 %v1794_v54 }
 0x72d   : > { %v1728_v12 = vpop.xlane.xlu0 %1727 }
 0x72e   : > { %2341 = vst.msk [vmem:[#allocation3 + $0x8] sm:$0xff] %vm2050_vm10, %v4589_v36  ;;  %v4595_v52 = vmax.f32 %v4584_v38, %v1728_v12  ;;  %v1779_v2 = vsub.f32 %v4578_v1, %v4589_v36  ;;  %3716 = vpow2.f32 %v1800_v60  ;;  %v1780_v1 = vsub.f32 %v4575_v3, %v4582_v34 }
 0x72f   : > { %v1737_v28 = vpop.xlane.xlu1 %1736 }
 0x730   : > { %2344 = vst.msk [vmem:[#allocation3 + $0x20] sm:$0xff] %vm2050_vm10, %v4595_v52  ;;  %v1769_v13 = vmax.f32 %v1704_v46, %v1737_v28  ;;  %1843 = vperm.xlu1 %3695, %v1765_v15  }
 0x731   : > { %v1734_v23 = vpop.xlane.xlu0 %1733 }
 0x732   : > { %2347 = vst.msk [vmem:[#allocation3 + $0x38] sm:$0xff] %vm2050_vm10, %v1769_v13  ;;  %v4603_v44 = vmax.f32 %v4597_v10, %v1734_v23  ;;  %v1785_v63 = vsub.f32 %v1704_v46, %v1769_v13 }
 0x733   : > { %v1731_v20 = vpop.xlane.xlu1 %1730 }
 0x734   : > { %2346 = vst.msk [vmem:[#allocation3 + $0x30] sm:$0xff] %vm2050_vm10, %v4603_v44  ;;  %v1767_v18 = vmax.f32 %v1702_v30, %v1731_v20  ;;  %1833 = vperm.xlu1 %3695, %v4589_v36   ;;  %v1808_v12 = vmul.f32 1.442695, %v1785_v63  ;;  %v1796_v36 = vmul.f32 1.442695, %v1779_v2 }
 0x735   : > { %v1740_v42 = vpop.xlane.xlu0 %1739 }
 0x736   : > { %2345 = vst.msk [vmem:[#allocation3 + $0x28] sm:$0xff] %vm2050_vm10, %v1767_v18  ;;  %v4612_v49 = vmax.f32 %v4605_v17, %v1740_v42  ;;  %v1783_v46 = vsub.f32 %v1702_v30, %v1767_v18  ;;  %3718 = vpow2.f32 %v1808_v12  ;;  %v1798_v30 = vmul.f32 1.442695, %v1780_v1 }
 0x737   : > { %v1749_v55 = vpop.xlane.xlu1 %1748  ;;  %3720 = vpow2.f32 %v1796_v36 }
 0x738   : > { %v1773_v35 = vmax.f32 %v1708_v24, %v1749_v55  ;;  %1858 = vperm.xlu1 %3695, %v4603_v44   ;;  %2348 = vst.msk [vmem:[#allocation3 + $0x40] sm:$0xff] %vm2050_vm10, %v4612_v49  ;;  %v1804_v20 = vmul.f32 1.442695, %v1783_v46 }
 0x739   : > { %v1746_v59 = vpop.xlane.xlu0 %1745  ;;  %v4662_v3 = vpop.eup %3714 }
 0x73a   : > { %2351 = vst.msk [vmem:[#allocation3 + $0x58] sm:$0xff] %vm2050_vm10, %v1773_v35  ;;  %v4621_v57 = vmax.f32 %v4614_v53, %v1746_v59  ;;  %v1789_v42 = vsub.f32 %v1708_v24, %v1773_v35  ;;  %3722 = vpow2.f32 %v1804_v20  ;;  %v1784_v24 = vsub.f32 %v4597_v10, %v4603_v44 }
 0x73b   : > { %v1743_v51 = vpop.xlane.xlu1 %1742  ;;  %3724 = vpow2.f32 %v1798_v30  ;;  %v4667_v0 = vpop.eup %3716  ;;  %v1786_v44 = vsub.f32 %v4605_v17, %v4612_v49 }
 0x73c   : > { %v1771_v56 = vmax.f32 %v1706_v39, %v1743_v51  ;;  %1848 = vperm.xlu1 %3695, %v4595_v52   ;;  %2350 = vst.msk [vmem:[#allocation3 + $0x50] sm:$0xff] %vm2050_vm10, %v4621_v57 }
 0x73d   : > { %v1752_v7 = vpop.xlane.xlu0 %1751 }
 0x73e   : > { %2349 = vst.msk [vmem:[#allocation3 + $0x48] sm:$0xff] %vm2050_vm10, %v1771_v56  ;;  %1873 = vperm.xlu0 %3694, %v1771_v56   ;;  %v4632_v9 = vmax.f32 %v4623_v50, %v1752_v7  ;;  %v1787_v55 = vsub.f32 %v1706_v39, %v1771_v56  ;;  %v1788_v39 = vsub.f32 %v4614_v53, %v4621_v57 }
 0x73f   : > { %v1761_v29 = vpop.xlane.xlu1 %1760 }
 0x740   : > { %v4637_v16 = vmax.f32 %v4628_v26, %v1761_v29  ;;  %1853 = vperm.xlu1 %3695, %v1767_v18   ;;  %2352 = vst.msk [vmem:[#allocation3 + $0x60] sm:$0xff] %vm2050_vm10, %v4632_v9  ;;  %v1816_v18 = vmul.f32 1.442695, %v1789_v42  ;;  %v1814_v61 = vmul.f32 1.442695, %v1788_v39  ;;  %v1790_v54 = vsub.f32 %v4623_v50, %v4632_v9 }
 0x741   : > { %v1758_v31 = vpop.xlane.xlu0 %1757 }
 0x742   : > { %v1793_v15 = vsub.f32 %v4628_v26, %v4637_v16  ;;  %2355 = vst.msk [vmem:[#allocation3 + $0x78] sm:$0xff] %vm2050_vm10, %v4637_v16  ;;  %1883 = vperm.xlu0 %3694, %v1773_v35   ;;  %v4648_v19 = vmax.f32 %v4634_v6, %v1758_v31  ;;  %3726 = vpow2.f32 %v1816_v18  ;;  %v1806_v35 = vmul.f32 1.442695, %v1784_v24 }
 0x743   : > { %v1755_v8 = vpop.xlane.xlu1 %1754  ;;  %v4674_v10 = vpop.eup %3718 }
 0x744   : > { %v1775_v28 = vmax.f32 %v1710_v21, %v1755_v8  ;;  %1863 = vperm.xlu1 %3695, %v1769_v13   ;;  %v1792_v23 = vsub.f32 %v4634_v6, %v4648_v19  ;;  %2354 = vst.msk [vmem:[#allocation3 + $0x70] sm:$0xff] %vm2050_vm10, %v4648_v19  ;;  %v1782_v13 = vsub.f32 %v4584_v38, %v4595_v52  ;;  %v1812_v38 = vmul.f32 1.442695, %v1787_v55  ;;  %v4679_v51 = vpop.eup %3720 }
 0x746   : > { %2353 = vst.msk [vmem:[#allocation3 + $0x68] sm:$0xff] %vm2050_vm10, %v1775_v28  ;;  %1893 = vperm.xlu0 %3694, %v1775_v28   ;;  %v1802_v34 = vmul.f32 1.442695, %v1782_v13  ;;  %v1791_v52 = vsub.f32 %v1710_v21, %v1775_v28 }
 0x747   : > { %v4682_v53 = vpop.eup %3722 }
 0x748   : > { %1868 = vperm.xlu1 %3695, %v4612_v49   ;;  %3728 = vpow2.f32 %v1802_v34  ;;  %v1820_v59 = vmul.f32 1.442695, %v1791_v52  ;;  %v4687_v56 = vpop.eup %3724  ;;  %v1818_v49 = vmul.f32 1.442695, %v1790_v54 }
 0x749   : > { %3730 = vpow2.f32 %v1812_v38 }
 0x74a   : > { %1903 = vperm.xlu0 %3694, %v4637_v16   ;;  %3732 = vpow2.f32 %v1806_v35 }
 0x74b   : > { %3734 = vpow2.f32 %v1820_v59 }
 0x74c   : > { %1878 = vperm.xlu1 %3695, %v4621_v57   ;;  %v1810_v57 = vmul.f32 1.442695, %v1786_v44  ;;  %3736 = vpow2.f32 %v1814_v61 }
 0x74e   : > { %2085 = vperm.xlu0 %3694, %v4662_v3   ;;  %3738 = vpow2.f32 %v1810_v57 }
 0x74f   : > { %v4690_v17 = vpop.eup %3726  ;;  %3740 = vpow2.f32 %v1818_v49 }
 0x750   : > { %1888 = vperm.xlu1 %3695, %v4632_v9  }
 0x752   : > { %2100 = vperm.xlu0 %3694, %v4667_v0  }
 0x754   : > { %1898 = vperm.xlu1 %3695, %v4648_v19  }
 0x755   : > { %v4693_v7 = vpop.eup %3728 }
 0x756   : > { %2120 = vperm.xlu0 %3694, %v4674_v10   ;;  %v4696_v60 = vpop.eup %3730 }
 0x757   : > { %v4699_v50 = vpop.eup %3732 }
 0x758   : > { %2090 = vperm.xlu1 %3695, %v4679_v51   ;;  %v4702_v9 = vpop.eup %3734 }
 0x759   : > { %v4705_v29 = vpop.eup %3736 }
 0x75a   : > { %2110 = vperm.xlu0 %3694, %v4682_v53  }
 0x75b   : > { %v4708_v63 = vpop.eup %3738 }
 0x75c   : > { %2095 = vperm.xlu1 %3695, %v4687_v56   ;;  %v4711_v21 = vpop.eup %3740 }
 0x75e   : > { %2140 = vperm.xlu0 %3694, %v4690_v17  }
 0x760   : > { %2105 = vperm.xlu1 %3695, %v4693_v7  }
 0x762   : > { %2130 = vperm.xlu0 %3694, %v4696_v60  }
 0x764   : > { %2115 = vperm.xlu1 %3695, %v4699_v50  }
 0x766   : > { %2150 = vperm.xlu0 %3694, %v4702_v9  }
 0x768   : > { %2135 = vperm.xlu1 %3695, %v4705_v29  }
 0x76c   : > { %2125 = vperm.xlu1 %3695, %v4708_v63  }
 0x770   : > { %2145 = vperm.xlu1 %3695, %v4711_v21  }
 0x7a3   : > { %v1829_v31 = vpop.permute.xlu0 %1828 }
 0x7a4   : > { %v1906_v2 = vsub.f32 %v4481_v14, %v1829_v31 }
 0x7a6   : > { %v1922_v8 = vmul.f32 1.442695, %v1906_v2 }
 0x7a7   : > { %v1839_v12 = vpop.permute.xlu1 %1838 }
 0x7a8   : > { %3742 = vpow2.f32 %v1922_v8  ;;  %v1908_v46 = vsub.f32 %v4487_v32, %v1839_v12 }
 0x7aa   : > { %v1926_v28 = vmul.f32 1.442695, %v1908_v46 }
 0x7ab   : > { %v1844_v1 = vpop.permute.xlu1 %1843 }
 0x7ac   : > { %3744 = vpow2.f32 %v1926_v28  ;;  %v1909_v36 = vsub.f32 %v4491_v33, %v1844_v1 }
 0x7ae   : > { %v1928_v20 = vmul.f32 1.442695, %v1909_v36 }
 0x7af   : > { %v1834_v42 = vpop.permute.xlu1 %1833 }
 0x7b0   : > { %3746 = vpow2.f32 %v1928_v20  ;;  %v1907_v30 = vsub.f32 %v4497_v41, %v1834_v42 }
 0x7b2   : > { %v1924_v13 = vmul.f32 1.442695, %v1907_v30 }
 0x7b3   : > { %v1859_v18 = vpop.permute.xlu1 %1858 }
 0x7b4   : > { %3748 = vpow2.f32 %v1924_v13  ;;  %v1912_v14 = vsub.f32 %v4511_v37, %v1859_v18 }
 0x7b5   : > { %v3743_v55 = vpop.eup %3742 }
 0x7b6   : > { %v1934_v34 = vmul.f32 1.442695, %v1912_v14  ;;  %v1986_v24 = vsel %vm1713_vm9, %v3743_v55, 0.0 }
 0x7b7   : > { %1987 = vadd.xlane.f32.xlu1 %v1986_v24  ;;  %v1849_v32 = vpop.permute.xlu1 %1848 }
 0x7b8   : > { %3750 = vpow2.f32 %v1934_v34  ;;  %v1910_v38 = vsub.f32 %v4505_v22, %v1849_v32 }
 0x7b9   : > { %v3745_v33 = vpop.eup %3744  ;;  %v1874_v52 = vpop.permute.xlu0 %1873 }
 0x7ba   : > { %v1930_v35 = vmul.f32 1.442695, %v1910_v38  ;;  %v1992_v39 = vsel %vm1713_vm9, %v3745_v33, 0.0  ;;  %v1915_v54 = vsub.f32 %v4547_v47, %v1874_v52 }
 0x7bb   : > { %1993 = vadd.xlane.f32.xlu0 %v1992_v39  ;;  %v1854_v41 = vpop.permute.xlu1 %1853 }
 0x7bc   : > { %3752 = vpow2.f32 %v1930_v35  ;;  %v1911_v59 = vsub.f32 %v4521_v27, %v1854_v41  ;;  %v1940_v27 = vmul.f32 1.442695, %v1915_v54 }
 0x7bd   : > { %v3747_v37 = vpop.eup %3746  ;;  %v1884_v44 = vpop.permute.xlu0 %1883 }
 0x7be   : > { %v1932_v61 = vmul.f32 1.442695, %v1911_v59  ;;  %v1995_v57 = vsel %vm1713_vm9, %v3747_v37, 0.0  ;;  %v1917_v8 = vsub.f32 %v4539_v43, %v1884_v44  ;;  %v2180_v47 = vpack.c.bf16 %v3747_v37, %v3745_v33 }
 0x7bf   : > { %1996 = vadd.xlane.f32.xlu1 %v1995_v57  ;;  %v1864_v49 = vpop.permute.xlu1 %1863 }
 0x7c0   : > { %3754 = vpow2.f32 %v1932_v61  ;;  %v1913_v22 = vsub.f32 %v4515_v40, %v1864_v49  ;;  %v1944_v42 = vmul.f32 1.442695, %v1917_v8 }
 0x7c1   : > { %v3749_v31 = vpop.eup %3748  ;;  %v1894_v2 = vpop.permute.xlu0 %1893 }
 0x7c2   : > { %v1936_v12 = vmul.f32 1.442695, %v1913_v22  ;;  %v1989_v46 = vsel %vm1713_vm9, %v3749_v31, 0.0  ;;  %v2179_v1 = vpack.c.bf16 %v3749_v31, %v3743_v55  ;;  %v1919_v30 = vsub.f32 %v4571_v62, %v1894_v2 }
 0x7c3   : > { %1990 = vadd.xlane.f32.xlu0 %v1989_v46  ;;  %v1869_v28 = vpop.permute.xlu1 %1868 }
 0x7c4   : > { %3756 = vpow2.f32 %v1936_v12  ;;  %v1914_v36 = vsub.f32 %v4533_v48, %v1869_v28  ;;  %3547 = vmatprep.mubr.msk.bf16.mxu0 %vm1713_vm9, %v2179_v1  ;;  %v1948_v32 = vmul.f32 1.442695, %v1919_v30 }
 0x7c5   : > { %v3751_v20 = vpop.eup %3750  ;;  %3548 = vmatmul.mubr.msk.bf16.vlgmr.msra.gmra.mxu0 %vm1713_vm9, %v2180_v47  ;;  %3758 = vpow2.f32 %v1940_v27  ;;  %v1904_v13 = vpop.permute.xlu0 %1903 }
 0x7c6   : > { %v1938_v40 = vmul.f32 1.442695, %v1914_v36  ;;  %v2004_v43 = vsel %vm1713_vm9, %v3751_v20, 0.0  ;;  %v1921_v55 = vsub.f32 %v4563_v11, %v1904_v13  ;;  %v1824_v13 = vmul.f32 1.442695, %v1793_v15 }
 0x7c7   : > { %2005 = vadd.xlane.f32.xlu0 %v2004_v43  ;;  %v1879_v18 = vpop.permute.xlu1 %1878 }
 0x7c8   : > { %3760 = vpow2.f32 %v1938_v40  ;;  %v1916_v14 = vsub.f32 %v4529_v45, %v1879_v18  ;;  %v1952_v52 = vmul.f32 1.442695, %v1921_v55  ;;  %v1822_v40 = vmul.f32 1.442695, %v1792_v23 }
 0x7c9   : > { %v3753_v48 = vpop.eup %3752  ;;  %3762 = vpow2.f32 %v1944_v42  ;;  %v4768_v19 = vpop.permute.xlu0 %2085 }
 0x7ca   : > { %v1942_v34 = vmul.f32 1.442695, %v1916_v14  ;;  %v1998_v24 = vsel %vm1713_vm9, %v3753_v48, 0.0 }
 0x7cb   : > { %1999 = vadd.xlane.f32.xlu0 %v1998_v24  ;;  %v1889_v38 = vpop.permute.xlu1 %1888 }
 0x7cc   : > { %3764 = vpow2.f32 %v1942_v34  ;;  %v1918_v33 = vsub.f32 %v4557_v58, %v1889_v38 }
 0x7cd   : > { %v3755_v62 = vpop.eup %3754  ;;  %3766 = vpow2.f32 %v1948_v32 }
 0x7ce   : > { %v1946_v35 = vmul.f32 1.442695, %v1918_v33  ;;  %v2181_v39 = vpack.c.bf16 %v3755_v62, %v3753_v48  ;;  %v2001_v57 = vsel %vm1713_vm9, %v3755_v62, 0.0  ;;  %v4772_v48 = vpop.permute.xlu0 %2100  ;;  %v1954_v62 = vld [vmem:[#allocation4] sm:$0xff] }
 0x7cf   : > { %v1899_v41 = vpop.permute.xlu1 %1898 }
 0x7d0   : > { %3768 = vpow2.f32 %v1946_v35  ;;  %v1920_v45 = vsub.f32 %v4553_v25, %v1899_v41  ;;  %3551 = vmatprep.mubr.msk.bf16.mxu0 %vm1713_vm9, %v2181_v39  ;;  %v1956_v41 = vld [vmem:[#allocation4 + $0x10] sm:$0xff] }
 0x7d1   : > { %v3757_v11 = vpop.eup %3756  ;;  %3770 = vpow2.f32 %v1952_v52  ;;  %v1970_v52 = vmul.f32 %v4662_v3, %v1954_v62  ;;  %v1963_v62 = vld [vmem:[#allocation4 + $0x48] sm:$0xff] }
 0x7d2   : > { %v1950_v59 = vmul.f32 1.442695, %v1920_v45  ;;  %v2007_v37 = vsel %vm1713_vm9, %v3757_v11, 0.0  ;;  %v2182_v44 = vpack.c.bf16 %v3757_v11, %v3751_v20  ;;  %v3759_v61 = vpop.eup %3758  ;;  %v4776_v26 = vpop.permute.xlu0 %2120  ;;  %v1972_v11 = vmul.f32 %v4687_v56, %v1956_v41 }
 0x7d3   : > { %2008 = vadd.xlane.f32.xlu1 %v2007_v37  ;;  %v2013_v46 = vsel %vm1713_vm9, %v3759_v61, 0.0  ;;  %v4766_v6 = vpop.permute.xlu1 %2090  ;;  %v1957_v37 = vld [vmem:[#allocation4 + $0x18] sm:$0xff]  ;;  %v1979_v41 = vmul.f32 %v4696_v60, %v1963_v62  ;;  %v2077_v62 = vld [vmem:[#allocation5 + $0x50] sm:$0xff] }
 0x7d4   : > { %3772 = vpow2.f32 %v1950_v59  ;;  %3552 = vmatmul.mubr.msk.bf16.gmra.mxu0 %vm1713_vm9, %v2182_v44 }
 0x7d5   : > { %v3761_v58 = vpop.eup %3760  ;;  %3774 = vpow2.f32 %v1822_v40 }
 0x7d6   : > { %v2183_v54 = vpack.c.bf16 %v3759_v61, %v3761_v58  ;;  %v3763_v49 = vpop.eup %3762  ;;  %v2010_v27 = vsel %vm1713_vm9, %v3761_v58, 0.0  ;;  %3776 = vpow2.f32 %v1824_v13  ;;  %v4780_v15 = vpop.permute.xlu0 %2110  ;;  %v1973_v61 = vmul.f32 %v4667_v0, %v1957_v37 }
 0x7d7   : > { %2002 = vadd.xlane.f32.xlu1 %v2001_v57  ;;  %v2019_v22 = vsel %vm1713_vm9, %v3763_v49, 0.0  ;;  %v4770_v23 = vpop.permute.xlu1 %2095  ;;  %v1955_v57 = vld [vmem:[#allocation4 + $0x8] sm:$0xff] }
 0x7d8   : > { %3555 = vmatprep.mubr.msk.bf16.mxu0 %vm1713_vm9, %v2183_v54  ;;  %v1971_v3 = vmul.f32 %v4679_v51, %v1955_v57 }
 0x7d9   : > { %v3765_v25 = vpop.eup %3764 }
 0x7da   : > { %v2016_v31 = vsel %vm1713_vm9, %v3765_v25, 0.0  ;;  %v2184_v2 = vpack.c.bf16 %v3763_v49, %v3765_v25  ;;  %v3767_v8 = vpop.eup %3766  ;;  %v4784_v24 = vpop.permute.xlu0 %2140  ;;  %v1960_v25 = vld [vmem:[#allocation4 + $0x30] sm:$0xff] }
 0x7db   : > { %2020 = vadd.xlane.f32.xlu1 %v2019_v22  ;;  %2017 = vadd.xlane.f32.xlu0 %v2016_v31  ;;  %v2025_v43 = vsel %vm1713_vm9, %v3767_v8, 0.0  ;;  %v4774_v55 = vpop.permute.xlu1 %2105  ;;  %v1976_v56 = vmul.f32 %v4699_v50, %v1960_v25 }
 0x7dc   : > { %3556 = vmatmul.mubr.msk.bf16.gmra.mxu0 %vm1713_vm9, %v2184_v2  ;;  %v1958_v2 = vld [vmem:[#allocation4 + $0x20] sm:$0xff] }
 0x7dd   : > { %v3769_v12 = vpop.eup %3768  ;;  %v1974_v0 = vmul.f32 %v4693_v7, %v1958_v2  ;;  %v2067_v2 = vld [vmem:[#allocation5] sm:$0xff] }
 0x7de   : > { %v2185_v28 = vpack.c.bf16 %v3767_v8, %v3769_v12  ;;  %v3771_v1 = vpop.eup %3770  ;;  %v2022_v30 = vsel %vm1713_vm9, %v3769_v12, 0.0  ;;  %v4788_v38 = vpop.permute.xlu0 %2130 }
 0x7df   : > { %2014 = vadd.xlane.f32.xlu1 %v2013_v46  ;;  %2011 = vadd.xlane.f32.xlu0 %v2010_v27  ;;  %v2031_v47 = vsel %vm1713_vm9, %v3771_v1, 0.0  ;;  %v4778_v16 = vpop.permute.xlu1 %2115  ;;  %v1961_v27 = vld [vmem:[#allocation4 + $0x38] sm:$0xff] }
 0x7e0   : > { %3559 = vmatprep.mubr.msk.bf16.mxu0 %vm1713_vm9, %v2185_v28  ;;  %v1977_v51 = vmul.f32 %v4674_v10, %v1961_v27  ;;  %v1962_v10 = vld [vmem:[#allocation4 + $0x40] sm:$0xff] }
 0x7e1   : > { %v3773_v36 = vpop.eup %3772 }
 0x7e2   : > { %v2028_v20 = vsel %vm1713_vm9, %v3773_v36, 0.0  ;;  %v2186_v42 = vpack.c.bf16 %v3771_v1, %v3773_v36  ;;  %v4760_v18 = vpop.eup %3774  ;;  %v4793_v35 = vpop.permute.xlu0 %2150  ;;  %v1959_v1 = vld [vmem:[#allocation4 + $0x28] sm:$0xff] }
 0x7e3   : > { %2032 = vadd.xlane.f32.xlu1 %v2031_v47  ;;  %2029 = vadd.xlane.f32.xlu0 %v2028_v20  ;;  %v4763_v14 = vpop.eup %3776  ;;  %v4782_v34 = vpop.permute.xlu1 %2135  ;;  %v1975_v50 = vmul.f32 %v4682_v53, %v1959_v1  ;;  %v1964_v20 = vld [vmem:[#allocation4 + $0x50] sm:$0xff]  ;;  %v1978_v53 = vmul.f32 %v4708_v63, %v1962_v10  ;;  %v1967_v63 = vld [vmem:[#allocation4 + $0x68] sm:$0xff] }
 0x7e4   : > { %3560 = vmatmul.mubr.msk.bf16.gmra.mxu0 %vm1713_vm9, %v2186_v42  ;;  %v1965_v42 = vld [vmem:[#allocation4 + $0x58] sm:$0xff]  ;;  %v1980_v7 = vmul.f32 %v4705_v29, %v1964_v20  ;;  %v1983_v25 = vmul.f32 %v4702_v9, %v1967_v63  ;;  %v2071_v20 = vld [vmem:[#allocation5 + $0x20] sm:$0xff] }
 0x7e5   : > { %v1969_v29 = vld [vmem:[#allocation4 + $0x78] sm:$0xff]  ;;  %v2079_v63 = vld [vmem:[#allocation5 + $0x60] sm:$0xff] }
 0x7e7   : > { %2026 = vadd.xlane.f32.xlu1 %v2025_v43  ;;  %2023 = vadd.xlane.f32.xlu0 %v2022_v30  ;;  %v4786_v32 = vpop.permute.xlu1 %2125  ;;  %v1981_v43 = vmul.f32 %v4690_v17, %v1965_v42 }
 0x7eb   : > { %v4790_v33 = vpop.permute.xlu1 %2145 }
 0x7f8   : > { %2155 = vperm.xlu1 %3695, %v4760_v18  }
 0x7fd   : > { %2160 = vperm.xlu0 %3694, %v4763_v14  }
 0x840   : > { %v1988_v39 = vpop.xlane.xlu1 %1987 }
 0x841   : > { %v2034_v45 = vadd.f32 %v1988_v39, %v1970_v52 }
 0x843   : > { %2051 = vst.msk [vmem:[#allocation4] sm:$0xff] %vm2050_vm10, %v2034_v45 }
 0x844   : > { %v1994_v59 = vpop.xlane.xlu0 %1993 }
 0x845   : > { %v2036_v44 = vadd.f32 %v1994_v59, %v1972_v11  ;;  %v1968_v59 = vld [vmem:[#allocation4 + $0x70] sm:$0xff] }
 0x847   : > { %2053 = vst.msk [vmem:[#allocation4 + $0x10] sm:$0xff] %vm2050_vm10, %v2036_v44  ;;  %v1984_v44 = vmul.f32 %v4760_v18, %v1968_v59 }
 0x848   : > { %v1997_v58 = vpop.xlane.xlu1 %1996 }
 0x849   : > { %v2037_v54 = vadd.f32 %v1997_v58, %v1973_v61  ;;  %v1985_v61 = vmul.f32 %v4763_v14, %v1969_v29  ;;  %v2069_v14 = vld [vmem:[#allocation5 + $0x10] sm:$0xff] }
 0x84b   : > { %2054 = vst.msk [vmem:[#allocation4 + $0x18] sm:$0xff] %vm2050_vm10, %v2037_v54  ;;  %v1966_v54 = vld [vmem:[#allocation4 + $0x60] sm:$0xff] }
 0x84c   : > { %v1991_v49 = vpop.xlane.xlu0 %1990 }
 0x84d   : > { %v2035_v22 = vadd.f32 %v1991_v49, %v1971_v3  ;;  %v1982_v49 = vmul.f32 %v4711_v21, %v1966_v54  ;;  %v2068_v21 = vld [vmem:[#allocation5 + $0x8] sm:$0xff] }
 0x84f   : > { %2052 = vst.msk [vmem:[#allocation4 + $0x8] sm:$0xff] %vm2050_vm10, %v2035_v22 }
 0x850   : > { %v2006_v31 = vpop.xlane.xlu0 %2005 }
 0x851   : > { %v2040_v8 = vadd.f32 %v2006_v31, %v1976_v56 }
 0x853   : > { %2057 = vst.msk [vmem:[#allocation4 + $0x30] sm:$0xff] %vm2050_vm10, %v2040_v8  ;;  %v2165_v8 = vmul.f32 %v4770_v23, %v2069_v14 }
 0x854   : > { %v2000_v12 = vpop.xlane.xlu0 %1999 }
 0x855   : > { %v2038_v46 = vadd.f32 %v2000_v12, %v1974_v0  ;;  %v2070_v0 = vld [vmem:[#allocation5 + $0x18] sm:$0xff] }
 0x856   : > { %v2166_v9 = vmul.f32 %v4772_v48, %v2070_v0  ;;  %v2074_v48 = vld [vmem:[#allocation5 + $0x38] sm:$0xff] }
 0x857   : > { %2055 = vst.msk [vmem:[#allocation4 + $0x20] sm:$0xff] %vm2050_vm10, %v2038_v46  ;;  %v2163_v46 = vmul.f32 %v4768_v19, %v2067_v2  ;;  %v2073_v19 = vld [vmem:[#allocation5 + $0x30] sm:$0xff] }
 0x858   : > { %v2169_v42 = vmul.f32 %v4778_v16, %v2073_v19  ;;  %v2075_v16 = vld [vmem:[#allocation5 + $0x40] sm:$0xff] }
 0x85c   : > { %v2009_v28 = vpop.xlane.xlu1 %2008 }
 0x85d   : > { %v2041_v36 = vadd.f32 %v2009_v28, %v1977_v51 }
 0x85f   : > { %2058 = vst.msk [vmem:[#allocation4 + $0x38] sm:$0xff] %vm2050_vm10, %v2041_v36  ;;  %v2164_v36 = vmul.f32 %v4766_v6, %v2068_v21 }
 0x860   : > { %v2003_v47 = vpop.xlane.xlu1 %2002 }
 0x861   : > { %v2039_v40 = vadd.f32 %v2003_v47, %v1975_v50 }
 0x863   : > { %2056 = vst.msk [vmem:[#allocation4 + $0x28] sm:$0xff] %vm2050_vm10, %v2039_v40 }
 0x864   : > { %v2018_v30 = vpop.xlane.xlu0 %2017  ;;  %v2021_v13 = vpop.xlane.xlu1 %2020 }
 0x865   : > { %v2044_v52 = vadd.f32 %v2018_v30, %v1980_v7  ;;  %v2045_v39 = vadd.f32 %v2021_v13, %v1981_v43  ;;  %v2167_v7 = vmul.f32 %v4774_v55, %v2071_v20  ;;  %v2072_v30 = vld [vmem:[#allocation5 + $0x28] sm:$0xff]  ;;  %v2170_v13 = vmul.f32 %v4776_v26, %v2074_v48 }
 0x866   : > { %v2171_v26 = vmul.f32 %v4786_v32, %v2075_v16 }
 0x867   : > { %2061 = vst.msk [vmem:[#allocation4 + $0x50] sm:$0xff] %vm2050_vm10, %v2044_v52  ;;  %2062 = vst.msk [vmem:[#allocation4 + $0x58] sm:$0xff] %vm2050_vm10, %v2045_v39  ;;  %v2168_v39 = vmul.f32 %v4780_v15, %v2072_v30 }
 0x868   : > { %v2012_v45 = vpop.xlane.xlu0 %2011  ;;  %v2015_v11 = vpop.xlane.xlu1 %2014 }
 0x869   : > { %v2042_v37 = vadd.f32 %v2012_v45, %v1978_v53  ;;  %v2043_v17 = vadd.f32 %v2015_v11, %v1979_v41  ;;  %v2173_v45 = vmul.f32 %v4782_v34, %v2077_v62  ;;  %v2078_v11 = vld [vmem:[#allocation5 + $0x58] sm:$0xff] }
 0x86a   : > { %v2174_v15 = vmul.f32 %v4784_v24, %v2078_v11 }
 0x86b   : > { %2059 = vst.msk [vmem:[#allocation4 + $0x40] sm:$0xff] %vm2050_vm10, %v2042_v37  ;;  %2060 = vst.msk [vmem:[#allocation4 + $0x48] sm:$0xff] %vm2050_vm10, %v2043_v17  ;;  %v2076_v37 = vld [vmem:[#allocation5 + $0x48] sm:$0xff] }
 0x86c   : > { %v2030_v58 = vpop.xlane.xlu0 %2029  ;;  %v2033_v57 = vpop.xlane.xlu1 %2032 }
 0x86d   : > { %v2048_v3 = vadd.f32 %v2030_v58, %v1984_v44  ;;  %v2049_v60 = vadd.f32 %v2033_v57, %v1985_v61  ;;  %v2081_v61 = vld [vmem:[#allocation5 + $0x70] sm:$0xff]  ;;  %v2172_v57 = vmul.f32 %v4788_v38, %v2076_v37 }
 0x86f   : > { %2065 = vst.msk [vmem:[#allocation4 + $0x70] sm:$0xff] %vm2050_vm10, %v2048_v3  ;;  %2066 = vst.msk [vmem:[#allocation4 + $0x78] sm:$0xff] %vm2050_vm10, %v2049_v60 }
 0x870   : > { %v2024_v22 = vpop.xlane.xlu0 %2023  ;;  %v2027_v56 = vpop.xlane.xlu1 %2026 }
 0x871   : > { %v2046_v31 = vadd.f32 %v2024_v22, %v1982_v49  ;;  %v2047_v18 = vadd.f32 %v2027_v56, %v1983_v25  ;;  %v2082_v49 = vld [vmem:[#allocation5 + $0x78] sm:$0xff]  ;;  %v2175_v22 = vmul.f32 %v4790_v33, %v2079_v63 }
 0x873   : > { %2063 = vst.msk [vmem:[#allocation4 + $0x60] sm:$0xff] %vm2050_vm10, %v2046_v31  ;;  %2064 = vst.msk [vmem:[#allocation4 + $0x68] sm:$0xff] %vm2050_vm10, %v2047_v18  ;;  %v2080_v31 = vld [vmem:[#allocation5 + $0x68] sm:$0xff] }
 0x874   : > { %v2156_v58 = vpop.permute.xlu1 %2155 }
 0x875   : > { %v2177_v3 = vmul.f32 %v2156_v58, %v2081_v61 }
 0x878   : > { %v2161_v25 = vpop.permute.xlu0 %2160 }
 0x879   : > { %v2178_v38 = vmul.f32 %v2161_v25, %v2082_v49 }
 0x885   : > { %v3549_v12 = vpop.f32.mrf.mxu0 }
 0x886   : > { %v2310_v27 = vadd.f32 %v3549_v12, %v2165_v8  ;;  %v2176_v8 = vmul.f32 %v4793_v35, %v2080_v31 }
 0x887   : > { %v2245_v51 = vpop.f32.mrf.mxu0 }
 0x888   : > { %2326 = vst.msk [vmem:[#allocation5 + $0x10] sm:$0xff] %vm1550_vm7, %v2310_v27  ;;  %v2308_v28 = vadd.f32 %v2245_v51, %v2163_v46 }
 0x889   : > { %v3550_v1 = vpop.f32.mrf.mxu0 }
 0x88a   : > { %2324 = vst.msk [vmem:[#allocation5] sm:$0xff] %vm1550_vm7, %v2308_v28  ;;  %v2311_v50 = vadd.f32 %v3550_v1, %v2166_v9 }
 0x88b   : > { %v2248_v47 = vpop.f32.mrf.mxu0 }
 0x88c   : > { %2327 = vst.msk [vmem:[#allocation5 + $0x18] sm:$0xff] %vm1550_vm7, %v2311_v50  ;;  %v2309_v23 = vadd.f32 %v2248_v47, %v2164_v36 }
 0x88e   : > { %2325 = vst.msk [vmem:[#allocation5 + $0x8] sm:$0xff] %vm1550_vm7, %v2309_v23 }
 0x894   : > { %v3553_v40 = vpop.f32.mrf.mxu0 }
 0x895   : > { %v2314_v43 = vadd.f32 %v3553_v40, %v2169_v42 }
 0x896   : > { %v2261_v6 = vpop.f32.mrf.mxu0 }
 0x897   : > { %2330 = vst.msk [vmem:[#allocation5 + $0x30] sm:$0xff] %vm1550_vm7, %v2314_v43  ;;  %v2312_v10 = vadd.f32 %v2261_v6, %v2167_v7 }
 0x898   : > { %v3554_v52 = vpop.f32.mrf.mxu0 }
 0x899   : > { %2328 = vst.msk [vmem:[#allocation5 + $0x20] sm:$0xff] %vm1550_vm7, %v2312_v10  ;;  %v2315_v53 = vadd.f32 %v3554_v52, %v2170_v13 }
 0x89a   : > { %v2264_v41 = vpop.f32.mrf.mxu0 }
 0x89b   : > { %2331 = vst.msk [vmem:[#allocation5 + $0x38] sm:$0xff] %vm1550_vm7, %v2315_v53  ;;  %v2313_v55 = vadd.f32 %v2264_v41, %v2168_v39 }
 0x89c   : > { %v3557_v59 = vpop.f32.mrf.mxu0 }
 0x89d   : > { %2329 = vst.msk [vmem:[#allocation5 + $0x28] sm:$0xff] %vm1550_vm7, %v2313_v55  ;;  %v2318_v29 = vadd.f32 %v3557_v59, %v2173_v45 }
 0x89e   : > { %v2277_v17 = vpop.f32.mrf.mxu0 }
 0x89f   : > { %2334 = vst.msk [vmem:[#allocation5 + $0x50] sm:$0xff] %vm1550_vm7, %v2318_v29  ;;  %v2316_v44 = vadd.f32 %v2277_v17, %v2171_v26 }
 0x8a0   : > { %v3558_v34 = vpop.f32.mrf.mxu0 }
 0x8a1   : > { %2332 = vst.msk [vmem:[#allocation5 + $0x40] sm:$0xff] %vm1550_vm7, %v2316_v44  ;;  %v2319_v54 = vadd.f32 %v3558_v34, %v2174_v15 }
 0x8a2   : > { %v2280_v32 = vpop.f32.mrf.mxu0 }
 0x8a3   : > { %2335 = vst.msk [vmem:[#allocation5 + $0x58] sm:$0xff] %vm1550_vm7, %v2319_v54  ;;  %v2317_v60 = vadd.f32 %v2280_v32, %v2172_v57 }
 0x8a4   : > { %v3561_v24 = vpop.f32.mrf.mxu0 }
 0x8a5   : > { %2333 = vst.msk [vmem:[#allocation5 + $0x48] sm:$0xff] %vm1550_vm7, %v2317_v60  ;;  %v2322_v56 = vadd.f32 %v3561_v24, %v2177_v3 }
 0x8a6   : > { %v2293_v18 = vpop.f32.mrf.mxu0 }
 0x8a7   : > { %2338 = vst.msk [vmem:[#allocation5 + $0x70] sm:$0xff] %vm1550_vm7, %v2322_v56  ;;  %v2320_v14 = vadd.f32 %v2293_v18, %v2175_v22 }
 0x8a8   : > { %v3562_v2 = vpop.f32.mrf.mxu0 }
 0x8a9   : > { %2336 = vst.msk [vmem:[#allocation5 + $0x60] sm:$0xff] %vm1550_vm7, %v2320_v14  ;;  %v2323_v0 = vadd.f32 %v3562_v2, %v2178_v38  ;;  %2359 = sbr.rel (%p3326_p8) target bundleno = 3112 (0xc28), region = 76 }
 0x8aa   : > { %v2296_v12 = vpop.f32.mrf.mxu0 }
 0x8ab   : > { %2339 = vst.msk [vmem:[#allocation5 + $0x78] sm:$0xff] %vm1550_vm7, %v2323_v0  ;;  %v2321_v46 = vadd.f32 %v2296_v12, %v2176_v8 }
 0x8ad   : > { %2337 = vst.msk [vmem:[#allocation5 + $0x68] sm:$0xff] %vm1550_vm7, %v2321_v46 }
 0x8ae   : > { %v2378_v33 = vld [vmem:[#allocation4 + $0x10] sm:$0xff]  ;;  %v2376_v27 = vld [vmem:[#allocation4] sm:$0xff]  ;;  %v2379_v21 = vld [vmem:[#allocation4 + $0x18] sm:$0xff]  ;;  %v3897_v51 = vmov 0  }
 0x8af   : > { %3779 = vset.pattern.permute.xlu1 %v3897_v51  ;;  %3778 = vset.pattern.permute.xlu0 %v3897_v51  ;;  %3788 = vrcp.f32 %v2378_v33  ;;  %v2377_v35 = vld [vmem:[#allocation4 + $0x8] sm:$0xff]  ;;  %v2380_v28 = vld [vmem:[#allocation4 + $0x20] sm:$0xff]  ;;  %v2383_v1 = vld [vmem:[#allocation4 + $0x38] sm:$0xff] }
 0x8b0   : > { %3790 = vrcp.f32 %v2376_v27  ;;  %v2381_v9 = vld [vmem:[#allocation4 + $0x28] sm:$0xff]  ;;  %v2382_v36 = vld [vmem:[#allocation4 + $0x30] sm:$0xff]  ;;  %v2384_v47 = vld [vmem:[#allocation4 + $0x40] sm:$0xff] }
 0x8b1   : > { %3792 = vrcp.f32 %v2379_v21  ;;  %v2385_v50 = vld [vmem:[#allocation4 + $0x48] sm:$0xff]  ;;  %v2387_v42 = vld [vmem:[#allocation4 + $0x58] sm:$0xff]  ;;  %v2386_v40 = vld [vmem:[#allocation4 + $0x50] sm:$0xff] }
 0x8b2   : > { %3794 = vrcp.f32 %v2377_v35  ;;  %v2389_v43 = vld [vmem:[#allocation4 + $0x68] sm:$0xff]  ;;  %v2388_v6 = vld [vmem:[#allocation4 + $0x60] sm:$0xff]  ;;  %v2391_v10 = vld [vmem:[#allocation4 + $0x78] sm:$0xff] }
 0x8b3   : > { %3796 = vrcp.f32 %v2381_v9  ;;  %v2390_v52 = vld [vmem:[#allocation4 + $0x70] sm:$0xff]  ;;  %v2360_v29 = vld [vmem:[#allocation5] sm:$0xff]  ;;  %v2361_v61 = vld [vmem:[#allocation5 + $0x8] sm:$0xff] }
 0x8b4   : > { %3798 = vrcp.f32 %v2380_v28  ;;  %v2362_v26 = vld [vmem:[#allocation5 + $0x10] sm:$0xff]  ;;  %v2363_v57 = vld [vmem:[#allocation5 + $0x18] sm:$0xff]  ;;  %v2364_v3 = vld [vmem:[#allocation5 + $0x20] sm:$0xff] }
 0x8b5   : > { %3800 = vrcp.f32 %v2383_v1  ;;  %v2365_v24 = vld [vmem:[#allocation5 + $0x28] sm:$0xff]  ;;  %v2366_v31 = vld [vmem:[#allocation5 + $0x30] sm:$0xff]  ;;  %v2367_v8 = vld [vmem:[#allocation5 + $0x38] sm:$0xff] }
 0x8b6   : > { %3802 = vrcp.f32 %v2382_v36  ;;  %v2368_v46 = vld [vmem:[#allocation5 + $0x40] sm:$0xff]  ;;  %v2369_v35 = vld [vmem:[#allocation5 + $0x48] sm:$0xff]  ;;  %v2370_v1 = vld [vmem:[#allocation5 + $0x50] sm:$0xff] }
 0x8b7   : > { %3804 = vrcp.f32 %v2385_v50 }
 0x8b8   : > { %3806 = vrcp.f32 %v2384_v47 }
 0x8b9   : > { %3808 = vrcp.f32 %v2387_v42 }
 0x8ba   : > { %3810 = vrcp.f32 %v2386_v40 }
 0x8bb   : > { %3812 = vrcp.f32 %v2389_v43 }
 0x8bc   : > { %v3789_v23 = vpop.eup %3788  ;;  %3814 = vrcp.f32 %v2388_v6  ;;  %v2373_v6 = vld [vmem:[#allocation5 + $0x68] sm:$0xff] }
 0x8bd   : > { %v3791_v19 = vpop.eup %3790  ;;  %2420 = vperm.xlu1 %3779, %v3789_v23   ;;  %3816 = vrcp.f32 %v2391_v10 }
 0x8be   : > { %v3793_v20 = vpop.eup %3792  ;;  %2410 = vperm.xlu0 %3778, %v3791_v19   ;;  %3818 = vrcp.f32 %v2390_v52  ;;  %v2371_v19 = vld [vmem:[#allocation5 + $0x58] sm:$0xff] }
 0x8bf   : > { %v3795_v48 = vpop.eup %3794 }
 0x8c0   : > { %v3797_v7 = vpop.eup %3796 }
 0x8c1   : > { %2425 = vperm.xlu1 %3779, %v3793_v20   ;;  %v3799_v30 = vpop.eup %3798 }
 0x8c2   : > { %2415 = vperm.xlu0 %3778, %v3795_v48   ;;  %v3801_v13 = vpop.eup %3800  ;;  %v2372_v48 = vld [vmem:[#allocation5 + $0x60] sm:$0xff] }
 0x8c3   : > { %v3803_v62 = vpop.eup %3802 }
 0x8c4   : > { %v3805_v39 = vpop.eup %3804 }
 0x8c5   : > { %2435 = vperm.xlu1 %3779, %v3797_v7   ;;  %v3807_v53 = vpop.eup %3806 }
 0x8c6   : > { %2430 = vperm.xlu0 %3778, %v3799_v30   ;;  %v3809_v16 = vpop.eup %3808 }
 0x8c7   : > { %v3811_v41 = vpop.eup %3810 }
 0x8c8   : > { %v3813_v45 = vpop.eup %3812 }
 0x8c9   : > { %2445 = vperm.xlu1 %3779, %v3801_v13   ;;  %v3815_v55 = vpop.eup %3814 }
 0x8ca   : > { %2440 = vperm.xlu0 %3778, %v3803_v62   ;;  %v3817_v11 = vpop.eup %3816  ;;  %v2374_v62 = vld [vmem:[#allocation5 + $0x70] sm:$0xff] }
 0x8cb   : > { %v3819_v59 = vpop.eup %3818 }
 0x8cd   : > { %2455 = vperm.xlu1 %3779, %v3805_v39  }
 0x8ce   : > { %2450 = vperm.xlu0 %3778, %v3807_v53  }
 0x8d1   : > { %2465 = vperm.xlu1 %3779, %v3809_v16  }
 0x8d2   : > { %2460 = vperm.xlu0 %3778, %v3811_v41   ;;  %v2375_v41 = vld [vmem:[#allocation5 + $0x78] sm:$0xff] }
 0x8d5   : > { %2475 = vperm.xlu1 %3779, %v3813_v45  }
 0x8d6   : > { %2470 = vperm.xlu0 %3778, %v3815_v55  }
 0x8d9   : > { %2485 = vperm.xlu1 %3779, %v3817_v11  }
 0x8da   : > { %2480 = vperm.xlu0 %3778, %v3819_v59  }
 0x938   : > { %v2421_v37 = vpop.permute.xlu1 %2420 }
 0x939   : > { %v2411_v17 = vpop.permute.xlu0 %2410  ;;  %v4857_v15 = vmul.f32 %v2421_v37, %v2362_v26 }
 0x93a   : > { %v4859_v44 = vmul.f32 %v2411_v17, %v2360_v29 }
 0x93b   : > { %v2510_v32 = vsel %vm1550_vm7, %v4857_v15, 0.0 }
 0x93c   : > { %v2426_v58 = vpop.permute.xlu1 %2425  ;;  %v2504_v34 = vsel %vm1550_vm7, %v4859_v44, 0.0 }
 0x93d   : > { %v2416_v54 = vpop.permute.xlu0 %2415  ;;  %2505 = vadd.xlane.f32.xlu0 %v2504_v34  ;;  %v4867_v60 = vmul.f32 %v2426_v58, %v2363_v57 }
 0x93e   : > { %v4863_v63 = vmul.f32 %v2416_v54, %v2361_v61 }
 0x93f   : > { %v2513_v2 = vsel %vm1550_vm7, %v4867_v60, 0.0 }
 0x940   : > { %v2436_v49 = vpop.permute.xlu1 %2435  ;;  %v2507_v25 = vsel %vm1550_vm7, %v4863_v63, 0.0 }
 0x941   : > { %v2431_v22 = vpop.permute.xlu0 %2430  ;;  %2508 = vadd.xlane.f32.xlu1 %v2507_v25  ;;  %2511 = vadd.xlane.f32.xlu0 %v2510_v32  ;;  %v4873_v18 = vmul.f32 %v2436_v49, %v2365_v24 }
 0x942   : > { %v4871_v56 = vmul.f32 %v2431_v22, %v2364_v3 }
 0x943   : > { %v2519_v51 = vsel %vm1550_vm7, %v4873_v18, 0.0 }
 0x944   : > { %v2446_v38 = vpop.permute.xlu1 %2445  ;;  %v2516_v14 = vsel %vm1550_vm7, %v4871_v56, 0.0 }
 0x945   : > { %v2441_v0 = vpop.permute.xlu0 %2440  ;;  %2517 = vadd.xlane.f32.xlu1 %v2516_v14  ;;  %2514 = vadd.xlane.f32.xlu0 %v2513_v2  ;;  %v4881_v33 = vmul.f32 %v2446_v38, %v2367_v8 }
 0x946   : > { %v4879_v12 = vmul.f32 %v2441_v0, %v2366_v31 }
 0x947   : > { %v2525_v23 = vsel %vm1550_vm7, %v4881_v33, 0.0 }
 0x948   : > { %v2456_v27 = vpop.permute.xlu1 %2455  ;;  %v2522_v21 = vsel %vm1550_vm7, %v4879_v12, 0.0 }
 0x949   : > { %v2451_v9 = vpop.permute.xlu0 %2450  ;;  %2523 = vadd.xlane.f32.xlu1 %v2522_v21  ;;  %2520 = vadd.xlane.f32.xlu0 %v2519_v51  ;;  %v4889_v36 = vmul.f32 %v2456_v27, %v2369_v35 }
 0x94a   : > { %v4887_v28 = vmul.f32 %v2451_v9, %v2368_v46 }
 0x94b   : > { %v2531_v30 = vsel %vm1550_vm7, %v4889_v36, 0.0 }
 0x94c   : > { %v2466_v50 = vpop.permute.xlu1 %2465  ;;  %v2528_v47 = vsel %vm1550_vm7, %v4887_v28, 0.0 }
 0x94d   : > { %v2461_v20 = vpop.permute.xlu0 %2460  ;;  %2529 = vadd.xlane.f32.xlu1 %v2528_v47  ;;  %2526 = vadd.xlane.f32.xlu0 %v2525_v23  ;;  %v4897_v40 = vmul.f32 %v2466_v50, %v2371_v19 }
 0x94e   : > { %v4895_v42 = vmul.f32 %v2461_v20, %v2370_v1 }
 0x94f   : > { %v2537_v53 = vsel %vm1550_vm7, %v4897_v40, 0.0 }
 0x950   : > { %v2476_v7 = vpop.permute.xlu1 %2475  ;;  %v2534_v43 = vsel %vm1550_vm7, %v4895_v42, 0.0 }
 0x951   : > { %v2471_v13 = vpop.permute.xlu0 %2470  ;;  %2535 = vadd.xlane.f32.xlu1 %v2534_v43  ;;  %2532 = vadd.xlane.f32.xlu0 %v2531_v30  ;;  %v4905_v52 = vmul.f32 %v2476_v7, %v2373_v6 }
 0x952   : > { %v4903_v10 = vmul.f32 %v2471_v13, %v2372_v48 }
 0x953   : > { %v2543_v26 = vsel %vm1550_vm7, %v4905_v52, 0.0 }
 0x954   : > { %v2540_v39 = vsel %vm1550_vm7, %v4903_v10, 0.0  ;;  %v2486_v16 = vpop.permute.xlu1 %2485 }
 0x955   : > { %v2481_v45 = vpop.permute.xlu0 %2480  ;;  %2541 = vadd.xlane.f32.xlu1 %v2540_v39  ;;  %2538 = vadd.xlane.f32.xlu0 %v2537_v53  ;;  %v4913_v11 = vmul.f32 %v2486_v16, %v2375_v41 }
 0x956   : > { %v4911_v55 = vmul.f32 %v2481_v45, %v2374_v62 }
 0x957   : > { %v2549_v29 = vsel %vm1550_vm7, %v4913_v11, 0.0 }
 0x958   : > { %v2546_v59 = vsel %vm1550_vm7, %v4911_v55, 0.0 }
 0x959   : > { %2547 = vadd.xlane.f32.xlu1 %v2546_v59  ;;  %2544 = vadd.xlane.f32.xlu0 %v2543_v26 }
 0x95d   : > { %2550 = vadd.xlane.f32.xlu0 %v2549_v29 }
 0x9c6   : > { %v2506_v37 = vpop.xlane.xlu0 %2505 }
 0x9c7   : > { %v2553_v17 = vmul.f32 0.015625, %v2506_v37 }
 0x9c9   : > { %v4922_v61 = vsub.f32 %v4859_v44, %v2553_v17 }
 0x9ca   : > { %v2509_v58 = vpop.xlane.xlu1 %2508  ;;  %v2512_v34 = vpop.xlane.xlu0 %2511 }
 0x9cb   : > { %v2554_v57 = vmul.f32 0.015625, %v2509_v58  ;;  %v2555_v54 = vmul.f32 0.015625, %v2512_v34  ;;  %v2585_v32 = vmul.f32 %v4922_v61, %v4922_v61 }
 0x9cd   : > { %v4927_v3 = vsub.f32 %v4863_v63, %v2554_v57  ;;  %v4930_v49 = vsub.f32 %v4857_v15, %v2555_v54  ;;  %v2601_v25 = vsel %vm1550_vm7, %v2585_v32, 0.0 }
 0x9ce   : > { %v2518_v24 = vpop.xlane.xlu1 %2517  ;;  %2602 = vadd.xlane.f32.xlu1 %v2601_v25  ;;  %v2515_v22 = vpop.xlane.xlu0 %2514 }
 0x9cf   : > { %v2557_v44 = vmul.f32 0.015625, %v2518_v24  ;;  %v2556_v31 = vmul.f32 0.015625, %v2515_v22  ;;  %v2586_v38 = vmul.f32 %v4927_v3, %v4927_v3  ;;  %v2587_v14 = vmul.f32 %v4930_v49, %v4930_v49 }
 0x9d1   : > { %v4938_v2 = vsub.f32 %v4871_v56, %v2557_v44  ;;  %v4941_v63 = vsub.f32 %v4867_v60, %v2556_v31  ;;  %v2604_v15 = vsel %vm1550_vm7, %v2586_v38, 0.0  ;;  %v2607_v8 = vsel %vm1550_vm7, %v2587_v14, 0.0  ;;  %v3780_v38 = vld [vmem:[%s5159_s7 + $0x18] sm:$0xff]  }
 0x9d2   : > { %v2524_v0 = vpop.xlane.xlu1 %2523  ;;  %2605 = vadd.xlane.f32.xlu0 %v2604_v15  ;;  %2608 = vadd.xlane.f32.xlu1 %v2607_v8  ;;  %v2521_v46 = vpop.xlane.xlu0 %2520 }
 0x9d3   : > { %v2559_v27 = vmul.f32 0.015625, %v2524_v0  ;;  %v2558_v21 = vmul.f32 0.015625, %v2521_v46  ;;  %v2589_v51 = vmul.f32 %v4938_v2, %v4938_v2  ;;  %v2588_v56 = vmul.f32 %v4941_v63, %v4941_v63  ;;  %3563 = vmatprep.subr.bf16.mxu0 %v3780_v38 }
 0x9d4   : > { %3564 = vmatpush3.bf16.msra.mxu0 %v3780_v38 }
 0x9d5   : > { %v4950_v35 = vsub.f32 %v4879_v12, %v2559_v27  ;;  %v4953_v60 = vsub.f32 %v4873_v18, %v2558_v21  ;;  %v2613_v9 = vsel %vm1550_vm7, %v2589_v51, 0.0  ;;  %v2610_v1 = vsel %vm1550_vm7, %v2588_v56, 0.0  ;;  %v3781_v27 = vld [vmem:[%s5159_s7 + $0x10] sm:$0xff]   ;;  %v3783_v56 = vld [vmem:[%s5159_s7] sm:$0xff]  }
 0x9d6   : > { %v2530_v50 = vpop.xlane.xlu1 %2529  ;;  %2614 = vadd.xlane.f32.xlu1 %v2613_v9  ;;  %2611 = vadd.xlane.f32.xlu0 %v2610_v1  ;;  %v2527_v47 = vpop.xlane.xlu0 %2526  ;;  %v3784_v9 = vld [vmem:[%s5160_s8 + $0x18] sm:$0xff]  }
 0x9d7   : > { %v2561_v23 = vmul.f32 0.015625, %v2530_v50  ;;  %v2560_v19 = vmul.f32 0.015625, %v2527_v47  ;;  %v2591_v20 = vmul.f32 %v4950_v35, %v4950_v35  ;;  %v2590_v12 = vmul.f32 %v4953_v60, %v4953_v60  ;;  %3565 = vmatprep.subr.bf16.mxu0 %v3781_v27  ;;  %3587 = vmatprep.subr.bf16.mxu1 %v3784_v9 }
 0x9d8   : > { %3566 = vmatpush3.bf16.msra.mxu0 %v3781_v27  ;;  %3588 = vmatpush3.bf16.msra.mxu1 %v3784_v9 }
 0x9d9   : > { %v4962_v48 = vsub.f32 %v4887_v28, %v2561_v23  ;;  %v4965_v18 = vsub.f32 %v4881_v33, %v2560_v19  ;;  %v2619_v7 = vsel %vm1550_vm7, %v2591_v20, 0.0  ;;  %v2616_v43 = vsel %vm1550_vm7, %v2590_v12, 0.0 }
 0x9da   : > { %v2536_v30 = vpop.xlane.xlu1 %2535  ;;  %2620 = vadd.xlane.f32.xlu1 %v2619_v7  ;;  %2617 = vadd.xlane.f32.xlu0 %v2616_v43  ;;  %v2533_v6 = vpop.xlane.xlu0 %2532 }
 0x9db   : > { %v2563_v13 = vmul.f32 0.015625, %v2536_v30  ;;  %v2562_v62 = vmul.f32 0.015625, %v2533_v6  ;;  %v2593_v39 = vmul.f32 %v4962_v48, %v4962_v48  ;;  %v2592_v28 = vmul.f32 %v4965_v18, %v4965_v18 }
 0x9dd   : > { %v4974_v53 = vsub.f32 %v4895_v42, %v2563_v13  ;;  %v4977_v33 = vsub.f32 %v4889_v36, %v2562_v62  ;;  %v2625_v16 = vsel %vm1550_vm7, %v2593_v39, 0.0  ;;  %v2622_v41 = vsel %vm1550_vm7, %v2592_v28, 0.0 }
 0x9de   : > { %v2542_v45 = vpop.xlane.xlu1 %2541  ;;  %2626 = vadd.xlane.f32.xlu1 %v2625_v16  ;;  %2623 = vadd.xlane.f32.xlu0 %v2622_v41  ;;  %v2539_v59 = vpop.xlane.xlu0 %2538 }
 0x9df   : > { %v2565_v26 = vmul.f32 0.015625, %v2542_v45  ;;  %v2564_v29 = vmul.f32 0.015625, %v2539_v59  ;;  %v2595_v37 = vmul.f32 %v4974_v53, %v4974_v53  ;;  %v2594_v42 = vmul.f32 %v4977_v33, %v4977_v33 }
 0x9e1   : > { %v4986_v17 = vsub.f32 %v4903_v10, %v2565_v26  ;;  %v4989_v36 = vsub.f32 %v4897_v40, %v2564_v29  ;;  %v2631_v58 = vsel %vm1550_vm7, %v2595_v37, 0.0  ;;  %v2628_v34 = vsel %vm1550_vm7, %v2594_v42, 0.0 }
 0x9e2   : > { %v2548_v57 = vpop.xlane.xlu1 %2547  ;;  %2632 = vadd.xlane.f32.xlu1 %v2631_v58  ;;  %2629 = vadd.xlane.f32.xlu0 %v2628_v34  ;;  %v2545_v54 = vpop.xlane.xlu0 %2544 }
 0x9e3   : > { %v2567_v32 = vmul.f32 0.015625, %v2548_v57  ;;  %v2566_v25 = vmul.f32 0.015625, %v2545_v54  ;;  %v2597_v24 = vmul.f32 %v4986_v17, %v4986_v17  ;;  %v2596_v10 = vmul.f32 %v4989_v36, %v4989_v36 }
 0x9e5   : > { %v4998_v22 = vsub.f32 %v4911_v55, %v2567_v32  ;;  %v5001_v40 = vsub.f32 %v4905_v52, %v2566_v25  ;;  %v2637_v44 = vsel %vm1550_vm7, %v2597_v24, 0.0  ;;  %v2634_v31 = vsel %vm1550_vm7, %v2596_v10, 0.0 }
 0x9e6   : > { %2638 = vadd.xlane.f32.xlu1 %v2637_v44  ;;  %2635 = vadd.xlane.f32.xlu0 %v2634_v31  ;;  %v2551_v14 = vpop.xlane.xlu0 %2550 }
 0x9e7   : > { %v2568_v15 = vmul.f32 0.015625, %v2551_v14  ;;  %v2599_v8 = vmul.f32 %v4998_v22, %v4998_v22  ;;  %v2598_v55 = vmul.f32 %v5001_v40, %v5001_v40 }
 0x9e9   : > { %v5013_v52 = vsub.f32 %v4913_v11, %v2568_v15  ;;  %v2643_v0 = vsel %vm1550_vm7, %v2599_v8, 0.0  ;;  %v2640_v46 = vsel %vm1550_vm7, %v2598_v55, 0.0  ;;  %v3782_v11 = vld [vmem:[%s5159_s7 + $0x8] sm:$0xff]  }
 0x9ea   : > { %2644 = vadd.xlane.f32.xlu1 %v2643_v0  ;;  %2641 = vadd.xlane.f32.xlu0 %v2640_v46 }
 0x9eb   : > { %v2600_v21 = vmul.f32 %v5013_v52, %v5013_v52  ;;  %3567 = vmatprep.subr.bf16.mxu0 %v3782_v11 }
 0x9ec   : > { %3568 = vmatpush3.bf16.msra.mxu0 %v3782_v11 }
 0x9ed   : > { %v2646_v51 = vsel %vm1550_vm7, %v2600_v21, 0.0  ;;  %3569 = vmatprep.subr.bf16.mxu0 %v3783_v56 }
 0x9ee   : > { %2647 = vadd.xlane.f32.xlu0 %v2646_v51 }
 0x9f0   : > { %3570 = vmatpush3.bf16.msra.mxu0 %v3783_v56 }
 0xa57   : > { %v2603_v1 = vpop.xlane.xlu1 %2602 }
 0xa58   : > { %v2649_v50 = vmul.f32 0.015625, %v2603_v1 }
 0xa5a   : > { %v2665_v47 = vadd.f32 1e-05, %v2649_v50 }
 0xa5b   : > { %v2609_v23 = vpop.xlane.xlu1 %2608  ;;  %v2606_v19 = vpop.xlane.xlu0 %2605 }
 0xa5c   : > { %v2651_v20 = vmul.f32 0.015625, %v2609_v23  ;;  %v2650_v12 = vmul.f32 0.015625, %v2606_v19  ;;  %3820 = vrsqrt.f32 %v2665_v47 }
 0xa5e   : > { %v2666_v7 = vadd.f32 1e-05, %v2650_v12  ;;  %v2667_v43 = vadd.f32 1e-05, %v2651_v20 }
 0xa5f   : > { %v2615_v30 = vpop.xlane.xlu1 %2614  ;;  %v2612_v6 = vpop.xlane.xlu0 %2611 }
 0xa60   : > { %v2653_v13 = vmul.f32 0.015625, %v2615_v30  ;;  %v2652_v62 = vmul.f32 0.015625, %v2612_v6  ;;  %3822 = vrsqrt.f32 %v2666_v7 }
 0xa61   : > { %3824 = vrsqrt.f32 %v2667_v43 }
 0xa62   : > { %v2668_v39 = vadd.f32 1e-05, %v2652_v62  ;;  %v2669_v28 = vadd.f32 1e-05, %v2653_v13 }
 0xa63   : > { %v2621_v16 = vpop.xlane.xlu1 %2620  ;;  %v2618_v41 = vpop.xlane.xlu0 %2617 }
 0xa64   : > { %v2655_v45 = vmul.f32 0.015625, %v2621_v16  ;;  %v2654_v59 = vmul.f32 0.015625, %v2618_v41  ;;  %3826 = vrsqrt.f32 %v2668_v39 }
 0xa65   : > { %3828 = vrsqrt.f32 %v2669_v28 }
 0xa66   : > { %v2670_v26 = vadd.f32 1e-05, %v2654_v59  ;;  %v2671_v29 = vadd.f32 1e-05, %v2655_v45 }
 0xa67   : > { %v2627_v37 = vpop.xlane.xlu1 %2626  ;;  %v2624_v42 = vpop.xlane.xlu0 %2623 }
 0xa68   : > { %v2657_v58 = vmul.f32 0.015625, %v2627_v37  ;;  %v2656_v34 = vmul.f32 0.015625, %v2624_v42  ;;  %3830 = vrsqrt.f32 %v2670_v26 }
 0xa69   : > { %3832 = vrsqrt.f32 %v2671_v29  ;;  %v3821_v24 = vpop.eup %3820 }
 0xa6a   : > { %v2672_v57 = vadd.f32 1e-05, %v2656_v34  ;;  %v2673_v54 = vadd.f32 1e-05, %v2657_v58  ;;  %v2697_v55 = vmul.f32 %v3821_v24, %v4922_v61 }
 0xa6b   : > { %v2633_v32 = vpop.xlane.xlu1 %2632  ;;  %v2630_v25 = vpop.xlane.xlu0 %2629 }
 0xa6c   : > { %v2659_v10 = vmul.f32 0.015625, %v2633_v32  ;;  %v2658_v44 = vmul.f32 0.015625, %v2630_v25  ;;  %3834 = vrsqrt.f32 %v2672_v57 }
 0xa6d   : > { %v3823_v31 = vpop.eup %3822  ;;  %3836 = vrsqrt.f32 %v2673_v54 }
 0xa6e   : > { %v2674_v38 = vadd.f32 1e-05, %v2658_v44  ;;  %v2675_v14 = vadd.f32 1e-05, %v2659_v10  ;;  %v2698_v0 = vmul.f32 %v3823_v31, %v4927_v3  ;;  %v3825_v46 = vpop.eup %3824 }
 0xa6f   : > { %v2639_v15 = vpop.xlane.xlu1 %2638  ;;  %v2636_v8 = vpop.xlane.xlu0 %2635  ;;  %v2699_v47 = vmul.f32 %v3825_v46, %v4930_v49 }
 0xa70   : > { %v2661_v27 = vmul.f32 0.015625, %v2639_v15  ;;  %v2660_v21 = vmul.f32 0.015625, %v2636_v8  ;;  %3838 = vrsqrt.f32 %v2674_v38  ;;  %v2713_v51 = vpack.c.bf16 %v2698_v0, %v2697_v55 }
 0xa71   : > { %v3827_v11 = vpop.eup %3826  ;;  %3840 = vrsqrt.f32 %v2675_v14 }
 0xa72   : > { %v2676_v56 = vadd.f32 1e-05, %v2660_v21  ;;  %v2677_v9 = vadd.f32 1e-05, %v2661_v27  ;;  %3571 = vmatprep.mubr.msk.bf16.mxu0 %vm1550_vm7, %v2713_v51  ;;  %v2700_v23 = vmul.f32 %v3827_v11, %v4941_v63  ;;  %v3829_v61 = vpop.eup %3828 }
 0xa73   : > { %v2645_v1 = vpop.xlane.xlu1 %2644  ;;  %v2642_v50 = vpop.xlane.xlu0 %2641  ;;  %v2701_v6 = vmul.f32 %v3829_v61, %v4938_v2 }
 0xa74   : > { %v2663_v19 = vmul.f32 0.015625, %v2645_v1  ;;  %v2662_v3 = vmul.f32 0.015625, %v2642_v50  ;;  %3842 = vrsqrt.f32 %v2676_v56  ;;  %v2714_v20 = vpack.c.bf16 %v2700_v23, %v2699_v47 }
 0xa75   : > { %v3831_v12 = vpop.eup %3830  ;;  %3844 = vrsqrt.f32 %v2677_v9 }
 0xa76   : > { %v2679_v7 = vadd.f32 1e-05, %v2663_v19  ;;  %v2678_v43 = vadd.f32 1e-05, %v2662_v3  ;;  %3572 = vmatmul.mubr.msk.bf16.vlgmr.msra.gmra.mxu0 %vm1550_vm7, %v2714_v20  ;;  %v2702_v13 = vmul.f32 %v3831_v12, %v4953_v60  ;;  %v3833_v62 = vpop.eup %3832 }
 0xa77   : > { %v2648_v30 = vpop.xlane.xlu0 %2647  ;;  %v2703_v16 = vmul.f32 %v3833_v62, %v4950_v35 }
 0xa78   : > { %v2664_v49 = vmul.f32 0.015625, %v2648_v30  ;;  %3846 = vrsqrt.f32 %v2678_v43  ;;  %v2715_v63 = vpack.c.bf16 %v2702_v13, %v2701_v6 }
 0xa79   : > { %v3835_v39 = vpop.eup %3834  ;;  %3848 = vrsqrt.f32 %v2679_v7 }
 0xa7a   : > { %v2680_v28 = vadd.f32 1e-05, %v2664_v49  ;;  %3575 = vmatprep.mubr.msk.bf16.mxu0 %vm1550_vm7, %v2715_v63  ;;  %v2704_v41 = vmul.f32 %v3835_v39, %v4965_v18  ;;  %v3837_v45 = vpop.eup %3836 }
 0xa7b   : > { %v2705_v2 = vmul.f32 %v3837_v45, %v4962_v48 }
 0xa7c   : > { %3850 = vrsqrt.f32 %v2680_v28  ;;  %v2716_v59 = vpack.c.bf16 %v2704_v41, %v2703_v16 }
 0xa7d   : > { %v3839_v26 = vpop.eup %3838 }
 0xa7e   : > { %3576 = vmatmul.mubr.msk.bf16.gmra.mxu0 %vm1550_vm7, %v2716_v59  ;;  %v2706_v60 = vmul.f32 %v3839_v26, %v4977_v33  ;;  %v3841_v29 = vpop.eup %3840 }
 0xa7f   : > { %v2707_v58 = vmul.f32 %v3841_v29, %v4974_v53 }
 0xa80   : > { %v2717_v37 = vpack.c.bf16 %v2706_v60, %v2705_v2 }
 0xa81   : > { %v3843_v42 = vpop.eup %3842 }
 0xa82   : > { %3579 = vmatprep.mubr.msk.bf16.mxu0 %vm1550_vm7, %v2717_v37  ;;  %v2708_v35 = vmul.f32 %v3843_v42, %v4989_v36  ;;  %v3845_v18 = vpop.eup %3844  ;;  %v3785_v36 = vld [vmem:[%s5160_s8 + $0x10] sm:$0xff]  }
 0xa83   : > { %v2709_v32 = vmul.f32 %v3845_v18, %v4986_v17  ;;  %3589 = vmatprep.subr.bf16.mxu1 %v3785_v36  ;;  %v3786_v17 = vld [vmem:[%s5160_s8 + $0x8] sm:$0xff]  }
 0xa84   : > { %v2718_v34 = vpack.c.bf16 %v2708_v35, %v2707_v58  ;;  %3590 = vmatpush3.bf16.msra.mxu1 %v3785_v36 }
 0xa85   : > { %v3847_v57 = vpop.eup %3846  ;;  %3591 = vmatprep.subr.bf16.mxu1 %v3786_v17 }
 0xa86   : > { %v3849_v54 = vpop.eup %3848  ;;  %3580 = vmatmul.mubr.msk.bf16.gmra.mxu0 %vm1550_vm7, %v2718_v34  ;;  %v2710_v48 = vmul.f32 %v3847_v57, %v5001_v40 }
 0xa87   : > { %v2711_v24 = vmul.f32 %v3849_v54, %v4998_v22  ;;  %v3787_v22 = vld [vmem:[%s5160_s8] sm:$0xff]  }
 0xa88   : > { %v2719_v25 = vpack.c.bf16 %v2710_v48, %v2709_v32  ;;  %3592 = vmatpush3.bf16.msra.mxu1 %v3786_v17 }
 0xa89   : > { %v3851_v33 = vpop.eup %3850  ;;  %3593 = vmatprep.subr.bf16.mxu1 %v3787_v22 }
 0xa8a   : > { %v2712_v10 = vmul.f32 %v3851_v33, %v5013_v52  ;;  %3583 = vmatprep.mubr.msk.bf16.mxu0 %vm1550_vm7, %v2719_v25 }
 0xa8c   : > { %v2720_v53 = vpack.c.bf16 %v2712_v10, %v2711_v24  ;;  %3594 = vmatpush3.bf16.msra.mxu1 %v3787_v22 }
 0xa8e   : > { %3584 = vmatmul.mubr.msk.bf16.gmra.mxu0 %vm1550_vm7, %v2720_v53 }
 0xb36   : > { %v3573_v40 = vpop.f32.mrf.mxu0 }
 0xb37   : > { %v2824_v14 = vadd.f32 %v3573_v40, %v4024_v4 }
 0xb38   : > { %v2815_v52 = vpop.f32.mrf.mxu0 }
 0xb39   : > { %v2816_v31 = vadd.f32 %v4024_v4, %v2815_v52  ;;  %v2880_v21 = vmax.f32 %v2824_v14, 0.0 }
 0xb3a   : > { %v3574_v44 = vpop.f32.mrf.mxu0 }
 0xb3b   : > { %v2827_v38 = vadd.f32 %v3574_v44, %v4024_v4  ;;  %v2878_v46 = vmax.f32 %v2816_v31, 0.0 }
 0xb3c   : > { %v2818_v15 = vpop.f32.mrf.mxu0 }
 0xb3d   : > { %v2819_v8 = vadd.f32 %v4024_v4, %v2818_v15  ;;  %v2881_v55 = vmax.f32 %v2827_v38, 0.0 }
 0xb3e   : > { %v3577_v0 = vpop.f32.mrf.mxu0 }
 0xb3f   : > { %v2879_v27 = vmax.f32 %v2819_v8, 0.0  ;;  %v2895_v56 = vpack.c.bf16 %v2881_v55, %v2880_v21  ;;  %v2840_v47 = vadd.f32 %v3577_v0, %v4024_v4 }
 0xb40   : > { %v2831_v51 = vpop.f32.mrf.mxu0 }
 0xb41   : > { %v2894_v11 = vpack.c.bf16 %v2879_v27, %v2878_v46  ;;  %v2832_v1 = vadd.f32 %v4024_v4, %v2831_v51  ;;  %v2884_v7 = vmax.f32 %v2840_v47, 0.0 }
 0xb42   : > { %v3578_v9 = vpop.f32.mrf.mxu0 }
 0xb43   : > { %v2843_v50 = vadd.f32 %v3578_v9, %v4024_v4  ;;  %3595 = vmatprep.mubr.msk.bf16.mxu1 %vm1550_vm7, %v2894_v11  ;;  %v2882_v20 = vmax.f32 %v2832_v1, 0.0 }
 0xb44   : > { %v2834_v23 = vpop.f32.mrf.mxu0  ;;  %3596 = vmatmul.mubr.msk.bf16.vlgmr.msra.gmra.mxu1 %vm1550_vm7, %v2895_v56 }
 0xb45   : > { %v2835_v61 = vadd.f32 %v4024_v4, %v2834_v23  ;;  %v2885_v19 = vmax.f32 %v2843_v50, 0.0 }
 0xb46   : > { %v3581_v3 = vpop.f32.mrf.mxu0 }
 0xb47   : > { %v2883_v12 = vmax.f32 %v2835_v61, 0.0  ;;  %v2897_v6 = vpack.c.bf16 %v2885_v19, %v2884_v7  ;;  %v2856_v63 = vadd.f32 %v3581_v3, %v4024_v4 }
 0xb48   : > { %v2847_v43 = vpop.f32.mrf.mxu0 }
 0xb49   : > { %v2896_v30 = vpack.c.bf16 %v2883_v12, %v2882_v20  ;;  %v2848_v62 = vadd.f32 %v4024_v4, %v2847_v43  ;;  %v2888_v26 = vmax.f32 %v2856_v63, 0.0 }
 0xb4a   : > { %v3582_v13 = vpop.f32.mrf.mxu0 }
 0xb4b   : > { %v2859_v49 = vadd.f32 %v3582_v13, %v4024_v4  ;;  %3599 = vmatprep.mubr.msk.bf16.mxu1 %vm1550_vm7, %v2896_v30  ;;  %v2886_v45 = vmax.f32 %v2848_v62, 0.0 }
 0xb4c   : > { %v2850_v39 = vpop.f32.mrf.mxu0  ;;  %3600 = vmatmul.mubr.msk.bf16.gmra.mxu1 %vm1550_vm7, %v2897_v6 }
 0xb4d   : > { %v2851_v28 = vadd.f32 %v4024_v4, %v2850_v39  ;;  %v2889_v16 = vmax.f32 %v2859_v49, 0.0 }
 0xb4e   : > { %v3585_v41 = vpop.f32.mrf.mxu0 }
 0xb4f   : > { %v2887_v59 = vmax.f32 %v2851_v28, 0.0  ;;  %v2899_v29 = vpack.c.bf16 %v2889_v16, %v2888_v26  ;;  %v2872_v35 = vadd.f32 %v3585_v41, %v4024_v4 }
 0xb50   : > { %v2863_v2 = vpop.f32.mrf.mxu0 }
 0xb51   : > { %v2898_v60 = vpack.c.bf16 %v2887_v59, %v2886_v45  ;;  %v2864_v42 = vadd.f32 %v4024_v4, %v2863_v2  ;;  %v2892_v48 = vmax.f32 %v2872_v35, 0.0 }
 0xb52   : > { %v3586_v37 = vpop.f32.mrf.mxu0 }
 0xb53   : > { %v2875_v58 = vadd.f32 %v3586_v37, %v4024_v4  ;;  %3603 = vmatprep.mubr.msk.bf16.mxu1 %vm1550_vm7, %v2898_v60  ;;  %v2890_v54 = vmax.f32 %v2864_v42, 0.0 }
 0xb54   : > { %v2866_v18 = vpop.f32.mrf.mxu0  ;;  %3604 = vmatmul.mubr.msk.bf16.gmra.mxu1 %vm1550_vm7, %v2899_v29 }
 0xb55   : > { %v2867_v34 = vadd.f32 %v4024_v4, %v2866_v18  ;;  %v2893_v57 = vmax.f32 %v2875_v58, 0.0 }
 0xb57   : > { %v2891_v32 = vmax.f32 %v2867_v34, 0.0  ;;  %v2901_v25 = vpack.c.bf16 %v2893_v57, %v2892_v48 }
 0xb59   : > { %v2900_v33 = vpack.c.bf16 %v2891_v32, %v2890_v54 }
 0xb5b   : > { %3607 = vmatprep.mubr.msk.bf16.mxu1 %vm1550_vm7, %v2900_v33 }
 0xb5c   : > { %3608 = vmatmul.mubr.msk.bf16.gmra.mxu1 %vm1550_vm7, %v2901_v25 }
 0xc04   : > { %v3597_v24 = vpop.f32.mrf.mxu1 }
 0xc05   : > { %v3005_v10 = vadd.f32 %v3597_v24, %v4029_v5 }
 0xc06   : > { %v2996_v53 = vpop.f32.mrf.mxu1 }
 0xc07   : > { %v3061_v36 = vmax.f32 %v3005_v10, 0.0  ;;  %v2997_v4 = vadd.f32 %v4029_v5, %v2996_v53 }
 0xc08   : > { %v3598_v17 = vpop.f32.mrf.mxu1 }
 0xc09   : > { %3077 = vst.msk [vmem:[%s4039_s24 + $0x10] sm:$0xff] %vm1550_vm7, %v3061_v36  ;;  %v3059_v22 = vmax.f32 %v2997_v4, 0.0  ;;  %v3008_v40 = vadd.f32 %v3598_v17, %v4029_v5 }
 0xc0a   : > { %v2999_v52 = vpop.f32.mrf.mxu1 }
 0xc0b   : > { %3075 = vst.msk [vmem:[%s4039_s24] sm:$0xff] %vm1550_vm7, %v3059_v22  ;;  %v3062_v44 = vmax.f32 %v3008_v40, 0.0  ;;  %v3000_v31 = vadd.f32 %v4029_v5, %v2999_v52 }
 0xc0c   : > { %v3601_v38 = vpop.f32.mrf.mxu1 }
 0xc0d   : > { %3078 = vst.msk [vmem:[%s4039_s24 + $0x18] sm:$0xff] %vm1550_vm7, %v3062_v44  ;;  %v3060_v14 = vmax.f32 %v3000_v31, 0.0  ;;  %v3021_v15 = vadd.f32 %v3601_v38, %v4029_v5 }
 0xc0e   : > { %v3012_v8 = vpop.f32.mrf.mxu1 }
 0xc0f   : > { %3076 = vst.msk [vmem:[%s4039_s24 + $0x8] sm:$0xff] %vm1550_vm7, %v3060_v14  ;;  %v3065_v55 = vmax.f32 %v3021_v15, 0.0  ;;  %v3013_v0 = vadd.f32 %v4029_v5, %v3012_v8 }
 0xc10   : > { %v3602_v46 = vpop.f32.mrf.mxu1 }
 0xc11   : > { %3081 = vst.msk [vmem:[%s4039_s24 + $0x30] sm:$0xff] %vm1550_vm7, %v3065_v55  ;;  %v3063_v27 = vmax.f32 %v3013_v0, 0.0  ;;  %v3024_v21 = vadd.f32 %v3602_v46, %v4029_v5 }
 0xc12   : > { %v3015_v51 = vpop.f32.mrf.mxu1 }
 0xc13   : > { %3079 = vst.msk [vmem:[%s4039_s24 + $0x20] sm:$0xff] %vm1550_vm7, %v3063_v27  ;;  %v3066_v11 = vmax.f32 %v3024_v21, 0.0  ;;  %v3016_v56 = vadd.f32 %v4029_v5, %v3015_v51 }
 0xc14   : > { %v3605_v9 = vpop.f32.mrf.mxu1 }
 0xc15   : > { %3082 = vst.msk [vmem:[%s4039_s24 + $0x38] sm:$0xff] %vm1550_vm7, %v3066_v11  ;;  %v3064_v1 = vmax.f32 %v3016_v56, 0.0  ;;  %v3037_v50 = vadd.f32 %v3605_v9, %v4029_v5 }
 0xc16   : > { %v3028_v47 = vpop.f32.mrf.mxu1 }
 0xc17   : > { %3080 = vst.msk [vmem:[%s4039_s24 + $0x28] sm:$0xff] %vm1550_vm7, %v3064_v1  ;;  %v3069_v23 = vmax.f32 %v3037_v50, 0.0  ;;  %v3029_v61 = vadd.f32 %v4029_v5, %v3028_v47 }
 0xc18   : > { %v3606_v19 = vpop.f32.mrf.mxu1 }
 0xc19   : > { %3085 = vst.msk [vmem:[%s4039_s24 + $0x50] sm:$0xff] %vm1550_vm7, %v3069_v23  ;;  %v3067_v3 = vmax.f32 %v3029_v61, 0.0  ;;  %v3040_v20 = vadd.f32 %v3606_v19, %v4029_v5 }
 0xc1a   : > { %v3031_v12 = vpop.f32.mrf.mxu1 }
 0xc1b   : > { %3083 = vst.msk [vmem:[%s4039_s24 + $0x40] sm:$0xff] %vm1550_vm7, %v3067_v3  ;;  %v3070_v7 = vmax.f32 %v3040_v20, 0.0  ;;  %v3032_v43 = vadd.f32 %v4029_v5, %v3031_v12 }
 0xc1c   : > { %v3609_v30 = vpop.f32.mrf.mxu1 }
 0xc1d   : > { %3086 = vst.msk [vmem:[%s4039_s24 + $0x58] sm:$0xff] %vm1550_vm7, %v3070_v7  ;;  %v3068_v6 = vmax.f32 %v3032_v43, 0.0  ;;  %v3053_v13 = vadd.f32 %v3609_v30, %v4029_v5 }
 0xc1e   : > { %v3044_v62 = vpop.f32.mrf.mxu1 }
 0xc1f   : > { %3084 = vst.msk [vmem:[%s4039_s24 + $0x48] sm:$0xff] %vm1550_vm7, %v3068_v6  ;;  %v3073_v49 = vmax.f32 %v3053_v13, 0.0  ;;  %v3045_v63 = vadd.f32 %v4029_v5, %v3044_v62 }
 0xc20   : > { %v3610_v39 = vpop.f32.mrf.mxu1 }
 0xc21   : > { %3089 = vst.msk [vmem:[%s4039_s24 + $0x70] sm:$0xff] %vm1550_vm7, %v3073_v49  ;;  %v3071_v28 = vmax.f32 %v3045_v63, 0.0  ;;  %v3056_v16 = vadd.f32 %v3610_v39, %v4029_v5 }
 0xc22   : > { %v3047_v41 = vpop.f32.mrf.mxu1 }
 0xc23   : > { %3087 = vst.msk [vmem:[%s4039_s24 + $0x60] sm:$0xff] %vm1550_vm7, %v3071_v28  ;;  %v3074_v45 = vmax.f32 %v3056_v16, 0.0  ;;  %v3048_v59 = vadd.f32 %v4029_v5, %v3047_v41 }
 0xc25   : > { %3090 = vst.msk [vmem:[%s4039_s24 + $0x78] sm:$0xff] %vm1550_vm7, %v3074_v45  ;;  %v3072_v26 = vmax.f32 %v3048_v59, 0.0 }
 0xc27   : > { %3088 = vst.msk [vmem:[%s4039_s24 + $0x68] sm:$0xff] %vm1550_vm7, %v3072_v26 }
 0xc28 PF: > { %s24_s29 = sadd.s32 1, %s3890_s29   ;;  %s5176_s25 = sld [smem:[#allocation6_spill]] }
 0xc29   : > { %p21_p9 = scmp.ge.s32.totalorder %s24_s29, 6   ;;  %s5177_s26 = sld [smem:[#allocation7_spill]] }
 0xc2a   : > { %s5178_s27 = sld [smem:[#allocation8_spill]] }
 0xc2b   : > { %s5179_s28 = sld [smem:[#allocation9_spill]]  ;;  %23 = sbr.rel (!%p21_p9) target bundleno = 4 (0x4), region = 121 }

</bundles_post_ra>
